<compile_context>
chip_gen: v7x
topology: tpu7x:2x2x1
jax: 0.10.0
libtpu: 0.0.40
codegen_flags: <defaults>
</compile_context>

<pallas_src>
import jax
import jax.numpy as jnp
import numpy as np
from jax.experimental import pallas as pl
from jax.experimental.pallas import tpu as pltpu

# ---------------- small sizes consistent with the module ----------------
B        = 2     # batch
N_MELS   = 16    # freq bins (conv W)
N_FRAMES = 8     # time frames (conv H) -> RNN sequence length
CF       = 16    # cnn.nb_filters[-1]
EMB      = 64    # embedding_size (stand-in for 527)
T_EMB    = 16    # BEATs time steps (adaptive-avg-pooled down to N_FRAMES)
H        = 32    # n_RNN_cell
NCLASS   = 10    # nclass
NTOK     = 4     # number of BEATs cls tokens
CLS_DIM  = 768   # linear_768 input dim

TB = N_FRAMES * B          # time-major rows (t, b)


# ---------------- single fused kernel ----------------
def crnn_kernel(
    patch_ref,   # (T*B*M, 9)      im2col rows, time-major (t, b, mel)
    pool_ref,    # (T*B, T*B*M)    constant freq avg-pool matrix
    emb_ref,     # (T*B, EMB)      pooled BEATs embeddings, time-major
    selb_ref,    # (B, T*B)        constant per-batch time-sum matrix
    cls_ref,     # (B, 768)        BEATs cls tokens, already mean-pooled over tokens
    wc9_ref, bc_ref,                       # conv3x3 weight (9, 2CF) / bias (1, 2CF)
    catw1_ref, catw2_ref, catb_ref,        # cat_tf split weights / bias
    wih1_ref, bih1_ref, whh1_ref, bhh1_ref,  # GRU layer 1 (fwd|bwd combined layouts)
    wih2_ref, bih2_ref, whh2_ref, bhh2_ref,  # GRU layer 2
    whead_ref, bhead_ref,                  # merged dense + dense_softmax head
    w768_ref, b768_ref,
    strong_ref,  # out: (T*B, NCLASS)
    weak_ref,    # out: (B, NCLASS)
):
    f32 = jnp.float32

    # ---- CNN: one im2col matmul over all T*B*M rows, GLU, freq avg-pool ----
    y = jnp.dot(patch_ref[...], wc9_ref[...],
                preferred_element_type=f32) + bc_ref[...]              # (T*B*M, 2CF)
    glu = y[:, :CF] * jax.nn.sigmoid(y[:, CF:])                        # GLU over channels
    pooled = jnp.dot(pool_ref[...], glu, preferred_element_type=f32)   # (T*B, CF)

    # ---- cat_tf(concat(x, emb)) as two batched matmuls ----
    feat = (jnp.dot(pooled, catw1_ref[...], preferred_element_type=f32)
            + jnp.dot(emb_ref[...], catw2_ref[...], preferred_element_type=f32)
            + catb_ref[...])                                           # (T*B, CF)

    # ---- fused bidirectional GRU layer (PyTorch gate math, h0 = 0) ----
    # whh_blk is block-diagonal over [h_f | h_b] with gate columns ordered
    # [r_f, r_b, z_f, z_b, n_f, n_b]; wih/bih columns are [fwd 3H | bwd 3H].
    def bigru_layer(x, wih, bih, whh_blk, bhh):
        # hoisted input projection: ONE matmul for both directions
        gi_all = jnp.dot(x, wih, preferred_element_type=f32) + bih     # (T*B, 6H)
        gi_f = gi_all[:, :3 * H]
        gi_b = gi_all[:, 3 * H:]
        # time-reverse the bwd rows once (off the recurrence critical path) and
        # interleave the gate columns to match the block-diagonal whh layout.
        gi_b_rev = jnp.concatenate(
            [gi_b[(N_FRAMES - 1 - t) * B:(N_FRAMES - t) * B, :]
             for t in range(N_FRAMES)], axis=0)                        # (T*B, 3H)
        gi_comb = jnp.concatenate(
            [gi_f[:, :H],        gi_b_rev[:, :H],
             gi_f[:, H:2 * H],   gi_b_rev[:, H:2 * H],
             gi_f[:, 2 * H:],    gi_b_rev[:, 2 * H:]], axis=1)         # (T*B, 6H)

        h = jnp.zeros((B, 2 * H), f32)        # [h_f | h_b]
        hf, hb = [], []
        for i in range(N_FRAMES):             # T=8, fully unrolled
            gi = gi_comb[i * B:(i + 1) * B, :]
            # one dependent matmul per step for BOTH directions
            gh = jnp.dot(h, whh_blk, preferred_element_type=f32) + bhh  # (B, 6H)
            # one sigmoid for r & z of both directions (4H = 128 lanes)
            s = jax.nn.sigmoid(gi[:, :4 * H] + gh[:, :4 * H])
            r = s[:, :2 * H]                  # [r_f | r_b]
            z = s[:, 2 * H:]                  # [z_f | z_b]
            # one tanh for n of both directions (b_hn stays inside r*(...), per PyTorch)
            n = jnp.tanh(gi[:, 4 * H:] + r * gh[:, 4 * H:])             # (B, 2H)
            h = (1.0 - z) * n + z * h
            hf.append(h[:, :H])               # fwd state for time i
            hb.append(h[:, H:])               # bwd state for time T-1-i
        out_f = jnp.concatenate(hf, axis=0)          # (T*B, H) time-major
        out_b = jnp.concatenate(hb[::-1], axis=0)    # (T*B, H) time-major
        return jnp.concatenate([out_f, out_b], axis=1)   # (T*B, 2H)

    h1 = bigru_layer(feat, wih1_ref[...], bih1_ref[...], whh1_ref[...], bhh1_ref[...])
    h2 = bigru_layer(h1, wih2_ref[...], bih2_ref[...], whh2_ref[...], bhh2_ref[...])

    # ---- heads: merged dense/dense_softmax matmul, softmax+clip, attention pooling ----
    head = jnp.dot(h2, whead_ref[...], preferred_element_type=f32) + bhead_ref[...]
    strong = jax.nn.sigmoid(head[:, :NCLASS])                          # (T*B, NCLASS)
    logits = head[:, NCLASS:]
    m = jnp.max(logits, axis=-1, keepdims=True)
    e = jnp.exp(logits - m)
    sof = e / jnp.sum(e, axis=-1, keepdims=True)
    sof = jnp.clip(sof, 1e-7, 1.0)

    weak_num = jnp.dot(selb_ref[...], strong * sof, preferred_element_type=f32)
    weak_den = jnp.dot(selb_ref[...], sof, preferred_element_type=f32)
    weak = weak_num / weak_den                                         # (B, NCLASS)

    # cls head: tokens were mean-pooled in the wrapper -> (B, 768) x (768, NCLASS)
    wcls = jax.nn.sigmoid(
        jnp.dot(cls_ref[...], w768_ref[...], preferred_element_type=f32) + b768_ref[...])

    strong_ref[...] = strong
    weak_ref[...] = 0.5 * wcls + 0.5 * weak


def crnn_fused(patches, emb_rows, cls_mean, p):
    args = [
        patches, p['pool_f'], emb_rows, p['sel_b'], cls_mean,
        p['wc9'], p['bc'], p['cat_w1t'], p['cat_w2t'], p['cat_b'],
        p['wih1'], p['bih1'], p['whh1'], p['bhh1'],
        p['wih2'], p['bih2'], p['whh2'], p['bhh2'],
        p['whead'], p['bhead'], p['w768_t'], p['b768'],
    ]
    vmem = pl.BlockSpec(memory_space=pltpu.MemorySpace.VMEM)
    return pl.pallas_call(
        crnn_kernel,
        out_shape=(jax.ShapeDtypeStruct((TB, NCLASS), jnp.float32),
                   jax.ShapeDtypeStruct((B, NCLASS), jnp.float32)),
        in_specs=[vmem] * len(args),
        out_specs=(vmem, vmem),
    )(*args)


# ---------------- parameters (deterministic synthetic init, pre-fused layouts) ----------------
def init_params(key):
    ks = jax.random.split(key, 28)

    def w(k, shape, scale=0.1):
        return (scale * jax.random.normal(k, shape)).astype(jnp.float32)

    p = {
        'wc9': w(ks[0], (9, 2 * CF)),       # conv weight (2*CF,1,3,3) flattened+transposed
        'bc': w(ks[1], (1, 2 * CF)),
        'cat_w1t': w(ks[2], (CF, CF)),      # cat_tf weight[:, :CF].T
        'cat_w2t': w(ks[3], (EMB, CF)),     # cat_tf weight[:, CF:].T
        'cat_b': w(ks[4], (1, CF)),
        'w768_t': w(ks[9], (CLS_DIM, NCLASS)),
        'b768': w(ks[10], (1, NCLASS)),
    }
    # merged dense + dense_softmax head
    dense_wt = w(ks[5], (2 * H, NCLASS)); dense_b = w(ks[6], (1, NCLASS))
    soft_wt  = w(ks[7], (2 * H, NCLASS)); soft_b  = w(ks[8], (1, NCLASS))
    p['whead'] = jnp.concatenate([dense_wt, soft_wt], axis=1)           # (2H, 2*NCLASS)
    p['bhead'] = jnp.concatenate([dense_b, soft_b], axis=1)             # (1, 2*NCLASS)

    # GRU layers: build combined fwd|bwd layouts once here (outside the kernel)
    idx = 11
    Z = jnp.zeros((H, H), jnp.float32)
    for layer in (1, 2):
        nin = CF if layer == 1 else 2 * H
        raw = {}
        for direc in ('f', 'b'):
            raw[direc] = {
                'wih_t': w(ks[idx + 0], (nin, 3 * H)),   # PyTorch weight_ih.T (cols r,z,n)
                'whh_t': w(ks[idx + 1], (H, 3 * H)),     # PyTorch weight_hh.T (cols r,z,n)
                'bih':   w(ks[idx + 2], (1, 3 * H)),
                'bhh':   w(ks[idx + 3], (1, 3 * H)),
            }
            idx += 4
        f, bw = raw['f'], raw['b']
        # input projection: one matmul for both directions, columns [fwd 3H | bwd 3H]
        p[f'wih{layer}'] = jnp.concatenate([f['wih_t'], bw['wih_t']], axis=1)   # (nin, 6H)
        p[f'bih{layer}'] = jnp.concatenate([f['bih'], bw['bih']], axis=1)       # (1, 6H)
        # block-diagonal recurrent weight over [h_f | h_b] with gate columns
        # interleaved as [r_f, r_b, z_f, z_b, n_f, n_b]
        p[f'whh{layer}'] = jnp.concatenate([
            jnp.concatenate([f['whh_t'][:, 0:H],          Z], axis=0),
            jnp.concatenate([Z,          bw['whh_t'][:, 0:H]], axis=0),
            jnp.concatenate([f['whh_t'][:, H:2 * H],      Z], axis=0),
            jnp.concatenate([Z,      bw['whh_t'][:, H:2 * H]], axis=0),
            jnp.concatenate([f['whh_t'][:, 2 * H:],       Z], axis=0),
            jnp.concatenate([Z,       bw['whh_t'][:, 2 * H:]], axis=0),
        ], axis=1)                                                               # (2H, 6H)
        p[f'bhh{layer}'] = jnp.concatenate([
            f['bhh'][:, 0:H],     bw['bhh'][:, 0:H],
            f['bhh'][:, H:2 * H], bw['bhh'][:, H:2 * H],
            f['bhh'][:, 2 * H:],  bw['bhh'][:, 2 * H:]], axis=1)                 # (1, 6H)

    # constant pooling matrices (replace in-kernel iota/where mask construction)
    p['pool_f'] = jnp.asarray(np.kron(np.eye(TB), np.ones((1, N_MELS)) / N_MELS),
                              dtype=jnp.float32)                                 # (TB, TB*M)
    p['sel_b'] = jnp.asarray(np.tile(np.eye(B), (1, N_FRAMES)),
                             dtype=jnp.float32)                                  # (B, TB)
    return p


# ---------------- full forward ----------------
def crnn_forward(x, beats_emb, cls_token, p):
    bb, n_mels, n_frames = x.shape

    # x.transpose(1,2).unsqueeze(1) -> conv input (B, 1, frames, mels); build im2col
    # patches time-major (t, b, mel). (Kept: it is tiny and off the recurrence path.)
    img = jnp.transpose(x, (0, 2, 1))                                  # (B, frames, mels)
    pad = jnp.pad(img, ((0, 0), (1, 1), (1, 1)))
    patches = jnp.stack([pad[:, ky:ky + n_frames, kx:kx + n_mels]
                         for ky in range(3) for kx in range(3)], axis=-1)  # (B, F, M, 9)
    patches = jnp.transpose(patches, (1, 0, 2, 3)).reshape(n_frames * bb * n_mels, 9)

    # BEATs embeddings: transpose(1,2) -> adaptive_avg_pool1d(.., frames) -> transpose(1,2);
    # rows ordered time-major (t, b).
    emb = jnp.transpose(beats_emb, (0, 2, 1))                          # (B, EMB, T_emb)
    pool_t = T_EMB // n_frames
    emb = emb.reshape(bb, EMB, n_frames, pool_t).mean(-1)              # (B, EMB, F)
    emb_rows = jnp.transpose(emb, (2, 0, 1)).reshape(n_frames * bb, EMB)

    # cls tokens mean-pooled BEFORE the 768-K matmul (linear commutes with mean)
    cls_mean = cls_token.mean(axis=1)                                  # (B, 768)

    strong_tm, weak = crnn_fused(patches, emb_rows, cls_mean, p)
    strong = jnp.transpose(strong_tm.reshape(n_frames, bb, NCLASS), (1, 2, 0))  # (B, NCLASS, T)
    return strong, weak


if __name__ == "__main__":
    key = jax.random.PRNGKey(0)
    k_x, k_e, k_c, k_p = jax.random.split(key, 4)
    x = jax.random.normal(k_x, (B, N_MELS, N_FRAMES), dtype=jnp.float32)
    beats_emb = jax.random.normal(k_e, (B, T_EMB, EMB), dtype=jnp.float32)     # BEATs frame embeddings stand-in
    cls_token = jax.random.normal(k_c, (B, NTOK, CLS_DIM), dtype=jnp.float32)  # BEATs cls tokens stand-in
    params = init_params(k_p)

    fwd = jax.jit(lambda a, b, c: crnn_forward(a, b, c, params))
    strong, weak = fwd(x, beats_emb, cls_token)
    jax.block_until_ready((strong, weak))

    assert strong.shape == (B, NCLASS, N_FRAMES)
    assert weak.shape == (B, NCLASS)
    print("KERNEL_OK")
</pallas_src>

<mosaic_0001>
module attributes {stable_mosaic.version = 11 : i64} {
  func.func @crnn_kernel(%arg0: memref<256x9xf32, #tpu.memory_space<vmem>>, %arg1: memref<16x256xf32, #tpu.memory_space<vmem>>, %arg2: memref<16x64xf32, #tpu.memory_space<vmem>>, %arg3: memref<2x16xf32, #tpu.memory_space<vmem>>, %arg4: memref<2x768xf32, #tpu.memory_space<vmem>>, %arg5: memref<9x32xf32, #tpu.memory_space<vmem>>, %arg6: memref<1x32xf32, #tpu.memory_space<vmem>>, %arg7: memref<16x16xf32, #tpu.memory_space<vmem>>, %arg8: memref<64x16xf32, #tpu.memory_space<vmem>>, %arg9: memref<1x16xf32, #tpu.memory_space<vmem>>, %arg10: memref<16x192xf32, #tpu.memory_space<vmem>>, %arg11: memref<1x192xf32, #tpu.memory_space<vmem>>, %arg12: memref<64x192xf32, #tpu.memory_space<vmem>>, %arg13: memref<1x192xf32, #tpu.memory_space<vmem>>, %arg14: memref<64x192xf32, #tpu.memory_space<vmem>>, %arg15: memref<1x192xf32, #tpu.memory_space<vmem>>, %arg16: memref<64x192xf32, #tpu.memory_space<vmem>>, %arg17: memref<1x192xf32, #tpu.memory_space<vmem>>, %arg18: memref<64x20xf32, #tpu.memory_space<vmem>>, %arg19: memref<1x20xf32, #tpu.memory_space<vmem>>, %arg20: memref<768x10xf32, #tpu.memory_space<vmem>>, %arg21: memref<1x10xf32, #tpu.memory_space<vmem>>, %arg22: memref<16x10xf32, #tpu.memory_space<vmem>>, %arg23: memref<2x10xf32, #tpu.memory_space<vmem>>) attributes {dimension_semantics = [], scalar_prefetch = 0 : i64, scratch_operands = 0 : i64, tpu.core_type = #tpu.core_type<tc>} {
    %c0 = arith.constant 0 : index
    %c0_0 = arith.constant 0 : index
    %0 = vector.load %arg0[%c0, %c0_0] : memref<256x9xf32, #tpu.memory_space<vmem>>, vector<256x9xf32>
    %c0_1 = arith.constant 0 : index
    %c0_2 = arith.constant 0 : index
    %1 = vector.load %arg5[%c0_1, %c0_2] : memref<9x32xf32, #tpu.memory_space<vmem>>, vector<9x32xf32>
    %cst = arith.constant dense<0.000000e+00> : vector<256x32xf32>
    %2 = tpu.matmul %0, %1, %cst {dimension_numbers = #tpu.dot_dimension_numbers<[1], [0], [0], [1], [0, 0, 1, 1], [], []>} : vector<256x9xf32>, vector<9x32xf32>, vector<256x32xf32> -> vector<256x32xf32>
    %c0_3 = arith.constant 0 : index
    %c0_4 = arith.constant 0 : index
    %3 = vector.load %arg6[%c0_3, %c0_4] : memref<1x32xf32, #tpu.memory_space<vmem>>, vector<1x32xf32>
    %4 = vector.broadcast %3 : vector<1x32xf32> to vector<256x32xf32>
    %5 = arith.addf %2, %4 : vector<256x32xf32>
    %6 = vector.extract_strided_slice %5 {offsets = [0, 0], sizes = [256, 16], strides = [1, 1]} : vector<256x32xf32> to vector<256x16xf32>
    %7 = vector.extract_strided_slice %5 {offsets = [0, 16], sizes = [256, 16], strides = [1, 1]} : vector<256x32xf32> to vector<256x16xf32>
    %8 = arith.negf %7 : vector<256x16xf32>
    %9 = math.exp %8 : vector<256x16xf32>
    %cst_5 = arith.constant 1.000000e+00 : f32
    %10 = vector.broadcast %cst_5 : f32 to vector<256x16xf32>
    %11 = arith.addf %10, %9 : vector<256x16xf32>
    %12 = arith.divf %10, %11 : vector<256x16xf32>
    %13 = arith.mulf %6, %12 : vector<256x16xf32>
    %c0_6 = arith.constant 0 : index
    %c0_7 = arith.constant 0 : index
    %14 = vector.load %arg1[%c0_6, %c0_7] : memref<16x256xf32, #tpu.memory_space<vmem>>, vector<16x256xf32>
    %cst_8 = arith.constant dense<0.000000e+00> : vector<16x16xf32>
    %15 = tpu.matmul %14, %13, %cst_8 {dimension_numbers = #tpu.dot_dimension_numbers<[1], [0], [0], [1], [0, 0, 1, 1], [], []>} : vector<16x256xf32>, vector<256x16xf32>, vector<16x16xf32> -> vector<16x16xf32>
    %c0_9 = arith.constant 0 : index
    %c0_10 = arith.constant 0 : index
    %16 = vector.load %arg7[%c0_9, %c0_10] : memref<16x16xf32, #tpu.memory_space<vmem>>, vector<16x16xf32>
    %cst_11 = arith.constant dense<0.000000e+00> : vector<16x16xf32>
    %17 = tpu.matmul %15, %16, %cst_11 {dimension_numbers = #tpu.dot_dimension_numbers<[1], [0], [0], [1], [0, 0, 1, 1], [], []>} : vector<16x16xf32>, vector<16x16xf32>, vector<16x16xf32> -> vector<16x16xf32>
    %c0_12 = arith.constant 0 : index
    %c0_13 = arith.constant 0 : index
    %18 = vector.load %arg2[%c0_12, %c0_13] : memref<16x64xf32, #tpu.memory_space<vmem>>, vector<16x64xf32>
    %c0_14 = arith.constant 0 : index
    %c0_15 = arith.constant 0 : index
    %19 = vector.load %arg8[%c0_14, %c0_15] : memref<64x16xf32, #tpu.memory_space<vmem>>, vector<64x16xf32>
    %cst_16 = arith.constant dense<0.000000e+00> : vector<16x16xf32>
    %20 = tpu.matmul %18, %19, %cst_16 {dimension_numbers = #tpu.dot_dimension_numbers<[1], [0], [0], [1], [0, 0, 1, 1], [], []>} : vector<16x64xf32>, vector<64x16xf32>, vector<16x16xf32> -> vector<16x16xf32>
    %21 = arith.addf %17, %20 : vector<16x16xf32>
    %c0_17 = arith.constant 0 : index
    %c0_18 = arith.constant 0 : index
    %22 = vector.load %arg9[%c0_17, %c0_18] : memref<1x16xf32, #tpu.memory_space<vmem>>, vector<1x16xf32>
    %23 = vector.broadcast %22 : vector<1x16xf32> to vector<16x16xf32>
    %24 = arith.addf %21, %23 : vector<16x16xf32>
    %c0_19 = arith.constant 0 : index
    %c0_20 = arith.constant 0 : index
    %25 = vector.load %arg10[%c0_19, %c0_20] : memref<16x192xf32, #tpu.memory_space<vmem>>, vector<16x192xf32>
    %c0_21 = arith.constant 0 : index
    %c0_22 = arith.constant 0 : index
    %26 = vector.load %arg11[%c0_21, %c0_22] : memref<1x192xf32, #tpu.memory_space<vmem>>, vector<1x192xf32>
    %c0_23 = arith.constant 0 : index
    %c0_24 = arith.constant 0 : index
    %27 = vector.load %arg12[%c0_23, %c0_24] : memref<64x192xf32, #tpu.memory_space<vmem>>, vector<64x192xf32>
    %c0_25 = arith.constant 0 : index
    %c0_26 = arith.constant 0 : index
    %28 = vector.load %arg13[%c0_25, %c0_26] : memref<1x192xf32, #tpu.memory_space<vmem>>, vector<1x192xf32>
    %cst_27 = arith.constant dense<0.000000e+00> : vector<16x192xf32>
    %29 = tpu.matmul %24, %25, %cst_27 {dimension_numbers = #tpu.dot_dimension_numbers<[1], [0], [0], [1], [0, 0, 1, 1], [], []>} : vector<16x16xf32>, vector<16x192xf32>, vector<16x192xf32> -> vector<16x192xf32>
    %30 = vector.broadcast %26 : vector<1x192xf32> to vector<16x192xf32>
    %31 = arith.addf %29, %30 : vector<16x192xf32>
    %32 = vector.extract_strided_slice %31 {offsets = [0, 0], sizes = [16, 96], strides = [1, 1]} : vector<16x192xf32> to vector<16x96xf32>
    %33 = vector.extract_strided_slice %31 {offsets = [0, 96], sizes = [16, 96], strides = [1, 1]} : vector<16x192xf32> to vector<16x96xf32>
    %34 = vector.extract_strided_slice %33 {offsets = [14, 0], sizes = [2, 96], strides = [1, 1]} : vector<16x96xf32> to vector<2x96xf32>
    %35 = vector.extract_strided_slice %33 {offsets = [12, 0], sizes = [2, 96], strides = [1, 1]} : vector<16x96xf32> to vector<2x96xf32>
    %36 = vector.extract_strided_slice %33 {offsets = [10, 0], sizes = [2, 96], strides = [1, 1]} : vector<16x96xf32> to vector<2x96xf32>
    %37 = vector.extract_strided_slice %33 {offsets = [8, 0], sizes = [2, 96], strides = [1, 1]} : vector<16x96xf32> to vector<2x96xf32>
    %38 = vector.extract_strided_slice %33 {offsets = [6, 0], sizes = [2, 96], strides = [1, 1]} : vector<16x96xf32> to vector<2x96xf32>
    %39 = vector.extract_strided_slice %33 {offsets = [4, 0], sizes = [2, 96], strides = [1, 1]} : vector<16x96xf32> to vector<2x96xf32>
    %40 = vector.extract_strided_slice %33 {offsets = [2, 0], sizes = [2, 96], strides = [1, 1]} : vector<16x96xf32> to vector<2x96xf32>
    %41 = vector.extract_strided_slice %33 {offsets = [0, 0], sizes = [2, 96], strides = [1, 1]} : vector<16x96xf32> to vector<2x96xf32>
    %42 = tpu.concatenate %34, %35, %36, %37, %38, %39, %40, %41 in 0 : vector<2x96xf32>, vector<2x96xf32>, vector<2x96xf32>, vector<2x96xf32>, vector<2x96xf32>, vector<2x96xf32>, vector<2x96xf32>, vector<2x96xf32> -> vector<16x96xf32>
    %43 = vector.extract_strided_slice %32 {offsets = [0, 0], sizes = [16, 32], strides = [1, 1]} : vector<16x96xf32> to vector<16x32xf32>
    %44 = vector.extract_strided_slice %42 {offsets = [0, 0], sizes = [16, 32], strides = [1, 1]} : vector<16x96xf32> to vector<16x32xf32>
    %45 = vector.extract_strided_slice %32 {offsets = [0, 32], sizes = [16, 32], strides = [1, 1]} : vector<16x96xf32> to vector<16x32xf32>
    %46 = vector.extract_strided_slice %42 {offsets = [0, 32], sizes = [16, 32], strides = [1, 1]} : vector<16x96xf32> to vector<16x32xf32>
    %47 = vector.extract_strided_slice %32 {offsets = [0, 64], sizes = [16, 32], strides = [1, 1]} : vector<16x96xf32> to vector<16x32xf32>
    %48 = vector.extract_strided_slice %42 {offsets = [0, 64], sizes = [16, 32], strides = [1, 1]} : vector<16x96xf32> to vector<16x32xf32>
    %49 = tpu.concatenate %43, %44, %45, %46, %47, %48 in 1 : vector<16x32xf32>, vector<16x32xf32>, vector<16x32xf32>, vector<16x32xf32>, vector<16x32xf32>, vector<16x32xf32> -> vector<16x192xf32>
    %cst_28 = arith.constant 0.000000e+00 : f32
    %50 = vector.broadcast %cst_28 : f32 to vector<2x64xf32>
    %51 = vector.extract_strided_slice %49 {offsets = [0, 0], sizes = [2, 192], strides = [1, 1]} : vector<16x192xf32> to vector<2x192xf32>
    %cst_29 = arith.constant dense<0.000000e+00> : vector<2x192xf32>
    %52 = tpu.matmul %50, %27, %cst_29 {dimension_numbers = #tpu.dot_dimension_numbers<[1], [0], [0], [1], [0, 0, 1, 1], [], []>} : vector<2x64xf32>, vector<64x192xf32>, vector<2x192xf32> -> vector<2x192xf32>
    %53 = vector.broadcast %28 : vector<1x192xf32> to vector<2x192xf32>
    %54 = arith.addf %52, %53 : vector<2x192xf32>
    %55 = vector.extract_strided_slice %51 {offsets = [0, 0], sizes = [2, 128], strides = [1, 1]} : vector<2x192xf32> to vector<2x128xf32>
    %56 = vector.extract_strided_slice %54 {offsets = [0, 0], sizes = [2, 128], strides = [1, 1]} : vector<2x192xf32> to vector<2x128xf32>
    %57 = arith.addf %55, %56 : vector<2x128xf32>
    %58 = arith.negf %57 : vector<2x128xf32>
    %59 = math.exp %58 : vector<2x128xf32>
    %cst_30 = arith.constant 1.000000e+00 : f32
    %60 = vector.broadcast %cst_30 : f32 to vector<2x128xf32>
    %61 = arith.addf %60, %59 : vector<2x128xf32>
    %62 = arith.divf %60, %61 : vector<2x128xf32>
    %63 = vector.extract_strided_slice %62 {offsets = [0, 0], sizes = [2, 64], strides = [1, 1]} : vector<2x128xf32> to vector<2x64xf32>
    %64 = vector.extract_strided_slice %62 {offsets = [0, 64], sizes = [2, 64], strides = [1, 1]} : vector<2x128xf32> to vector<2x64xf32>
    %65 = vector.extract_strided_slice %51 {offsets = [0, 128], sizes = [2, 64], strides = [1, 1]} : vector<2x192xf32> to vector<2x64xf32>
    %66 = vector.extract_strided_slice %54 {offsets = [0, 128], sizes = [2, 64], strides = [1, 1]} : vector<2x192xf32> to vector<2x64xf32>
    %67 = arith.mulf %63, %66 : vector<2x64xf32>
    %68 = arith.addf %65, %67 : vector<2x64xf32>
    %69 = math.tanh %68 : vector<2x64xf32>
    %cst_31 = arith.constant 1.000000e+00 : f32
    %70 = vector.broadcast %cst_31 : f32 to vector<2x64xf32>
    %71 = arith.subf %70, %64 : vector<2x64xf32>
    %72 = arith.mulf %71, %69 : vector<2x64xf32>
    %73 = arith.mulf %64, %50 : vector<2x64xf32>
    %74 = arith.addf %72, %73 : vector<2x64xf32>
    %75 = vector.extract_strided_slice %74 {offsets = [0, 0], sizes = [2, 32], strides = [1, 1]} : vector<2x64xf32> to vector<2x32xf32>
    %76 = vector.extract_strided_slice %74 {offsets = [0, 32], sizes = [2, 32], strides = [1, 1]} : vector<2x64xf32> to vector<2x32xf32>
    %77 = vector.extract_strided_slice %49 {offsets = [2, 0], sizes = [2, 192], strides = [1, 1]} : vector<16x192xf32> to vector<2x192xf32>
    %cst_32 = arith.constant dense<0.000000e+00> : vector<2x192xf32>
    %78 = tpu.matmul %74, %27, %cst_32 {dimension_numbers = #tpu.dot_dimension_numbers<[1], [0], [0], [1], [0, 0, 1, 1], [], []>} : vector<2x64xf32>, vector<64x192xf32>, vector<2x192xf32> -> vector<2x192xf32>
    %79 = vector.broadcast %28 : vector<1x192xf32> to vector<2x192xf32>
    %80 = arith.addf %78, %79 : vector<2x192xf32>
    %81 = vector.extract_strided_slice %77 {offsets = [0, 0], sizes = [2, 128], strides = [1, 1]} : vector<2x192xf32> to vector<2x128xf32>
    %82 = vector.extract_strided_slice %80 {offsets = [0, 0], sizes = [2, 128], strides = [1, 1]} : vector<2x192xf32> to vector<2x128xf32>
    %83 = arith.addf %81, %82 : vector<2x128xf32>
    %84 = arith.negf %83 : vector<2x128xf32>
    %85 = math.exp %84 : vector<2x128xf32>
    %cst_33 = arith.constant 1.000000e+00 : f32
    %86 = vector.broadcast %cst_33 : f32 to vector<2x128xf32>
    %87 = arith.addf %86, %85 : vector<2x128xf32>
    %88 = arith.divf %86, %87 : vector<2x128xf32>
    %89 = vector.extract_strided_slice %88 {offsets = [0, 0], sizes = [2, 64], strides = [1, 1]} : vector<2x128xf32> to vector<2x64xf32>
    %90 = vector.extract_strided_slice %88 {offsets = [0, 64], sizes = [2, 64], strides = [1, 1]} : vector<2x128xf32> to vector<2x64xf32>
    %91 = vector.extract_strided_slice %77 {offsets = [0, 128], sizes = [2, 64], strides = [1, 1]} : vector<2x192xf32> to vector<2x64xf32>
    %92 = vector.extract_strided_slice %80 {offsets = [0, 128], sizes = [2, 64], strides = [1, 1]} : vector<2x192xf32> to vector<2x64xf32>
    %93 = arith.mulf %89, %92 : vector<2x64xf32>
    %94 = arith.addf %91, %93 : vector<2x64xf32>
    %95 = math.tanh %94 : vector<2x64xf32>
    %cst_34 = arith.constant 1.000000e+00 : f32
    %96 = vector.broadcast %cst_34 : f32 to vector<2x64xf32>
    %97 = arith.subf %96, %90 : vector<2x64xf32>
    %98 = arith.mulf %97, %95 : vector<2x64xf32>
    %99 = arith.mulf %90, %74 : vector<2x64xf32>
    %100 = arith.addf %98, %99 : vector<2x64xf32>
    %101 = vector.extract_strided_slice %100 {offsets = [0, 0], sizes = [2, 32], strides = [1, 1]} : vector<2x64xf32> to vector<2x32xf32>
    %102 = vector.extract_strided_slice %100 {offsets = [0, 32], sizes = [2, 32], strides = [1, 1]} : vector<2x64xf32> to vector<2x32xf32>
    %103 = vector.extract_strided_slice %49 {offsets = [4, 0], sizes = [2, 192], strides = [1, 1]} : vector<16x192xf32> to vector<2x192xf32>
    %cst_35 = arith.constant dense<0.000000e+00> : vector<2x192xf32>
    %104 = tpu.matmul %100, %27, %cst_35 {dimension_numbers = #tpu.dot_dimension_numbers<[1], [0], [0], [1], [0, 0, 1, 1], [], []>} : vector<2x64xf32>, vector<64x192xf32>, vector<2x192xf32> -> vector<2x192xf32>
    %105 = vector.broadcast %28 : vector<1x192xf32> to vector<2x192xf32>
    %106 = arith.addf %104, %105 : vector<2x192xf32>
    %107 = vector.extract_strided_slice %103 {offsets = [0, 0], sizes = [2, 128], strides = [1, 1]} : vector<2x192xf32> to vector<2x128xf32>
    %108 = vector.extract_strided_slice %106 {offsets = [0, 0], sizes = [2, 128], strides = [1, 1]} : vector<2x192xf32> to vector<2x128xf32>
    %109 = arith.addf %107, %108 : vector<2x128xf32>
    %110 = arith.negf %109 : vector<2x128xf32>
    %111 = math.exp %110 : vector<2x128xf32>
    %cst_36 = arith.constant 1.000000e+00 : f32
    %112 = vector.broadcast %cst_36 : f32 to vector<2x128xf32>
    %113 = arith.addf %112, %111 : vector<2x128xf32>
    %114 = arith.divf %112, %113 : vector<2x128xf32>
    %115 = vector.extract_strided_slice %114 {offsets = [0, 0], sizes = [2, 64], strides = [1, 1]} : vector<2x128xf32> to vector<2x64xf32>
    %116 = vector.extract_strided_slice %114 {offsets = [0, 64], sizes = [2, 64], strides = [1, 1]} : vector<2x128xf32> to vector<2x64xf32>
    %117 = vector.extract_strided_slice %103 {offsets = [0, 128], sizes = [2, 64], strides = [1, 1]} : vector<2x192xf32> to vector<2x64xf32>
    %118 = vector.extract_strided_slice %106 {offsets = [0, 128], sizes = [2, 64], strides = [1, 1]} : vector<2x192xf32> to vector<2x64xf32>
    %119 = arith.mulf %115, %118 : vector<2x64xf32>
    %120 = arith.addf %117, %119 : vector<2x64xf32>
    %121 = math.tanh %120 : vector<2x64xf32>
    %cst_37 = arith.constant 1.000000e+00 : f32
    %122 = vector.broadcast %cst_37 : f32 to vector<2x64xf32>
    %123 = arith.subf %122, %116 : vector<2x64xf32>
    %124 = arith.mulf %123, %121 : vector<2x64xf32>
    %125 = arith.mulf %116, %100 : vector<2x64xf32>
    %126 = arith.addf %124, %125 : vector<2x64xf32>
    %127 = vector.extract_strided_slice %126 {offsets = [0, 0], sizes = [2, 32], strides = [1, 1]} : vector<2x64xf32> to vector<2x32xf32>
    %128 = vector.extract_strided_slice %126 {offsets = [0, 32], sizes = [2, 32], strides = [1, 1]} : vector<2x64xf32> to vector<2x32xf32>
    %129 = vector.extract_strided_slice %49 {offsets = [6, 0], sizes = [2, 192], strides = [1, 1]} : vector<16x192xf32> to vector<2x192xf32>
    %cst_38 = arith.constant dense<0.000000e+00> : vector<2x192xf32>
    %130 = tpu.matmul %126, %27, %cst_38 {dimension_numbers = #tpu.dot_dimension_numbers<[1], [0], [0], [1], [0, 0, 1, 1], [], []>} : vector<2x64xf32>, vector<64x192xf32>, vector<2x192xf32> -> vector<2x192xf32>
    %131 = vector.broadcast %28 : vector<1x192xf32> to vector<2x192xf32>
    %132 = arith.addf %130, %131 : vector<2x192xf32>
    %133 = vector.extract_strided_slice %129 {offsets = [0, 0], sizes = [2, 128], strides = [1, 1]} : vector<2x192xf32> to vector<2x128xf32>
    %134 = vector.extract_strided_slice %132 {offsets = [0, 0], sizes = [2, 128], strides = [1, 1]} : vector<2x192xf32> to vector<2x128xf32>
    %135 = arith.addf %133, %134 : vector<2x128xf32>
    %136 = arith.negf %135 : vector<2x128xf32>
    %137 = math.exp %136 : vector<2x128xf32>
    %cst_39 = arith.constant 1.000000e+00 : f32
    %138 = vector.broadcast %cst_39 : f32 to vector<2x128xf32>
    %139 = arith.addf %138, %137 : vector<2x128xf32>
    %140 = arith.divf %138, %139 : vector<2x128xf32>
    %141 = vector.extract_strided_slice %140 {offsets = [0, 0], sizes = [2, 64], strides = [1, 1]} : vector<2x128xf32> to vector<2x64xf32>
    %142 = vector.extract_strided_slice %140 {offsets = [0, 64], sizes = [2, 64], strides = [1, 1]} : vector<2x128xf32> to vector<2x64xf32>
    %143 = vector.extract_strided_slice %129 {offsets = [0, 128], sizes = [2, 64], strides = [1, 1]} : vector<2x192xf32> to vector<2x64xf32>
    %144 = vector.extract_strided_slice %132 {offsets = [0, 128], sizes = [2, 64], strides = [1, 1]} : vector<2x192xf32> to vector<2x64xf32>
    %145 = arith.mulf %141, %144 : vector<2x64xf32>
    %146 = arith.addf %143, %145 : vector<2x64xf32>
    %147 = math.tanh %146 : vector<2x64xf32>
    %cst_40 = arith.constant 1.000000e+00 : f32
    %148 = vector.broadcast %cst_40 : f32 to vector<2x64xf32>
    %149 = arith.subf %148, %142 : vector<2x64xf32>
    %150 = arith.mulf %149, %147 : vector<2x64xf32>
    %151 = arith.mulf %142, %126 : vector<2x64xf32>
    %152 = arith.addf %150, %151 : vector<2x64xf32>
    %153 = vector.extract_strided_slice %152 {offsets = [0, 0], sizes = [2, 32], strides = [1, 1]} : vector<2x64xf32> to vector<2x32xf32>
    %154 = vector.extract_strided_slice %152 {offsets = [0, 32], sizes = [2, 32], strides = [1, 1]} : vector<2x64xf32> to vector<2x32xf32>
    %155 = vector.extract_strided_slice %49 {offsets = [8, 0], sizes = [2, 192], strides = [1, 1]} : vector<16x192xf32> to vector<2x192xf32>
    %cst_41 = arith.constant dense<0.000000e+00> : vector<2x192xf32>
    %156 = tpu.matmul %152, %27, %cst_41 {dimension_numbers = #tpu.dot_dimension_numbers<[1], [0], [0], [1], [0, 0, 1, 1], [], []>} : vector<2x64xf32>, vector<64x192xf32>, vector<2x192xf32> -> vector<2x192xf32>
    %157 = vector.broadcast %28 : vector<1x192xf32> to vector<2x192xf32>
    %158 = arith.addf %156, %157 : vector<2x192xf32>
    %159 = vector.extract_strided_slice %155 {offsets = [0, 0], sizes = [2, 128], strides = [1, 1]} : vector<2x192xf32> to vector<2x128xf32>
    %160 = vector.extract_strided_slice %158 {offsets = [0, 0], sizes = [2, 128], strides = [1, 1]} : vector<2x192xf32> to vector<2x128xf32>
    %161 = arith.addf %159, %160 : vector<2x128xf32>
    %162 = arith.negf %161 : vector<2x128xf32>
    %163 = math.exp %162 : vector<2x128xf32>
    %cst_42 = arith.constant 1.000000e+00 : f32
    %164 = vector.broadcast %cst_42 : f32 to vector<2x128xf32>
    %165 = arith.addf %164, %163 : vector<2x128xf32>
    %166 = arith.divf %164, %165 : vector<2x128xf32>
    %167 = vector.extract_strided_slice %166 {offsets = [0, 0], sizes = [2, 64], strides = [1, 1]} : vector<2x128xf32> to vector<2x64xf32>
    %168 = vector.extract_strided_slice %166 {offsets = [0, 64], sizes = [2, 64], strides = [1, 1]} : vector<2x128xf32> to vector<2x64xf32>
    %169 = vector.extract_strided_slice %155 {offsets = [0, 128], sizes = [2, 64], strides = [1, 1]} : vector<2x192xf32> to vector<2x64xf32>
    %170 = vector.extract_strided_slice %158 {offsets = [0, 128], sizes = [2, 64], strides = [1, 1]} : vector<2x192xf32> to vector<2x64xf32>
    %171 = arith.mulf %167, %170 : vector<2x64xf32>
    %172 = arith.addf %169, %171 : vector<2x64xf32>
    %173 = math.tanh %172 : vector<2x64xf32>
    %cst_43 = arith.constant 1.000000e+00 : f32
    %174 = vector.broadcast %cst_43 : f32 to vector<2x64xf32>
    %175 = arith.subf %174, %168 : vector<2x64xf32>
    %176 = arith.mulf %175, %173 : vector<2x64xf32>
    %177 = arith.mulf %168, %152 : vector<2x64xf32>
    %178 = arith.addf %176, %177 : vector<2x64xf32>
    %179 = vector.extract_strided_slice %178 {offsets = [0, 0], sizes = [2, 32], strides = [1, 1]} : vector<2x64xf32> to vector<2x32xf32>
    %180 = vector.extract_strided_slice %178 {offsets = [0, 32], sizes = [2, 32], strides = [1, 1]} : vector<2x64xf32> to vector<2x32xf32>
    %181 = vector.extract_strided_slice %49 {offsets = [10, 0], sizes = [2, 192], strides = [1, 1]} : vector<16x192xf32> to vector<2x192xf32>
    %cst_44 = arith.constant dense<0.000000e+00> : vector<2x192xf32>
    %182 = tpu.matmul %178, %27, %cst_44 {dimension_numbers = #tpu.dot_dimension_numbers<[1], [0], [0], [1], [0, 0, 1, 1], [], []>} : vector<2x64xf32>, vector<64x192xf32>, vector<2x192xf32> -> vector<2x192xf32>
    %183 = vector.broadcast %28 : vector<1x192xf32> to vector<2x192xf32>
    %184 = arith.addf %182, %183 : vector<2x192xf32>
    %185 = vector.extract_strided_slice %181 {offsets = [0, 0], sizes = [2, 128], strides = [1, 1]} : vector<2x192xf32> to vector<2x128xf32>
    %186 = vector.extract_strided_slice %184 {offsets = [0, 0], sizes = [2, 128], strides = [1, 1]} : vector<2x192xf32> to vector<2x128xf32>
    %187 = arith.addf %185, %186 : vector<2x128xf32>
    %188 = arith.negf %187 : vector<2x128xf32>
    %189 = math.exp %188 : vector<2x128xf32>
    %cst_45 = arith.constant 1.000000e+00 : f32
    %190 = vector.broadcast %cst_45 : f32 to vector<2x128xf32>
    %191 = arith.addf %190, %189 : vector<2x128xf32>
    %192 = arith.divf %190, %191 : vector<2x128xf32>
    %193 = vector.extract_strided_slice %192 {offsets = [0, 0], sizes = [2, 64], strides = [1, 1]} : vector<2x128xf32> to vector<2x64xf32>
    %194 = vector.extract_strided_slice %192 {offsets = [0, 64], sizes = [2, 64], strides = [1, 1]} : vector<2x128xf32> to vector<2x64xf32>
    %195 = vector.extract_strided_slice %181 {offsets = [0, 128], sizes = [2, 64], strides = [1, 1]} : vector<2x192xf32> to vector<2x64xf32>
    %196 = vector.extract_strided_slice %184 {offsets = [0, 128], sizes = [2, 64], strides = [1, 1]} : vector<2x192xf32> to vector<2x64xf32>
    %197 = arith.mulf %193, %196 : vector<2x64xf32>
    %198 = arith.addf %195, %197 : vector<2x64xf32>
    %199 = math.tanh %198 : vector<2x64xf32>
    %cst_46 = arith.constant 1.000000e+00 : f32
    %200 = vector.broadcast %cst_46 : f32 to vector<2x64xf32>
    %201 = arith.subf %200, %194 : vector<2x64xf32>
    %202 = arith.mulf %201, %199 : vector<2x64xf32>
    %203 = arith.mulf %194, %178 : vector<2x64xf32>
    %204 = arith.addf %202, %203 : vector<2x64xf32>
    %205 = vector.extract_strided_slice %204 {offsets = [0, 0], sizes = [2, 32], strides = [1, 1]} : vector<2x64xf32> to vector<2x32xf32>
    %206 = vector.extract_strided_slice %204 {offsets = [0, 32], sizes = [2, 32], strides = [1, 1]} : vector<2x64xf32> to vector<2x32xf32>
    %207 = vector.extract_strided_slice %49 {offsets = [12, 0], sizes = [2, 192], strides = [1, 1]} : vector<16x192xf32> to vector<2x192xf32>
    %cst_47 = arith.constant dense<0.000000e+00> : vector<2x192xf32>
    %208 = tpu.matmul %204, %27, %cst_47 {dimension_numbers = #tpu.dot_dimension_numbers<[1], [0], [0], [1], [0, 0, 1, 1], [], []>} : vector<2x64xf32>, vector<64x192xf32>, vector<2x192xf32> -> vector<2x192xf32>
    %209 = vector.broadcast %28 : vector<1x192xf32> to vector<2x192xf32>
    %210 = arith.addf %208, %209 : vector<2x192xf32>
    %211 = vector.extract_strided_slice %207 {offsets = [0, 0], sizes = [2, 128], strides = [1, 1]} : vector<2x192xf32> to vector<2x128xf32>
    %212 = vector.extract_strided_slice %210 {offsets = [0, 0], sizes = [2, 128], strides = [1, 1]} : vector<2x192xf32> to vector<2x128xf32>
    %213 = arith.addf %211, %212 : vector<2x128xf32>
    %214 = arith.negf %213 : vector<2x128xf32>
    %215 = math.exp %214 : vector<2x128xf32>
    %cst_48 = arith.constant 1.000000e+00 : f32
    %216 = vector.broadcast %cst_48 : f32 to vector<2x128xf32>
    %217 = arith.addf %216, %215 : vector<2x128xf32>
    %218 = arith.divf %216, %217 : vector<2x128xf32>
    %219 = vector.extract_strided_slice %218 {offsets = [0, 0], sizes = [2, 64], strides = [1, 1]} : vector<2x128xf32> to vector<2x64xf32>
    %220 = vector.extract_strided_slice %218 {offsets = [0, 64], sizes = [2, 64], strides = [1, 1]} : vector<2x128xf32> to vector<2x64xf32>
    %221 = vector.extract_strided_slice %207 {offsets = [0, 128], sizes = [2, 64], strides = [1, 1]} : vector<2x192xf32> to vector<2x64xf32>
    %222 = vector.extract_strided_slice %210 {offsets = [0, 128], sizes = [2, 64], strides = [1, 1]} : vector<2x192xf32> to vector<2x64xf32>
    %223 = arith.mulf %219, %222 : vector<2x64xf32>
    %224 = arith.addf %221, %223 : vector<2x64xf32>
    %225 = math.tanh %224 : vector<2x64xf32>
    %cst_49 = arith.constant 1.000000e+00 : f32
    %226 = vector.broadcast %cst_49 : f32 to vector<2x64xf32>
    %227 = arith.subf %226, %220 : vector<2x64xf32>
    %228 = arith.mulf %227, %225 : vector<2x64xf32>
    %229 = arith.mulf %220, %204 : vector<2x64xf32>
    %230 = arith.addf %228, %229 : vector<2x64xf32>
    %231 = vector.extract_strided_slice %230 {offsets = [0, 0], sizes = [2, 32], strides = [1, 1]} : vector<2x64xf32> to vector<2x32xf32>
    %232 = vector.extract_strided_slice %230 {offsets = [0, 32], sizes = [2, 32], strides = [1, 1]} : vector<2x64xf32> to vector<2x32xf32>
    %233 = vector.extract_strided_slice %49 {offsets = [14, 0], sizes = [2, 192], strides = [1, 1]} : vector<16x192xf32> to vector<2x192xf32>
    %cst_50 = arith.constant dense<0.000000e+00> : vector<2x192xf32>
    %234 = tpu.matmul %230, %27, %cst_50 {dimension_numbers = #tpu.dot_dimension_numbers<[1], [0], [0], [1], [0, 0, 1, 1], [], []>} : vector<2x64xf32>, vector<64x192xf32>, vector<2x192xf32> -> vector<2x192xf32>
    %235 = vector.broadcast %28 : vector<1x192xf32> to vector<2x192xf32>
    %236 = arith.addf %234, %235 : vector<2x192xf32>
    %237 = vector.extract_strided_slice %233 {offsets = [0, 0], sizes = [2, 128], strides = [1, 1]} : vector<2x192xf32> to vector<2x128xf32>
    %238 = vector.extract_strided_slice %236 {offsets = [0, 0], sizes = [2, 128], strides = [1, 1]} : vector<2x192xf32> to vector<2x128xf32>
    %239 = arith.addf %237, %238 : vector<2x128xf32>
    %240 = arith.negf %239 : vector<2x128xf32>
    %241 = math.exp %240 : vector<2x128xf32>
    %cst_51 = arith.constant 1.000000e+00 : f32
    %242 = vector.broadcast %cst_51 : f32 to vector<2x128xf32>
    %243 = arith.addf %242, %241 : vector<2x128xf32>
    %244 = arith.divf %242, %243 : vector<2x128xf32>
    %245 = vector.extract_strided_slice %244 {offsets = [0, 0], sizes = [2, 64], strides = [1, 1]} : vector<2x128xf32> to vector<2x64xf32>
    %246 = vector.extract_strided_slice %244 {offsets = [0, 64], sizes = [2, 64], strides = [1, 1]} : vector<2x128xf32> to vector<2x64xf32>
    %247 = vector.extract_strided_slice %233 {offsets = [0, 128], sizes = [2, 64], strides = [1, 1]} : vector<2x192xf32> to vector<2x64xf32>
    %248 = vector.extract_strided_slice %236 {offsets = [0, 128], sizes = [2, 64], strides = [1, 1]} : vector<2x192xf32> to vector<2x64xf32>
    %249 = arith.mulf %245, %248 : vector<2x64xf32>
    %250 = arith.addf %247, %249 : vector<2x64xf32>
    %251 = math.tanh %250 : vector<2x64xf32>
    %cst_52 = arith.constant 1.000000e+00 : f32
    %252 = vector.broadcast %cst_52 : f32 to vector<2x64xf32>
    %253 = arith.subf %252, %246 : vector<2x64xf32>
    %254 = arith.mulf %253, %251 : vector<2x64xf32>
    %255 = arith.mulf %246, %230 : vector<2x64xf32>
    %256 = arith.addf %254, %255 : vector<2x64xf32>
    %257 = vector.extract_strided_slice %256 {offsets = [0, 0], sizes = [2, 32], strides = [1, 1]} : vector<2x64xf32> to vector<2x32xf32>
    %258 = vector.extract_strided_slice %256 {offsets = [0, 32], sizes = [2, 32], strides = [1, 1]} : vector<2x64xf32> to vector<2x32xf32>
    %259 = tpu.concatenate %75, %101, %127, %153, %179, %205, %231, %257 in 0 : vector<2x32xf32>, vector<2x32xf32>, vector<2x32xf32>, vector<2x32xf32>, vector<2x32xf32>, vector<2x32xf32>, vector<2x32xf32>, vector<2x32xf32> -> vector<16x32xf32>
    %260 = tpu.concatenate %258, %232, %206, %180, %154, %128, %102, %76 in 0 : vector<2x32xf32>, vector<2x32xf32>, vector<2x32xf32>, vector<2x32xf32>, vector<2x32xf32>, vector<2x32xf32>, vector<2x32xf32>, vector<2x32xf32> -> vector<16x32xf32>
    %261 = tpu.concatenate %259, %260 in 1 : vector<16x32xf32>, vector<16x32xf32> -> vector<16x64xf32>
    %c0_53 = arith.constant 0 : index
    %c0_54 = arith.constant 0 : index
    %262 = vector.load %arg14[%c0_53, %c0_54] : memref<64x192xf32, #tpu.memory_space<vmem>>, vector<64x192xf32>
    %c0_55 = arith.constant 0 : index
    %c0_56 = arith.constant 0 : index
    %263 = vector.load %arg15[%c0_55, %c0_56] : memref<1x192xf32, #tpu.memory_space<vmem>>, vector<1x192xf32>
    %c0_57 = arith.constant 0 : index
    %c0_58 = arith.constant 0 : index
    %264 = vector.load %arg16[%c0_57, %c0_58] : memref<64x192xf32, #tpu.memory_space<vmem>>, vector<64x192xf32>
    %c0_59 = arith.constant 0 : index
    %c0_60 = arith.constant 0 : index
    %265 = vector.load %arg17[%c0_59, %c0_60] : memref<1x192xf32, #tpu.memory_space<vmem>>, vector<1x192xf32>
    %cst_61 = arith.constant dense<0.000000e+00> : vector<16x192xf32>
    %266 = tpu.matmul %261, %262, %cst_61 {dimension_numbers = #tpu.dot_dimension_numbers<[1], [0], [0], [1], [0, 0, 1, 1], [], []>} : vector<16x64xf32>, vector<64x192xf32>, vector<16x192xf32> -> vector<16x192xf32>
    %267 = vector.broadcast %263 : vector<1x192xf32> to vector<16x192xf32>
    %268 = arith.addf %266, %267 : vector<16x192xf32>
    %269 = vector.extract_strided_slice %268 {offsets = [0, 0], sizes = [16, 96], strides = [1, 1]} : vector<16x192xf32> to vector<16x96xf32>
    %270 = vector.extract_strided_slice %268 {offsets = [0, 96], sizes = [16, 96], strides = [1, 1]} : vector<16x192xf32> to vector<16x96xf32>
    %271 = vector.extract_strided_slice %270 {offsets = [14, 0], sizes = [2, 96], strides = [1, 1]} : vector<16x96xf32> to vector<2x96xf32>
    %272 = vector.extract_strided_slice %270 {offsets = [12, 0], sizes = [2, 96], strides = [1, 1]} : vector<16x96xf32> to vector<2x96xf32>
    %273 = vector.extract_strided_slice %270 {offsets = [10, 0], sizes = [2, 96], strides = [1, 1]} : vector<16x96xf32> to vector<2x96xf32>
    %274 = vector.extract_strided_slice %270 {offsets = [8, 0], sizes = [2, 96], strides = [1, 1]} : vector<16x96xf32> to vector<2x96xf32>
    %275 = vector.extract_strided_slice %270 {offsets = [6, 0], sizes = [2, 96], strides = [1, 1]} : vector<16x96xf32> to vector<2x96xf32>
    %276 = vector.extract_strided_slice %270 {offsets = [4, 0], sizes = [2, 96], strides = [1, 1]} : vector<16x96xf32> to vector<2x96xf32>
    %277 = vector.extract_strided_slice %270 {offsets = [2, 0], sizes = [2, 96], strides = [1, 1]} : vector<16x96xf32> to vector<2x96xf32>
    %278 = vector.extract_strided_slice %270 {offsets = [0, 0], sizes = [2, 96], strides = [1, 1]} : vector<16x96xf32> to vector<2x96xf32>
    %279 = tpu.concatenate %271, %272, %273, %274, %275, %276, %277, %278 in 0 : vector<2x96xf32>, vector<2x96xf32>, vector<2x96xf32>, vector<2x96xf32>, vector<2x96xf32>, vector<2x96xf32>, vector<2x96xf32>, vector<2x96xf32> -> vector<16x96xf32>
    %280 = vector.extract_strided_slice %269 {offsets = [0, 0], sizes = [16, 32], strides = [1, 1]} : vector<16x96xf32> to vector<16x32xf32>
    %281 = vector.extract_strided_slice %279 {offsets = [0, 0], sizes = [16, 32], strides = [1, 1]} : vector<16x96xf32> to vector<16x32xf32>
    %282 = vector.extract_strided_slice %269 {offsets = [0, 32], sizes = [16, 32], strides = [1, 1]} : vector<16x96xf32> to vector<16x32xf32>
    %283 = vector.extract_strided_slice %279 {offsets = [0, 32], sizes = [16, 32], strides = [1, 1]} : vector<16x96xf32> to vector<16x32xf32>
    %284 = vector.extract_strided_slice %269 {offsets = [0, 64], sizes = [16, 32], strides = [1, 1]} : vector<16x96xf32> to vector<16x32xf32>
    %285 = vector.extract_strided_slice %279 {offsets = [0, 64], sizes = [16, 32], strides = [1, 1]} : vector<16x96xf32> to vector<16x32xf32>
    %286 = tpu.concatenate %280, %281, %282, %283, %284, %285 in 1 : vector<16x32xf32>, vector<16x32xf32>, vector<16x32xf32>, vector<16x32xf32>, vector<16x32xf32>, vector<16x32xf32> -> vector<16x192xf32>
    %cst_62 = arith.constant 0.000000e+00 : f32
    %287 = vector.broadcast %cst_62 : f32 to vector<2x64xf32>
    %288 = vector.extract_strided_slice %286 {offsets = [0, 0], sizes = [2, 192], strides = [1, 1]} : vector<16x192xf32> to vector<2x192xf32>
    %cst_63 = arith.constant dense<0.000000e+00> : vector<2x192xf32>
    %289 = tpu.matmul %287, %264, %cst_63 {dimension_numbers = #tpu.dot_dimension_numbers<[1], [0], [0], [1], [0, 0, 1, 1], [], []>} : vector<2x64xf32>, vector<64x192xf32>, vector<2x192xf32> -> vector<2x192xf32>
    %290 = vector.broadcast %265 : vector<1x192xf32> to vector<2x192xf32>
    %291 = arith.addf %289, %290 : vector<2x192xf32>
    %292 = vector.extract_strided_slice %288 {offsets = [0, 0], sizes = [2, 128], strides = [1, 1]} : vector<2x192xf32> to vector<2x128xf32>
    %293 = vector.extract_strided_slice %291 {offsets = [0, 0], sizes = [2, 128], strides = [1, 1]} : vector<2x192xf32> to vector<2x128xf32>
    %294 = arith.addf %292, %293 : vector<2x128xf32>
    %295 = arith.negf %294 : vector<2x128xf32>
    %296 = math.exp %295 : vector<2x128xf32>
    %cst_64 = arith.constant 1.000000e+00 : f32
    %297 = vector.broadcast %cst_64 : f32 to vector<2x128xf32>
    %298 = arith.addf %297, %296 : vector<2x128xf32>
    %299 = arith.divf %297, %298 : vector<2x128xf32>
    %300 = vector.extract_strided_slice %299 {offsets = [0, 0], sizes = [2, 64], strides = [1, 1]} : vector<2x128xf32> to vector<2x64xf32>
    %301 = vector.extract_strided_slice %299 {offsets = [0, 64], sizes = [2, 64], strides = [1, 1]} : vector<2x128xf32> to vector<2x64xf32>
    %302 = vector.extract_strided_slice %288 {offsets = [0, 128], sizes = [2, 64], strides = [1, 1]} : vector<2x192xf32> to vector<2x64xf32>
    %303 = vector.extract_strided_slice %291 {offsets = [0, 128], sizes = [2, 64], strides = [1, 1]} : vector<2x192xf32> to vector<2x64xf32>
    %304 = arith.mulf %300, %303 : vector<2x64xf32>
    %305 = arith.addf %302, %304 : vector<2x64xf32>
    %306 = math.tanh %305 : vector<2x64xf32>
    %cst_65 = arith.constant 1.000000e+00 : f32
    %307 = vector.broadcast %cst_65 : f32 to vector<2x64xf32>
    %308 = arith.subf %307, %301 : vector<2x64xf32>
    %309 = arith.mulf %308, %306 : vector<2x64xf32>
    %310 = arith.mulf %301, %287 : vector<2x64xf32>
    %311 = arith.addf %309, %310 : vector<2x64xf32>
    %312 = vector.extract_strided_slice %311 {offsets = [0, 0], sizes = [2, 32], strides = [1, 1]} : vector<2x64xf32> to vector<2x32xf32>
    %313 = vector.extract_strided_slice %311 {offsets = [0, 32], sizes = [2, 32], strides = [1, 1]} : vector<2x64xf32> to vector<2x32xf32>
    %314 = vector.extract_strided_slice %286 {offsets = [2, 0], sizes = [2, 192], strides = [1, 1]} : vector<16x192xf32> to vector<2x192xf32>
    %cst_66 = arith.constant dense<0.000000e+00> : vector<2x192xf32>
    %315 = tpu.matmul %311, %264, %cst_66 {dimension_numbers = #tpu.dot_dimension_numbers<[1], [0], [0], [1], [0, 0, 1, 1], [], []>} : vector<2x64xf32>, vector<64x192xf32>, vector<2x192xf32> -> vector<2x192xf32>
    %316 = vector.broadcast %265 : vector<1x192xf32> to vector<2x192xf32>
    %317 = arith.addf %315, %316 : vector<2x192xf32>
    %318 = vector.extract_strided_slice %314 {offsets = [0, 0], sizes = [2, 128], strides = [1, 1]} : vector<2x192xf32> to vector<2x128xf32>
    %319 = vector.extract_strided_slice %317 {offsets = [0, 0], sizes = [2, 128], strides = [1, 1]} : vector<2x192xf32> to vector<2x128xf32>
    %320 = arith.addf %318, %319 : vector<2x128xf32>
    %321 = arith.negf %320 : vector<2x128xf32>
    %322 = math.exp %321 : vector<2x128xf32>
    %cst_67 = arith.constant 1.000000e+00 : f32
    %323 = vector.broadcast %cst_67 : f32 to vector<2x128xf32>
    %324 = arith.addf %323, %322 : vector<2x128xf32>
    %325 = arith.divf %323, %324 : vector<2x128xf32>
    %326 = vector.extract_strided_slice %325 {offsets = [0, 0], sizes = [2, 64], strides = [1, 1]} : vector<2x128xf32> to vector<2x64xf32>
    %327 = vector.extract_strided_slice %325 {offsets = [0, 64], sizes = [2, 64], strides = [1, 1]} : vector<2x128xf32> to vector<2x64xf32>
    %328 = vector.extract_strided_slice %314 {offsets = [0, 128], sizes = [2, 64], strides = [1, 1]} : vector<2x192xf32> to vector<2x64xf32>
    %329 = vector.extract_strided_slice %317 {offsets = [0, 128], sizes = [2, 64], strides = [1, 1]} : vector<2x192xf32> to vector<2x64xf32>
    %330 = arith.mulf %326, %329 : vector<2x64xf32>
    %331 = arith.addf %328, %330 : vector<2x64xf32>
    %332 = math.tanh %331 : vector<2x64xf32>
    %cst_68 = arith.constant 1.000000e+00 : f32
    %333 = vector.broadcast %cst_68 : f32 to vector<2x64xf32>
    %334 = arith.subf %333, %327 : vector<2x64xf32>
    %335 = arith.mulf %334, %332 : vector<2x64xf32>
    %336 = arith.mulf %327, %311 : vector<2x64xf32>
    %337 = arith.addf %335, %336 : vector<2x64xf32>
    %338 = vector.extract_strided_slice %337 {offsets = [0, 0], sizes = [2, 32], strides = [1, 1]} : vector<2x64xf32> to vector<2x32xf32>
    %339 = vector.extract_strided_slice %337 {offsets = [0, 32], sizes = [2, 32], strides = [1, 1]} : vector<2x64xf32> to vector<2x32xf32>
    %340 = vector.extract_strided_slice %286 {offsets = [4, 0], sizes = [2, 192], strides = [1, 1]} : vector<16x192xf32> to vector<2x192xf32>
    %cst_69 = arith.constant dense<0.000000e+00> : vector<2x192xf32>
    %341 = tpu.matmul %337, %264, %cst_69 {dimension_numbers = #tpu.dot_dimension_numbers<[1], [0], [0], [1], [0, 0, 1, 1], [], []>} : vector<2x64xf32>, vector<64x192xf32>, vector<2x192xf32> -> vector<2x192xf32>
    %342 = vector.broadcast %265 : vector<1x192xf32> to vector<2x192xf32>
    %343 = arith.addf %341, %342 : vector<2x192xf32>
    %344 = vector.extract_strided_slice %340 {offsets = [0, 0], sizes = [2, 128], strides = [1, 1]} : vector<2x192xf32> to vector<2x128xf32>
    %345 = vector.extract_strided_slice %343 {offsets = [0, 0], sizes = [2, 128], strides = [1, 1]} : vector<2x192xf32> to vector<2x128xf32>
    %346 = arith.addf %344, %345 : vector<2x128xf32>
    %347 = arith.negf %346 : vector<2x128xf32>
    %348 = math.exp %347 : vector<2x128xf32>
    %cst_70 = arith.constant 1.000000e+00 : f32
    %349 = vector.broadcast %cst_70 : f32 to vector<2x128xf32>
    %350 = arith.addf %349, %348 : vector<2x128xf32>
    %351 = arith.divf %349, %350 : vector<2x128xf32>
    %352 = vector.extract_strided_slice %351 {offsets = [0, 0], sizes = [2, 64], strides = [1, 1]} : vector<2x128xf32> to vector<2x64xf32>
    %353 = vector.extract_strided_slice %351 {offsets = [0, 64], sizes = [2, 64], strides = [1, 1]} : vector<2x128xf32> to vector<2x64xf32>
    %354 = vector.extract_strided_slice %340 {offsets = [0, 128], sizes = [2, 64], strides = [1, 1]} : vector<2x192xf32> to vector<2x64xf32>
    %355 = vector.extract_strided_slice %343 {offsets = [0, 128], sizes = [2, 64], strides = [1, 1]} : vector<2x192xf32> to vector<2x64xf32>
    %356 = arith.mulf %352, %355 : vector<2x64xf32>
    %357 = arith.addf %354, %356 : vector<2x64xf32>
    %358 = math.tanh %357 : vector<2x64xf32>
    %cst_71 = arith.constant 1.000000e+00 : f32
    %359 = vector.broadcast %cst_71 : f32 to vector<2x64xf32>
    %360 = arith.subf %359, %353 : vector<2x64xf32>
    %361 = arith.mulf %360, %358 : vector<2x64xf32>
    %362 = arith.mulf %353, %337 : vector<2x64xf32>
    %363 = arith.addf %361, %362 : vector<2x64xf32>
    %364 = vector.extract_strided_slice %363 {offsets = [0, 0], sizes = [2, 32], strides = [1, 1]} : vector<2x64xf32> to vector<2x32xf32>
    %365 = vector.extract_strided_slice %363 {offsets = [0, 32], sizes = [2, 32], strides = [1, 1]} : vector<2x64xf32> to vector<2x32xf32>
    %366 = vector.extract_strided_slice %286 {offsets = [6, 0], sizes = [2, 192], strides = [1, 1]} : vector<16x192xf32> to vector<2x192xf32>
    %cst_72 = arith.constant dense<0.000000e+00> : vector<2x192xf32>
    %367 = tpu.matmul %363, %264, %cst_72 {dimension_numbers = #tpu.dot_dimension_numbers<[1], [0], [0], [1], [0, 0, 1, 1], [], []>} : vector<2x64xf32>, vector<64x192xf32>, vector<2x192xf32> -> vector<2x192xf32>
    %368 = vector.broadcast %265 : vector<1x192xf32> to vector<2x192xf32>
    %369 = arith.addf %367, %368 : vector<2x192xf32>
    %370 = vector.extract_strided_slice %366 {offsets = [0, 0], sizes = [2, 128], strides = [1, 1]} : vector<2x192xf32> to vector<2x128xf32>
    %371 = vector.extract_strided_slice %369 {offsets = [0, 0], sizes = [2, 128], strides = [1, 1]} : vector<2x192xf32> to vector<2x128xf32>
    %372 = arith.addf %370, %371 : vector<2x128xf32>
    %373 = arith.negf %372 : vector<2x128xf32>
    %374 = math.exp %373 : vector<2x128xf32>
    %cst_73 = arith.constant 1.000000e+00 : f32
    %375 = vector.broadcast %cst_73 : f32 to vector<2x128xf32>
    %376 = arith.addf %375, %374 : vector<2x128xf32>
    %377 = arith.divf %375, %376 : vector<2x128xf32>
    %378 = vector.extract_strided_slice %377 {offsets = [0, 0], sizes = [2, 64], strides = [1, 1]} : vector<2x128xf32> to vector<2x64xf32>
    %379 = vector.extract_strided_slice %377 {offsets = [0, 64], sizes = [2, 64], strides = [1, 1]} : vector<2x128xf32> to vector<2x64xf32>
    %380 = vector.extract_strided_slice %366 {offsets = [0, 128], sizes = [2, 64], strides = [1, 1]} : vector<2x192xf32> to vector<2x64xf32>
    %381 = vector.extract_strided_slice %369 {offsets = [0, 128], sizes = [2, 64], strides = [1, 1]} : vector<2x192xf32> to vector<2x64xf32>
    %382 = arith.mulf %378, %381 : vector<2x64xf32>
    %383 = arith.addf %380, %382 : vector<2x64xf32>
    %384 = math.tanh %383 : vector<2x64xf32>
    %cst_74 = arith.constant 1.000000e+00 : f32
    %385 = vector.broadcast %cst_74 : f32 to vector<2x64xf32>
    %386 = arith.subf %385, %379 : vector<2x64xf32>
    %387 = arith.mulf %386, %384 : vector<2x64xf32>
    %388 = arith.mulf %379, %363 : vector<2x64xf32>
    %389 = arith.addf %387, %388 : vector<2x64xf32>
    %390 = vector.extract_strided_slice %389 {offsets = [0, 0], sizes = [2, 32], strides = [1, 1]} : vector<2x64xf32> to vector<2x32xf32>
    %391 = vector.extract_strided_slice %389 {offsets = [0, 32], sizes = [2, 32], strides = [1, 1]} : vector<2x64xf32> to vector<2x32xf32>
    %392 = vector.extract_strided_slice %286 {offsets = [8, 0], sizes = [2, 192], strides = [1, 1]} : vector<16x192xf32> to vector<2x192xf32>
    %cst_75 = arith.constant dense<0.000000e+00> : vector<2x192xf32>
    %393 = tpu.matmul %389, %264, %cst_75 {dimension_numbers = #tpu.dot_dimension_numbers<[1], [0], [0], [1], [0, 0, 1, 1], [], []>} : vector<2x64xf32>, vector<64x192xf32>, vector<2x192xf32> -> vector<2x192xf32>
    %394 = vector.broadcast %265 : vector<1x192xf32> to vector<2x192xf32>
    %395 = arith.addf %393, %394 : vector<2x192xf32>
    %396 = vector.extract_strided_slice %392 {offsets = [0, 0], sizes = [2, 128], strides = [1, 1]} : vector<2x192xf32> to vector<2x128xf32>
    %397 = vector.extract_strided_slice %395 {offsets = [0, 0], sizes = [2, 128], strides = [1, 1]} : vector<2x192xf32> to vector<2x128xf32>
    %398 = arith.addf %396, %397 : vector<2x128xf32>
    %399 = arith.negf %398 : vector<2x128xf32>
    %400 = math.exp %399 : vector<2x128xf32>
    %cst_76 = arith.constant 1.000000e+00 : f32
    %401 = vector.broadcast %cst_76 : f32 to vector<2x128xf32>
    %402 = arith.addf %401, %400 : vector<2x128xf32>
    %403 = arith.divf %401, %402 : vector<2x128xf32>
    %404 = vector.extract_strided_slice %403 {offsets = [0, 0], sizes = [2, 64], strides = [1, 1]} : vector<2x128xf32> to vector<2x64xf32>
    %405 = vector.extract_strided_slice %403 {offsets = [0, 64], sizes = [2, 64], strides = [1, 1]} : vector<2x128xf32> to vector<2x64xf32>
    %406 = vector.extract_strided_slice %392 {offsets = [0, 128], sizes = [2, 64], strides = [1, 1]} : vector<2x192xf32> to vector<2x64xf32>
    %407 = vector.extract_strided_slice %395 {offsets = [0, 128], sizes = [2, 64], strides = [1, 1]} : vector<2x192xf32> to vector<2x64xf32>
    %408 = arith.mulf %404, %407 : vector<2x64xf32>
    %409 = arith.addf %406, %408 : vector<2x64xf32>
    %410 = math.tanh %409 : vector<2x64xf32>
    %cst_77 = arith.constant 1.000000e+00 : f32
    %411 = vector.broadcast %cst_77 : f32 to vector<2x64xf32>
    %412 = arith.subf %411, %405 : vector<2x64xf32>
    %413 = arith.mulf %412, %410 : vector<2x64xf32>
    %414 = arith.mulf %405, %389 : vector<2x64xf32>
    %415 = arith.addf %413, %414 : vector<2x64xf32>
    %416 = vector.extract_strided_slice %415 {offsets = [0, 0], sizes = [2, 32], strides = [1, 1]} : vector<2x64xf32> to vector<2x32xf32>
    %417 = vector.extract_strided_slice %415 {offsets = [0, 32], sizes = [2, 32], strides = [1, 1]} : vector<2x64xf32> to vector<2x32xf32>
    %418 = vector.extract_strided_slice %286 {offsets = [10, 0], sizes = [2, 192], strides = [1, 1]} : vector<16x192xf32> to vector<2x192xf32>
    %cst_78 = arith.constant dense<0.000000e+00> : vector<2x192xf32>
    %419 = tpu.matmul %415, %264, %cst_78 {dimension_numbers = #tpu.dot_dimension_numbers<[1], [0], [0], [1], [0, 0, 1, 1], [], []>} : vector<2x64xf32>, vector<64x192xf32>, vector<2x192xf32> -> vector<2x192xf32>
    %420 = vector.broadcast %265 : vector<1x192xf32> to vector<2x192xf32>
    %421 = arith.addf %419, %420 : vector<2x192xf32>
    %422 = vector.extract_strided_slice %418 {offsets = [0, 0], sizes = [2, 128], strides = [1, 1]} : vector<2x192xf32> to vector<2x128xf32>
    %423 = vector.extract_strided_slice %421 {offsets = [0, 0], sizes = [2, 128], strides = [1, 1]} : vector<2x192xf32> to vector<2x128xf32>
    %424 = arith.addf %422, %423 : vector<2x128xf32>
    %425 = arith.negf %424 : vector<2x128xf32>
    %426 = math.exp %425 : vector<2x128xf32>
    %cst_79 = arith.constant 1.000000e+00 : f32
    %427 = vector.broadcast %cst_79 : f32 to vector<2x128xf32>
    %428 = arith.addf %427, %426 : vector<2x128xf32>
    %429 = arith.divf %427, %428 : vector<2x128xf32>
    %430 = vector.extract_strided_slice %429 {offsets = [0, 0], sizes = [2, 64], strides = [1, 1]} : vector<2x128xf32> to vector<2x64xf32>
    %431 = vector.extract_strided_slice %429 {offsets = [0, 64], sizes = [2, 64], strides = [1, 1]} : vector<2x128xf32> to vector<2x64xf32>
    %432 = vector.extract_strided_slice %418 {offsets = [0, 128], sizes = [2, 64], strides = [1, 1]} : vector<2x192xf32> to vector<2x64xf32>
    %433 = vector.extract_strided_slice %421 {offsets = [0, 128], sizes = [2, 64], strides = [1, 1]} : vector<2x192xf32> to vector<2x64xf32>
    %434 = arith.mulf %430, %433 : vector<2x64xf32>
    %435 = arith.addf %432, %434 : vector<2x64xf32>
    %436 = math.tanh %435 : vector<2x64xf32>
    %cst_80 = arith.constant 1.000000e+00 : f32
    %437 = vector.broadcast %cst_80 : f32 to vector<2x64xf32>
    %438 = arith.subf %437, %431 : vector<2x64xf32>
    %439 = arith.mulf %438, %436 : vector<2x64xf32>
    %440 = arith.mulf %431, %415 : vector<2x64xf32>
    %441 = arith.addf %439, %440 : vector<2x64xf32>
    %442 = vector.extract_strided_slice %441 {offsets = [0, 0], sizes = [2, 32], strides = [1, 1]} : vector<2x64xf32> to vector<2x32xf32>
    %443 = vector.extract_strided_slice %441 {offsets = [0, 32], sizes = [2, 32], strides = [1, 1]} : vector<2x64xf32> to vector<2x32xf32>
    %444 = vector.extract_strided_slice %286 {offsets = [12, 0], sizes = [2, 192], strides = [1, 1]} : vector<16x192xf32> to vector<2x192xf32>
    %cst_81 = arith.constant dense<0.000000e+00> : vector<2x192xf32>
    %445 = tpu.matmul %441, %264, %cst_81 {dimension_numbers = #tpu.dot_dimension_numbers<[1], [0], [0], [1], [0, 0, 1, 1], [], []>} : vector<2x64xf32>, vector<64x192xf32>, vector<2x192xf32> -> vector<2x192xf32>
    %446 = vector.broadcast %265 : vector<1x192xf32> to vector<2x192xf32>
    %447 = arith.addf %445, %446 : vector<2x192xf32>
    %448 = vector.extract_strided_slice %444 {offsets = [0, 0], sizes = [2, 128], strides = [1, 1]} : vector<2x192xf32> to vector<2x128xf32>
    %449 = vector.extract_strided_slice %447 {offsets = [0, 0], sizes = [2, 128], strides = [1, 1]} : vector<2x192xf32> to vector<2x128xf32>
    %450 = arith.addf %448, %449 : vector<2x128xf32>
    %451 = arith.negf %450 : vector<2x128xf32>
    %452 = math.exp %451 : vector<2x128xf32>
    %cst_82 = arith.constant 1.000000e+00 : f32
    %453 = vector.broadcast %cst_82 : f32 to vector<2x128xf32>
    %454 = arith.addf %453, %452 : vector<2x128xf32>
    %455 = arith.divf %453, %454 : vector<2x128xf32>
    %456 = vector.extract_strided_slice %455 {offsets = [0, 0], sizes = [2, 64], strides = [1, 1]} : vector<2x128xf32> to vector<2x64xf32>
    %457 = vector.extract_strided_slice %455 {offsets = [0, 64], sizes = [2, 64], strides = [1, 1]} : vector<2x128xf32> to vector<2x64xf32>
    %458 = vector.extract_strided_slice %444 {offsets = [0, 128], sizes = [2, 64], strides = [1, 1]} : vector<2x192xf32> to vector<2x64xf32>
    %459 = vector.extract_strided_slice %447 {offsets = [0, 128], sizes = [2, 64], strides = [1, 1]} : vector<2x192xf32> to vector<2x64xf32>
    %460 = arith.mulf %456, %459 : vector<2x64xf32>
    %461 = arith.addf %458, %460 : vector<2x64xf32>
    %462 = math.tanh %461 : vector<2x64xf32>
    %cst_83 = arith.constant 1.000000e+00 : f32
    %463 = vector.broadcast %cst_83 : f32 to vector<2x64xf32>
    %464 = arith.subf %463, %457 : vector<2x64xf32>
    %465 = arith.mulf %464, %462 : vector<2x64xf32>
    %466 = arith.mulf %457, %441 : vector<2x64xf32>
    %467 = arith.addf %465, %466 : vector<2x64xf32>
    %468 = vector.extract_strided_slice %467 {offsets = [0, 0], sizes = [2, 32], strides = [1, 1]} : vector<2x64xf32> to vector<2x32xf32>
    %469 = vector.extract_strided_slice %467 {offsets = [0, 32], sizes = [2, 32], strides = [1, 1]} : vector<2x64xf32> to vector<2x32xf32>
    %470 = vector.extract_strided_slice %286 {offsets = [14, 0], sizes = [2, 192], strides = [1, 1]} : vector<16x192xf32> to vector<2x192xf32>
    %cst_84 = arith.constant dense<0.000000e+00> : vector<2x192xf32>
    %471 = tpu.matmul %467, %264, %cst_84 {dimension_numbers = #tpu.dot_dimension_numbers<[1], [0], [0], [1], [0, 0, 1, 1], [], []>} : vector<2x64xf32>, vector<64x192xf32>, vector<2x192xf32> -> vector<2x192xf32>
    %472 = vector.broadcast %265 : vector<1x192xf32> to vector<2x192xf32>
    %473 = arith.addf %471, %472 : vector<2x192xf32>
    %474 = vector.extract_strided_slice %470 {offsets = [0, 0], sizes = [2, 128], strides = [1, 1]} : vector<2x192xf32> to vector<2x128xf32>
    %475 = vector.extract_strided_slice %473 {offsets = [0, 0], sizes = [2, 128], strides = [1, 1]} : vector<2x192xf32> to vector<2x128xf32>
    %476 = arith.addf %474, %475 : vector<2x128xf32>
    %477 = arith.negf %476 : vector<2x128xf32>
    %478 = math.exp %477 : vector<2x128xf32>
    %cst_85 = arith.constant 1.000000e+00 : f32
    %479 = vector.broadcast %cst_85 : f32 to vector<2x128xf32>
    %480 = arith.addf %479, %478 : vector<2x128xf32>
    %481 = arith.divf %479, %480 : vector<2x128xf32>
    %482 = vector.extract_strided_slice %481 {offsets = [0, 0], sizes = [2, 64], strides = [1, 1]} : vector<2x128xf32> to vector<2x64xf32>
    %483 = vector.extract_strided_slice %481 {offsets = [0, 64], sizes = [2, 64], strides = [1, 1]} : vector<2x128xf32> to vector<2x64xf32>
    %484 = vector.extract_strided_slice %470 {offsets = [0, 128], sizes = [2, 64], strides = [1, 1]} : vector<2x192xf32> to vector<2x64xf32>
    %485 = vector.extract_strided_slice %473 {offsets = [0, 128], sizes = [2, 64], strides = [1, 1]} : vector<2x192xf32> to vector<2x64xf32>
    %486 = arith.mulf %482, %485 : vector<2x64xf32>
    %487 = arith.addf %484, %486 : vector<2x64xf32>
    %488 = math.tanh %487 : vector<2x64xf32>
    %cst_86 = arith.constant 1.000000e+00 : f32
    %489 = vector.broadcast %cst_86 : f32 to vector<2x64xf32>
    %490 = arith.subf %489, %483 : vector<2x64xf32>
    %491 = arith.mulf %490, %488 : vector<2x64xf32>
    %492 = arith.mulf %483, %467 : vector<2x64xf32>
    %493 = arith.addf %491, %492 : vector<2x64xf32>
    %494 = vector.extract_strided_slice %493 {offsets = [0, 0], sizes = [2, 32], strides = [1, 1]} : vector<2x64xf32> to vector<2x32xf32>
    %495 = vector.extract_strided_slice %493 {offsets = [0, 32], sizes = [2, 32], strides = [1, 1]} : vector<2x64xf32> to vector<2x32xf32>
    %496 = tpu.concatenate %312, %338, %364, %390, %416, %442, %468, %494 in 0 : vector<2x32xf32>, vector<2x32xf32>, vector<2x32xf32>, vector<2x32xf32>, vector<2x32xf32>, vector<2x32xf32>, vector<2x32xf32>, vector<2x32xf32> -> vector<16x32xf32>
    %497 = tpu.concatenate %495, %469, %443, %417, %391, %365, %339, %313 in 0 : vector<2x32xf32>, vector<2x32xf32>, vector<2x32xf32>, vector<2x32xf32>, vector<2x32xf32>, vector<2x32xf32>, vector<2x32xf32>, vector<2x32xf32> -> vector<16x32xf32>
    %498 = tpu.concatenate %496, %497 in 1 : vector<16x32xf32>, vector<16x32xf32> -> vector<16x64xf32>
    %c0_87 = arith.constant 0 : index
    %c0_88 = arith.constant 0 : index
    %499 = vector.load %arg18[%c0_87, %c0_88] : memref<64x20xf32, #tpu.memory_space<vmem>>, vector<64x20xf32>
    %cst_89 = arith.constant dense<0.000000e+00> : vector<16x20xf32>
    %500 = tpu.matmul %498, %499, %cst_89 {dimension_numbers = #tpu.dot_dimension_numbers<[1], [0], [0], [1], [0, 0, 1, 1], [], []>} : vector<16x64xf32>, vector<64x20xf32>, vector<16x20xf32> -> vector<16x20xf32>
    %c0_90 = arith.constant 0 : index
    %c0_91 = arith.constant 0 : index
    %501 = vector.load %arg19[%c0_90, %c0_91] : memref<1x20xf32, #tpu.memory_space<vmem>>, vector<1x20xf32>
    %502 = vector.broadcast %501 : vector<1x20xf32> to vector<16x20xf32>
    %503 = arith.addf %500, %502 : vector<16x20xf32>
    %504 = vector.extract_strided_slice %503 {offsets = [0, 0], sizes = [16, 10], strides = [1, 1]} : vector<16x20xf32> to vector<16x10xf32>
    %505 = arith.negf %504 : vector<16x10xf32>
    %506 = math.exp %505 : vector<16x10xf32>
    %cst_92 = arith.constant 1.000000e+00 : f32
    %507 = vector.broadcast %cst_92 : f32 to vector<16x10xf32>
    %508 = arith.addf %507, %506 : vector<16x10xf32>
    %509 = arith.divf %507, %508 : vector<16x10xf32>
    %510 = vector.extract_strided_slice %503 {offsets = [0, 10], sizes = [16, 10], strides = [1, 1]} : vector<16x20xf32> to vector<16x10xf32>
    %cst_93 = arith.constant dense<0xFF800000> : vector<16xf32>
    %511 = vector.multi_reduction <maximumf>, %510, %cst_93 [1] : vector<16x10xf32> to vector<16xf32>
    %512 = vector.shape_cast %511 : vector<16xf32> to vector<16x1xf32>
    %513 = vector.broadcast %512 : vector<16x1xf32> to vector<16x10xf32>
    %514 = arith.subf %510, %513 : vector<16x10xf32>
    %515 = math.exp %514 : vector<16x10xf32>
    %cst_94 = arith.constant dense<0.000000e+00> : vector<16xf32>
    %516 = vector.multi_reduction <add>, %515, %cst_94 [1] : vector<16x10xf32> to vector<16xf32>
    %517 = vector.shape_cast %516 : vector<16xf32> to vector<16x1xf32>
    %518 = vector.broadcast %517 : vector<16x1xf32> to vector<16x10xf32>
    %519 = arith.divf %515, %518 : vector<16x10xf32>
    %cst_95 = arith.constant 1.000000e-07 : f32
    %cst_96 = arith.constant 1.000000e+00 : f32
    %520 = vector.broadcast %cst_95 : f32 to vector<16x10xf32>
    %521 = arith.maximumf %520, %519 : vector<16x10xf32>
    %522 = vector.broadcast %cst_96 : f32 to vector<16x10xf32>
    %523 = arith.minimumf %522, %521 : vector<16x10xf32>
    %c0_97 = arith.constant 0 : index
    %c0_98 = arith.constant 0 : index
    %524 = vector.load %arg3[%c0_97, %c0_98] : memref<2x16xf32, #tpu.memory_space<vmem>>, vector<2x16xf32>
    %525 = arith.mulf %509, %523 : vector<16x10xf32>
    %cst_99 = arith.constant dense<0.000000e+00> : vector<2x10xf32>
    %526 = tpu.matmul %524, %525, %cst_99 {dimension_numbers = #tpu.dot_dimension_numbers<[1], [0], [0], [1], [0, 0, 1, 1], [], []>} : vector<2x16xf32>, vector<16x10xf32>, vector<2x10xf32> -> vector<2x10xf32>
    %c0_100 = arith.constant 0 : index
    %c0_101 = arith.constant 0 : index
    %527 = vector.load %arg3[%c0_100, %c0_101] : memref<2x16xf32, #tpu.memory_space<vmem>>, vector<2x16xf32>
    %cst_102 = arith.constant dense<0.000000e+00> : vector<2x10xf32>
    %528 = tpu.matmul %527, %523, %cst_102 {dimension_numbers = #tpu.dot_dimension_numbers<[1], [0], [0], [1], [0, 0, 1, 1], [], []>} : vector<2x16xf32>, vector<16x10xf32>, vector<2x10xf32> -> vector<2x10xf32>
    %529 = arith.divf %526, %528 : vector<2x10xf32>
    %c0_103 = arith.constant 0 : index
    %c0_104 = arith.constant 0 : index
    %530 = vector.load %arg4[%c0_103, %c0_104] : memref<2x768xf32, #tpu.memory_space<vmem>>, vector<2x768xf32>
    %c0_105 = arith.constant 0 : index
    %c0_106 = arith.constant 0 : index
    %531 = vector.load %arg20[%c0_105, %c0_106] : memref<768x10xf32, #tpu.memory_space<vmem>>, vector<768x10xf32>
    %cst_107 = arith.constant dense<0.000000e+00> : vector<2x10xf32>
    %532 = tpu.matmul %530, %531, %cst_107 {dimension_numbers = #tpu.dot_dimension_numbers<[1], [0], [0], [1], [0, 0, 1, 1], [], []>} : vector<2x768xf32>, vector<768x10xf32>, vector<2x10xf32> -> vector<2x10xf32>
    %c0_108 = arith.constant 0 : index
    %c0_109 = arith.constant 0 : index
    %533 = vector.load %arg21[%c0_108, %c0_109] : memref<1x10xf32, #tpu.memory_space<vmem>>, vector<1x10xf32>
    %534 = vector.broadcast %533 : vector<1x10xf32> to vector<2x10xf32>
    %535 = arith.addf %532, %534 : vector<2x10xf32>
    %536 = arith.negf %535 : vector<2x10xf32>
    %537 = math.exp %536 : vector<2x10xf32>
    %cst_110 = arith.constant 1.000000e+00 : f32
    %538 = vector.broadcast %cst_110 : f32 to vector<2x10xf32>
    %539 = arith.addf %538, %537 : vector<2x10xf32>
    %540 = arith.divf %538, %539 : vector<2x10xf32>
    %c0_111 = arith.constant 0 : index
    %c0_112 = arith.constant 0 : index
    %541 = vector.load %arg22[%c0_111, %c0_112] : memref<16x10xf32, #tpu.memory_space<vmem>>, vector<16x10xf32>
    tpu.vector_store %arg22[%c0_111, %c0_112], %509 {strides = array<i32>} : memref<16x10xf32, #tpu.memory_space<vmem>>, vector<16x10xf32>,
    %cst_113 = arith.constant 5.000000e-01 : f32
    %542 = vector.broadcast %cst_113 : f32 to vector<2x10xf32>
    %543 = arith.mulf %542, %540 : vector<2x10xf32>
    %cst_114 = arith.constant 5.000000e-01 : f32
    %544 = vector.broadcast %cst_114 : f32 to vector<2x10xf32>
    %545 = arith.mulf %544, %529 : vector<2x10xf32>
    %546 = arith.addf %543, %545 : vector<2x10xf32>
    %c0_115 = arith.constant 0 : index
    %c0_116 = arith.constant 0 : index
    %547 = vector.load %arg23[%c0_115, %c0_116] : memref<2x10xf32, #tpu.memory_space<vmem>>, vector<2x10xf32>
    tpu.vector_store %arg23[%c0_115, %c0_116], %546 {strides = array<i32>} : memref<2x10xf32, #tpu.memory_space<vmem>>, vector<2x10xf32>,
    return
  }
}

</mosaic_0001>

<bundles_post_ra>
// kernel: _lambda_.1
= control target key start
LH: loop header
LB: loop body
LE: loop exit
PB: predicated region body
PF: predicated region fallthrough
CT: control target
= control target key end

     0   :  { %s6896_s0 = inlined_call_operand.vmem [shape: f32[256,9], index: 0, kind: input, shape index: {}]   ;;  %s6897_s1 = inlined_call_operand.vmem [shape: f32[16,256], index: 1, kind: input, shape index: {}]   ;;  %s6898_s2 = inlined_call_operand.vmem [shape: f32[16,64], index: 2, kind: input, shape index: {}]   ;;  %s6899_s3 = inlined_call_operand.vmem [shape: f32[2,16], index: 3, kind: input, shape index: {}]   ;;  %s6900_s4 = inlined_call_operand.vmem [shape: f32[2,768], index: 4, kind: input, shape index: {}]   ;;  %s6901_s5 = inlined_call_operand.vmem [shape: f32[9,32], index: 5, kind: input, shape index: {}]   ;;  %s6902_s6 = inlined_call_operand.vmem [shape: f32[1,32], index: 6, kind: input, shape index: {}]   ;;  %s6903_s7 = inlined_call_operand.vmem [shape: f32[16,16], index: 7, kind: input, shape index: {}]   ;;  %s6904_s8 = inlined_call_operand.vmem [shape: f32[64,16], index: 8, kind: input, shape index: {}]   ;;  %s6905_s9 = inlined_call_operand.vmem [shape: f32[1,16], index: 9, kind: input, shape index: {}]   ;;  %s6906_s10 = inlined_call_operand.vmem [shape: f32[16,192], index: 10, kind: input, shape index: {}]   ;;  %s6907_s11 = inlined_call_operand.vmem [shape: f32[1,192], index: 11, kind: input, shape index: {}]   ;;  %s6908_s12 = inlined_call_operand.hbm [shape: f32[64,192], index: 12, kind: input, shape index: {}]   ;;  %s6909_s13 = inlined_call_operand.vmem [shape: f32[1,192], index: 13, kind: input, shape index: {}]   ;;  %s6910_s14 = inlined_call_operand.hbm [shape: f32[64,192], index: 14, kind: input, shape index: {}]   ;;  %s6911_s15 = inlined_call_operand.hbm [shape: f32[1,192], index: 15, kind: input, shape index: {}]   ;;  %s6912_s16 = inlined_call_operand.hbm [shape: f32[64,192], index: 16, kind: input, shape index: {}]   ;;  %s6913_s17 = inlined_call_operand.hbm [shape: f32[1,192], index: 17, kind: input, shape index: {}]   ;;  %s6914_s18 = inlined_call_operand.hbm [shape: f32[64,20], index: 18, kind: input, shape index: {}]   ;;  %s6915_s19 = inlined_call_operand.hbm [shape: f32[1,20], index: 19, kind: input, shape index: {}]   ;;  %s6916_s20 = inlined_call_operand.vmem [shape: f32[768,10], index: 20, kind: input, shape index: {}]   ;;  %s6917_s21 = inlined_call_operand.hbm [shape: f32[1,10], index: 21, kind: input, shape index: {}]   ;;  %s6918_s22 = inlined_call_operand.vmem [shape: f32[16,10], index: 22, kind: output, shape index: {0}]   ;;  %s6919_s23 = inlined_call_operand.hbm [shape: f32[2,10], index: 23, kind: output, shape index: {1}]  }
   0x1   :  { %6927 = sst [smem:[#allocation23_spill]] %s6896_s0 }
   0x2   :  { %6928 = sst [smem:[#allocation24_spill]] %s6897_s1 }
   0x3   :  { %6929 = sst [smem:[#allocation25_spill]] %s6898_s2 }
   0x4   :  { %6930 = sst [smem:[#allocation26_spill]] %s6899_s3 }
   0x5   :  { %6931 = sst [smem:[#allocation27_spill]] %s6900_s4 }
   0x6   :  { %6932 = sst [smem:[#allocation28_spill]] %s6901_s5 }
   0x7   :  { %6933 = sst [smem:[#allocation29_spill]] %s6902_s6 }
   0x8   :  { %6934 = sst [smem:[#allocation30_spill]] %s6903_s7 }
   0x9   :  { %29 = vsyncpa [#allocation3], 0 }
   0xa   :  { %30 = vsyncpa [#allocation6], 0 }
   0xb   :  { %31 = vsyncpa [#allocation9], 0 }
   0xc   :  { %32 = vsyncpa [#allocation12], 0 }
   0xd   :  { %33 = vsyncpa [#allocation15], 0 }
   0xe   :  { %34 = vsyncpa [#allocation4], 0  ;;  %s5305_s4 = smov [#allocation5]   ;;  %s5306_s24 = smov [#allocation8]  }
   0xf   :  { %s78_s30 = sshll.u32 %s5305_s4, 4  ;;  %s100_s25 = sshll.u32 %s5306_s24, 4  ;;  %s79_s30 = int_to_ptr.vmem [resolvable:$true] %s78_s30  ;;  %s5448_s25 = int_to_ptr.vmem [resolvable:$true] %s100_s25 }
  0x10   :  { %s5095_s26 = scalar_lea.hbm %s6910_s14, 2048 }
  0x11   :  { %p5096_p0 = scmp.ne.s32.totalorder %s6910_s14, %s5095_s26  ;;  %p5099_p1 = scmp.lt.u32.totalorder %s5095_s26, %s6910_s14 }
  0x13   :  { %p5101_p2 = pnand %p5099_p1, %p5096_p0 }
  0x15   :  { %5104 = shalt.err (!%p5101_p2)
}
  0x16   :  { %s5105_s28 = scalar_lea.vmem %s79_s30, 2048  ;;  %p5110_p4 = scmp.lt.s32.totalorder %s79_s30, %s79_s30 }
  0x17   :  { %p5106_p3 = scmp.ne.s32.totalorder %s79_s30, %s5105_s28  ;;  %p5111_p5 = scmp.lt.s32.totalorder %s5105_s28, %s5105_s28 }
  0x19   :  { %p5112_p6 = por %p5111_p5, %p5110_p4 }
  0x1b   :  { %p5113_p7 = pnand %p5112_p6, %p5106_p3 }
  0x1d   :  { %5116 = shalt.err (!%p5113_p7)
}
  0x1e   :  { %s6926_s29 = smov 256   ;;  %s5308_s3 = smov 16  }
  0x1f   :  { %84 = dma.hbm_to_vmem [thread:$0]  %s6910_s14, 2048, %s79_s30, [#allocation6], %s6926_s29, %s6926_s29, %s5308_s3  }
  0x20   :  { %s5117_s1 = scalar_lea.hbm %s6912_s16, 2048 }
  0x21   :  { %p5118_p8 = scmp.ne.s32.totalorder %s6912_s16, %s5117_s1  ;;  %p5121_p9 = scmp.lt.u32.totalorder %s5117_s1, %s6912_s16 }
  0x23   :  { %p5123_p10 = pnand %p5121_p9, %p5118_p8 }
  0x25   :  { %5126 = shalt.err (!%p5123_p10)
}
  0x26   :  { %s5127_s7 = scalar_lea.vmem %s5448_s25, 2048  ;;  %p5132_p12 = scmp.lt.s32.totalorder %s5448_s25, %s5448_s25 }
  0x27   :  { %p5128_p11 = scmp.ne.s32.totalorder %s5448_s25, %s5127_s7  ;;  %p5133_p13 = scmp.lt.s32.totalorder %s5127_s7, %s5127_s7 }
  0x29   :  { %p5134_p0 = por %p5133_p13, %p5132_p12 }
  0x2b   :  { %p5135_p1 = pnand %p5134_p0, %p5128_p11 }
  0x2d   :  { %5138 = shalt.err (!%p5135_p1)
}
  0x2e   :  { %106 = dma.hbm_to_vmem [thread:$0]  %s6912_s16, 2048, %s5448_s25, [#allocation9], %s6926_s29, %s6926_s29, %s5308_s3  }
  0x2f   :  { %s5309_s28 = smov [#allocation11]   ;;  %s5139_s5 = scalar_lea.hbm %s6914_s18, 1024 }
  0x30   :  { %s122_s0 = sshll.u32 %s5309_s28, 4  ;;  %p5140_p2 = scmp.ne.s32.totalorder %s6914_s18, %s5139_s5  ;;  %s123_s0 = int_to_ptr.vmem [resolvable:$true] %s122_s0 }
  0x31   :  { %p5143_p3 = scmp.lt.u32.totalorder %s5139_s5, %s6914_s18 }
  0x33   :  { %p5145_p4 = pnand %p5143_p3, %p5140_p2 }
  0x35   :  { %5148 = shalt.err (!%p5145_p4)
}
  0x36   :  { %s5149_s27 = scalar_lea.vmem %s123_s0, 1024  ;;  %p5154_p6 = scmp.lt.s32.totalorder %s123_s0, %s123_s0 }
  0x37   :  { %p5150_p5 = scmp.ne.s32.totalorder %s123_s0, %s5149_s27  ;;  %p5155_p7 = scmp.lt.s32.totalorder %s5149_s27, %s5149_s27 }
  0x39   :  { %p5156_p8 = por %p5155_p7, %p5154_p6 }
  0x3b   :  { %p5157_p9 = pnand %p5156_p8, %p5150_p5 }
  0x3d   :  { %5160 = shalt.err (!%p5157_p9)
}
  0x3e   :  { %s5310_s16 = smov 128   ;;  %s5311_s25 = smov 8  }
  0x3f   :  { %128 = dma.hbm_to_vmem [thread:$0]  %s6914_s18, 1024, %s123_s0, [#allocation12], %s5310_s16, %s5310_s16, %s5311_s25  }
  0x40   :  { %s5312_s30 = smov [#allocation2]   ;;  %s5313_s4 = smov [#allocation7]  }
  0x41   :  { %s64_s28 = sshll.u32 %s5312_s30, 4  ;;  %s91_s24 = sshll.u32 %s5313_s4, 4  ;;  %s65_s28 = int_to_ptr.vmem [resolvable:$true] %s64_s28  ;;  %s92_s24 = int_to_ptr.vmem [resolvable:$true] %s91_s24 }
  0x42   :  { %s5161_s26 = scalar_lea.hbm %s6908_s12, 2048 }
  0x43   :  { %p5162_p10 = scmp.ne.s32.totalorder %s6908_s12, %s5161_s26  ;;  %p5165_p11 = scmp.lt.u32.totalorder %s5161_s26, %s6908_s12 }
  0x45   :  { %p5167_p12 = pnand %p5165_p11, %p5162_p10 }
  0x47   :  { %5170 = shalt.err (!%p5167_p12)
}
  0x48   :  { %s5171_s18 = scalar_lea.vmem %s65_s28, 2048  ;;  %p5176_p0 = scmp.lt.s32.totalorder %s65_s28, %s65_s28 }
  0x49   :  { %p5172_p13 = scmp.ne.s32.totalorder %s65_s28, %s5171_s18  ;;  %p5177_p1 = scmp.lt.s32.totalorder %s5171_s18, %s5171_s18 }
  0x4b   :  { %p5178_p2 = por %p5177_p1, %p5176_p0 }
  0x4d   :  { %p5179_p3 = pnand %p5178_p2, %p5172_p13 }
  0x4f   :  { %5182 = shalt.err (!%p5179_p3)
}
  0x50   :  { %s6935_s0 = smov 256   ;;  %s5183_s14 = scalar_lea.hbm %s6911_s15, 32 }
  0x51   :  { %70 = dma.hbm_to_vmem [thread:$0]  %s6908_s12, 2048, %s65_s28, [#allocation3], %s6935_s0, %s6935_s0, %s5308_s3  }
  0x52   :  { %p5184_p4 = scmp.ne.s32.totalorder %s6911_s15, %s5183_s14  ;;  %p5187_p5 = scmp.lt.u32.totalorder %s5183_s14, %s6911_s15 }
  0x54   :  { %p5189_p6 = pnand %p5187_p5, %p5184_p4 }
  0x56   :  { %5192 = shalt.err (!%p5189_p6)
}
  0x57   :  { %s5193_s26 = scalar_lea.vmem %s92_s24, 32  ;;  %p5198_p8 = scmp.lt.s32.totalorder %s92_s24, %s92_s24 }
  0x58   :  { %p5194_p7 = scmp.ne.s32.totalorder %s92_s24, %s5193_s26  ;;  %p5199_p9 = scmp.lt.s32.totalorder %s5193_s26, %s5193_s26 }
  0x5a   :  { %p5200_p10 = por %p5199_p9, %p5198_p8 }
  0x5c   :  { %p5201_p11 = pnand %p5200_p10, %p5194_p7 }
  0x5e   :  { %5204 = shalt.err (!%p5201_p11)
}
  0x5f   :  { %94 = dma.hbm_to_vmem [thread:$0]  %s6911_s15, 32, %s92_s24, [#allocation6]  }
  0x60   :  { %s5314_s28 = smov [#allocation10]   ;;  %s5315_s6 = smov [#allocation13]  }
  0x61   :  { %s113_s2 = sshll.u32 %s5314_s28, 4  ;;  %s135_s27 = sshll.u32 %s5315_s6, 4  ;;  %s114_s2 = int_to_ptr.vmem [resolvable:$true] %s113_s2  ;;  %s136_s27 = int_to_ptr.vmem [resolvable:$true] %s135_s27 }
  0x62   :  { %s5205_s16 = scalar_lea.hbm %s6913_s17, 32 }
  0x63   :  { %p5206_p12 = scmp.ne.s32.totalorder %s6913_s17, %s5205_s16  ;;  %p5209_p13 = scmp.lt.u32.totalorder %s5205_s16, %s6913_s17 }
  0x65   :  { %p5211_p0 = pnand %p5209_p13, %p5206_p12 }
  0x67   :  { %5214 = shalt.err (!%p5211_p0)
}
  0x68   :  { %s5215_s15 = scalar_lea.vmem %s114_s2, 32  ;;  %p5220_p2 = scmp.lt.s32.totalorder %s114_s2, %s114_s2 }
  0x69   :  { %p5216_p1 = scmp.ne.s32.totalorder %s114_s2, %s5215_s15  ;;  %p5221_p3 = scmp.lt.s32.totalorder %s5215_s15, %s5215_s15 }
  0x6b   :  { %p5222_p4 = por %p5221_p3, %p5220_p2 }
  0x6d   :  { %p5223_p5 = pnand %p5222_p4, %p5216_p1 }
  0x6f   :  { %5226 = shalt.err (!%p5223_p5)
}
  0x70   :  { %116 = dma.hbm_to_vmem [thread:$0]  %s6913_s17, 32, %s114_s2, [#allocation9]  }
  0x71   :  { %s5227_s1 = scalar_lea.hbm %s6915_s19, 16 }
  0x72   :  { %p5228_p6 = scmp.ne.s32.totalorder %s6915_s19, %s5227_s1  ;;  %p5231_p7 = scmp.lt.u32.totalorder %s5227_s1, %s6915_s19 }
  0x74   :  { %p5233_p8 = pnand %p5231_p7, %p5228_p6 }
  0x76   :  { %5236 = shalt.err (!%p5233_p8)
}
  0x77   :  { %s5237_s6 = scalar_lea.vmem %s136_s27, 16  ;;  %s5241_s18 = scalar_lea.vmem %s136_s27, 32 }
  0x78   :  { %p5238_p9 = scmp.ne.s32.totalorder %s136_s27, %s5237_s6  ;;  %p5242_p10 = scmp.lt.s32.totalorder %s136_s27, %s136_s27 }
  0x79   :  { %p5243_p11 = scmp.lt.s32.totalorder %s5241_s18, %s5237_s6 }
  0x7b   :  { %p5244_p12 = por %p5243_p11, %p5242_p10 }
  0x7d   :  { %p5245_p13 = pnand %p5244_p12, %p5238_p9 }
  0x7f   :  { %5248 = shalt.err (!%p5245_p13)
}
  0x80   :  { %138 = dma.hbm_to_vmem [thread:$0]  %s6915_s19, 16, %s136_s27, [#allocation12]  }
  0x81   :  { %s5316_s0 = smov [#allocation14]   ;;  %s5249_s29 = scalar_lea.hbm %s6917_s21, 16 }
  0x82   :  { %s147_s16 = sshll.u32 %s5316_s0, 4  ;;  %p5250_p0 = scmp.ne.s32.totalorder %s6917_s21, %s5249_s29  ;;  %s148_s16 = int_to_ptr.vmem [resolvable:$true] %s147_s16 }
  0x83   :  { %p5253_p1 = scmp.lt.u32.totalorder %s5249_s29, %s6917_s21 }
  0x85   :  { %p5255_p2 = pnand %p5253_p1, %p5250_p0 }
  0x87   :  { %5258 = shalt.err (!%p5255_p2)
}
  0x88   :  { %s5259_s4 = scalar_lea.vmem %s148_s16, 16  ;;  %s5263_s19 = scalar_lea.vmem %s148_s16, 32 }
  0x89   :  { %p5260_p3 = scmp.ne.s32.totalorder %s148_s16, %s5259_s4  ;;  %p5264_p4 = scmp.lt.s32.totalorder %s148_s16, %s148_s16 }
  0x8a   :  { %p5265_p5 = scmp.lt.s32.totalorder %s5263_s19, %s5259_s4 }
  0x8c   :  { %p5266_p6 = por %p5265_p5, %p5264_p4 }
  0x8e   :  { %p5267_p7 = pnand %p5266_p6, %p5260_p3 }
  0x90   :  { %5270 = shalt.err (!%p5267_p7)
}
  0x91   :  { %150 = dma.hbm_to_vmem [thread:$0]  %s6917_s21, 16, %s148_s16, [#allocation15]  }
  0x92   :  { %5293 = dma.done.wait [#allocation3], 2048  }
  0x93   :  { %5294 = vsyncadd [#allocation3], 4294965248 }
  0x94   :  { %5295 = dma.done.wait [#allocation6], 2080  }
  0x95   :  { %5296 = vsyncadd [#allocation6], 4294965216 }
  0x96   :  { %5297 = dma.done.wait [#allocation9], 2080  }
  0x97   :  { %5298 = vsyncadd [#allocation9], 4294965216 }
  0x98   :  { %5299 = dma.done.wait [#allocation12], 1040  }
  0x99   :  { %5300 = vsyncadd [#allocation12], 4294966256 }
  0x9a   :  { %5301 = dma.done.wait [#allocation15], 16  }
  0x9b   :  { %5302 = vsyncadd [#allocation15], 4294967280  ;;  %vm313_vm0 = vcmask 1040384   ;;  %vm216_vm1 = vcmask 72704   ;;  %vm5317_vm2 = vmmov 1   ;;  %s6936_s12 = sld [smem:[#allocation28_spill]] }
  0x9c   :  { %vm4370_vm3 = vmpackc.low %vm313_vm0, %vm5317_vm2  ;;  %s6937_s18 = sld [smem:[#allocation23_spill]]  ;;  %s6938_s28 = sld [smem:[#allocation29_spill]]  ;;  %vm985_vm4 = vcmask 523264   ;;  %vm1067_vm5 = vcmask 130048   ;;  %vm1294_vm6 = vcmask 1041408   ;;  %vm1297_vm7 = vcmask 1043456  }
  0x9d   :  { %s6939_s2 = sld [smem:[#allocation24_spill]]  ;;  %s6940_s26 = sld [smem:[#allocation25_spill]]  ;;  %vm1300_vm8 = vcmask 1045504   ;;  %vm1337_vm9 = vcmask 261120   ;;  %vm1342_vm10 = vcmask 785408   ;;  %vm3360_vm11 = vcmask 162896  }
  0x9e   :  { %s6941_s15 = sld [smem:[#allocation30_spill]]  ;;  %vm3381_vm12 = vcmask 80896   ;;  %s5323_s25 = smov 118   ;;  %vm5326_vm13 = vmmov 0   ;;  %vm3911_vm14 = vcmask 74752  }
  0x9f   :  { %s6942_s27 = sld [smem:[#allocation27_spill]]  ;;  %s6943_s17 = sld [smem:[#allocation26_spill]] }
  0xa1   :  { %v207_v0 = vld [vmem:[%s6936_s12] sm:$0xff]  ;;  %v208_v1 = vld [vmem:[%s6936_s12 + $0x8] sm:$0x1] }
  0xa2   :  { %v175_v2 = vld [vmem:[%s6937_s18] sm:$0xff]  ;;  %v4369_v3 = vpack.c.bf16 %v208_v1, %v207_v0  ;;  %v176_v5 = vld [vmem:[%s6937_s18 + $0x8] sm:$0xff]  ;;  %v177_v7 = vld [vmem:[%s6937_s18 + $0x10] sm:$0xff] }
  0xa3   :  { %4262 = vmatprep.mubr.msk.f32.mxu0 %vm216_vm1, %v175_v2  ;;  %v199_v4 = vld [vmem:[%s6937_s18 + $0xc0] sm:$0xff]  ;;  %v200_v6 = vld [vmem:[%s6937_s18 + $0xc8] sm:$0xff]  ;;  %v201_v8 = vld [vmem:[%s6937_s18 + $0xd0] sm:$0xff] }
  0xa4   :  { %4298 = vmatprep.mubr.msk.f32.mxu1 %vm216_vm1, %v199_v4  ;;  %4371 = vmatprep.subr.msk.bf16.mxu0 %vm4370_vm3, %v4369_v3  ;;  %v178_v9 = vld [vmem:[%s6937_s18 + $0x18] sm:$0xff]  ;;  %v179_v11 = vld [vmem:[%s6937_s18 + $0x20] sm:$0xff]  ;;  %v180_v13 = vld [vmem:[%s6937_s18 + $0x28] sm:$0xff] }
  0xa5   :  { %4821 = vmatprep.subr.msk.bf16.mxu1 %vm4370_vm3, %v4369_v3  ;;  %4374 = vmatpush3.bf16.msk.msra.mxu0 %vm4370_vm3, %v4369_v3  ;;  %v202_v10 = vld [vmem:[%s6937_s18 + $0xd8] sm:$0xff]  ;;  %v203_v12 = vld [vmem:[%s6937_s18 + $0xe0] sm:$0xff]  ;;  %v204_v14 = vld [vmem:[%s6937_s18 + $0xe8] sm:$0xff] }
  0xa6   :  { %4822 = vmatpush3.bf16.msk.msra.mxu1 %vm4370_vm3, %v4369_v3  ;;  %v181_v15 = vld [vmem:[%s6937_s18 + $0x30] sm:$0xff]  ;;  %v182_v17 = vld [vmem:[%s6937_s18 + $0x38] sm:$0xff]  ;;  %v183_v19 = vld [vmem:[%s6937_s18 + $0x40] sm:$0xff] }
  0xa7   :  { %v205_v16 = vld [vmem:[%s6937_s18 + $0xf0] sm:$0xff]  ;;  %v206_v18 = vld [vmem:[%s6937_s18 + $0xf8] sm:$0xff]  ;;  %v184_v20 = vld [vmem:[%s6937_s18 + $0x48] sm:$0xff] }
  0xa8   :  { %4263 = vmatmul.mubr.msk.f32.vlgmr.msra.gmra.mrb[0].mxu0 %vm216_vm1, %v176_v5  ;;  %v185_v21 = vld [vmem:[%s6937_s18 + $0x50] sm:$0xff]  ;;  %v186_v22 = vld [vmem:[%s6937_s18 + $0x58] sm:$0xff]  ;;  %v187_v23 = vld [vmem:[%s6937_s18 + $0x60] sm:$0xff] }
  0xa9   :  { %4299 = vmatmul.mubr.msk.f32.vlgmr.msra.gmra.mrb[0].mxu1 %vm216_vm1, %v200_v6  ;;  %4265 = vmatprep.mubr.msk.f32.mxu0 %vm216_vm1, %v177_v7  ;;  %v188_v24 = vld [vmem:[%s6937_s18 + $0x68] sm:$0xff]  ;;  %v189_v25 = vld [vmem:[%s6937_s18 + $0x70] sm:$0xff]  ;;  %v190_v26 = vld [vmem:[%s6937_s18 + $0x78] sm:$0xff] }
  0xaa   :  { %4301 = vmatprep.mubr.msk.f32.mxu1 %vm216_vm1, %v201_v8  ;;  %v191_v27 = vld [vmem:[%s6937_s18 + $0x80] sm:$0xff]  ;;  %v192_v28 = vld [vmem:[%s6937_s18 + $0x88] sm:$0xff]  ;;  %v193_v29 = vld [vmem:[%s6937_s18 + $0x90] sm:$0xff] }
  0xab   :  { %v194_v30 = vld [vmem:[%s6937_s18 + $0x98] sm:$0xff]  ;;  %v195_v31 = vld [vmem:[%s6937_s18 + $0xa0] sm:$0xff]  ;;  %v196_v32 = vld [vmem:[%s6937_s18 + $0xa8] sm:$0xff] }
  0xac   :  { %4266 = vmatmul.mubr.msk.f32.gmra.mrb[2].mxu0 %vm216_vm1, %v178_v9  ;;  %v197_v33 = vld [vmem:[%s6937_s18 + $0xb0] sm:$0xff]  ;;  %v198_v34 = vld [vmem:[%s6937_s18 + $0xb8] sm:$0xff]  ;;  %v5697_v35 = vld [vmem:[%s6938_s28] ss:$0 sm:$0xff]  ;;  %s5318_s18 = smov 112   ;;  %s5320_s28 = smov 32  }
  0xad   :  { %4302 = vmatmul.mubr.msk.f32.gmra.mrb[2].mxu1 %vm216_vm1, %v202_v10  ;;  %4268 = vmatprep.mubr.msk.f32.mxu0 %vm216_vm1, %v179_v11 }
  0xae   :  { %4304 = vmatprep.mubr.msk.f32.mxu1 %vm216_vm1, %v203_v12 }
  0xb0   :  { %4269 = vmatmul.mubr.msk.f32.gmra.mrb[4].mxu0 %vm216_vm1, %v180_v13 }
  0xb1   :  { %4305 = vmatmul.mubr.msk.f32.gmra.mrb[4].mxu1 %vm216_vm1, %v204_v14  ;;  %4271 = vmatprep.mubr.msk.f32.mxu0 %vm216_vm1, %v181_v15 }
  0xb2   :  { %4307 = vmatprep.mubr.msk.f32.mxu1 %vm216_vm1, %v205_v16 }
  0xb4   :  { %4272 = vmatmul.mubr.msk.f32.gmra.mrb[6].mxu0 %vm216_vm1, %v182_v17 }
  0xb5   :  { %4308 = vmatmul.mubr.msk.f32.gmra.mrb[6].mxu1 %vm216_vm1, %v206_v18  ;;  %4274 = vmatprep.mubr.msk.f32.mxu0 %vm216_vm1, %v183_v19 }
  0xb8   :  { %4275 = vmatmul.mubr.msk.f32.gmra.mrb[8].mxu0 %vm216_vm1, %v184_v20 }
  0xb9   :  { %4277 = vmatprep.mubr.msk.f32.mxu0 %vm216_vm1, %v185_v21 }
  0xbc   :  { %4278 = vmatmul.mubr.msk.f32.gmra.mrb[10].mxu0 %vm216_vm1, %v186_v22 }
  0xbd   :  { %4280 = vmatprep.mubr.msk.f32.mxu0 %vm216_vm1, %v187_v23 }
  0xc0   :  { %4281 = vmatmul.mubr.msk.f32.gmra.mrb[12].mxu0 %vm216_vm1, %v188_v24 }
  0xc1   :  { %4283 = vmatprep.mubr.msk.f32.mxu0 %vm216_vm1, %v189_v25 }
  0xc4   :  { %4284 = vmatmul.mubr.msk.f32.gmra.mrb[14].mxu0 %vm216_vm1, %v190_v26 }
  0xc5   :  { %4286 = vmatprep.mubr.msk.f32.mxu0 %vm216_vm1, %v191_v27 }
  0xc8   :  { %4287 = vmatmul.mubr.msk.f32.gmra.mrb[16].mxu0 %vm216_vm1, %v192_v28 }
  0xc9   :  { %4289 = vmatprep.mubr.msk.f32.mxu0 %vm216_vm1, %v193_v29 }
  0xcc   :  { %4290 = vmatmul.mubr.msk.f32.gmra.mrb[18].mxu0 %vm216_vm1, %v194_v30 }
  0xcd   :  { %4292 = vmatprep.mubr.msk.f32.mxu0 %vm216_vm1, %v195_v31 }
  0xd0   :  { %4293 = vmatmul.mubr.msk.f32.gmra.mrb[20].mxu0 %vm216_vm1, %v196_v32 }
  0xd1   :  { %4295 = vmatprep.mubr.msk.f32.mxu0 %vm216_vm1, %v197_v33 }
  0xd4   :  { %4296 = vmatmul.mubr.msk.f32.gmra.mrb[22].mxu0 %vm216_vm1, %v198_v34 }
 0x17b   :  { %v4264_v36 = vpop.f32.mrb[0].mxu0 }
 0x17c   :  { %v4300_v37 = vpop.f32.mrb[0].mxu1  ;;  %v5700_v38 = vadd.f32 %v4264_v36, %v5697_v35  ;;  %v383_v40 = vpop.f32.mrb[1].mxu0 }
 0x17d   :  { %v5703_v39 = vadd.f32 %v4300_v37, %v5697_v35  ;;  %v503_v41 = vpop.f32.mrb[1].mxu1  ;;  %v5706_v42 = vadd.f32 %v5697_v35, %v383_v40 }
 0x17e   :  { %v5709_v43 = vadd.f32 %v5697_v35, %v503_v41  ;;  %v3971_v44 = vmul.f32 -1.442695, %v5700_v38 }
 0x17f   :  { %v3995_v45 = vmul.f32 -1.442695, %v5703_v39  ;;  %v4267_v47 = vpop.f32.mrb[2].mxu0  ;;  %v3970_v49 = vmul.f32 -1.442695, %v5706_v42 }
 0x180   :  { %v3994_v46 = vmul.f32 -1.442695, %v5709_v43  ;;  %v4303_v48 = vpop.f32.mrb[2].mxu1  ;;  %4849 = vpow2.f32 %v3971_v44  ;;  %v5716_v50 = vadd.f32 %v4267_v47, %v5697_v35  ;;  %v393_v51 = vpop.f32.mrb[3].mxu0 }
 0x181   :  { %v513_v52 = vpop.f32.mrb[3].mxu1  ;;  %4851 = vpow2.f32 %v3995_v45  ;;  %v5719_v53 = vadd.f32 %v5697_v35, %v393_v51  ;;  %v5725_v55 = vadd.f32 %v4303_v48, %v5697_v35 }
 0x182   :  { %v5722_v54 = vadd.f32 %v5697_v35, %v513_v52  ;;  %4853 = vpow2.f32 %v3994_v46  ;;  %v3973_v60 = vmul.f32 -1.442695, %v5716_v50 }
 0x183   :  { %v3972_v56 = vmul.f32 -1.442695, %v5719_v53  ;;  %v4270_v57 = vpop.f32.mrb[4].mxu0  ;;  %4855 = vpow2.f32 %v3970_v49  ;;  %v3997_v2 = vmul.f32 -1.442695, %v5725_v55 }
 0x184   :  { %v3996_v58 = vmul.f32 -1.442695, %v5722_v54  ;;  %v5729_v59 = vpop.f32.mrb[4].mxu1  ;;  %v403_v61 = vpop.f32.mrb[5].mxu0  ;;  %v5739_v1 = vadd.f32 %v4270_v57, %v5697_v35 }
 0x185   :  { %v523_v62 = vpop.f32.mrb[5].mxu1  ;;  %4857 = vpow2.f32 %v3972_v56  ;;  %v5733_v63 = vadd.f32 %v5697_v35, %v403_v61 }
 0x186   :  { %v5736_v0 = vadd.f32 %v5697_v35, %v523_v62  ;;  %4859 = vpow2.f32 %v3996_v58  ;;  %v3975_v11 = vmul.f32 -1.442695, %v5739_v1 }
 0x187   :  { %v3974_v3 = vmul.f32 -1.442695, %v5733_v63  ;;  %v4273_v4 = vpop.f32.mrb[6].mxu0  ;;  %4861 = vpow2.f32 %v3973_v60 }
 0x188   :  { %v4309_v5 = vpop.f32.mrb[6].mxu1  ;;  %v413_v6 = vpop.f32.mrb[7].mxu0  ;;  %4863 = vpow2.f32 %v3997_v2  ;;  %v5751_v16 = vadd.f32 %v4273_v4, %v5697_v35 }
 0x189   :  { %v5744_v7 = vadd.f32 %v4309_v5, %v5697_v35  ;;  %v533_v8 = vpop.f32.mrb[7].mxu1  ;;  %4865 = vpow2.f32 %v3974_v3  ;;  %v5754_v22 = vadd.f32 %v5697_v35, %v413_v6 }
 0x18a   :  { %v5747_v9 = vadd.f32 %v5697_v35, %v533_v8  ;;  %v4850_v10 = vpop.eup %4849  ;;  %v3977_v25 = vmul.f32 -1.442695, %v5751_v16 }
 0x18b   :  { %v4852_v12 = vpop.eup %4851  ;;  %v639_v13 = vadd.f32 1.0, %v4850_v10  ;;  %v4276_v14 = vpop.f32.mrb[8].mxu0  ;;  %v3976_v33 = vmul.f32 -1.442695, %v5754_v22 }
 0x18c   :  { %v663_v15 = vadd.f32 1.0, %v4852_v12  ;;  %v423_v17 = vpop.f32.mrb[9].mxu0  ;;  %v4854_v18 = vpop.eup %4853  ;;  %v5760_v26 = vadd.f32 %v4276_v14, %v5697_v35 }
 0x18d   :  { %4867 = vrcp.f32 %v639_v13  ;;  %v4856_v19 = vpop.eup %4855  ;;  %v662_v20 = vadd.f32 1.0, %v4854_v18  ;;  %v5765_v32 = vadd.f32 %v5697_v35, %v423_v17 }
 0x18e   :  { %4869 = vpow2.f32 %v3975_v11  ;;  %v638_v29 = vadd.f32 1.0, %v4856_v19  ;;  %v3979_v37 = vmul.f32 -1.442695, %v5760_v26 }
 0x18f   :  { %v4858_v21 = vpop.eup %4857  ;;  %4871 = vrcp.f32 %v663_v15  ;;  %v5756_v23 = vpop.f32.mrb[10].mxu0  ;;  %v3978_v47 = vmul.f32 -1.442695, %v5765_v32 }
 0x190   :  { %4873 = vrcp.f32 %v662_v20  ;;  %v640_v24 = vadd.f32 1.0, %v4858_v21  ;;  %v5762_v27 = vpop.f32.mrb[11].mxu0  ;;  %v4860_v28 = vpop.eup %4859 }
 0x191   :  { %v4862_v30 = vpop.eup %4861  ;;  %v664_v31 = vadd.f32 1.0, %v4860_v28 }
 0x192   :  { %4875 = vrcp.f32 %v640_v24  ;;  %v4864_v36 = vpop.eup %4863  ;;  %v641_v45 = vadd.f32 1.0, %v4862_v30 }
 0x193   :  { %v4282_v34 = vpop.f32.mrb[12].mxu0  ;;  %4877 = vpow2.f32 %v3977_v25  ;;  %v4866_v44 = vpop.eup %4865  ;;  %v665_v49 = vadd.f32 1.0, %v4864_v36 }
 0x194   :  { %v5770_v40 = vadd.f32 %v4282_v34, %v5697_v35  ;;  %v443_v41 = vpop.f32.mrb[13].mxu0  ;;  %4879 = vrcp.f32 %v638_v29  ;;  %v642_v56 = vadd.f32 1.0, %v4866_v44 }
 0x195   :  { %v5773_v46 = vadd.f32 %v5697_v35, %v443_v41  ;;  %4881 = vrcp.f32 %v664_v31 }
 0x196   :  { %4883 = vpow2.f32 %v3976_v33 }
 0x197   :  { %v4868_v48 = vpop.eup %4867  ;;  %v4285_v51 = vpop.f32.mrb[14].mxu0  ;;  %4885 = vpow2.f32 %v3979_v37  ;;  %v5803_v37 = vadd.f32 %v5756_v23, %v5697_v35 }
 0x198   :  { %v4870_v52 = vpop.eup %4869  ;;  %v5777_v57 = vadd.f32 %v4285_v51, %v5697_v35  ;;  %768 = vrot.lane.b32.xlu1 %v4868_v48, %s5318_s18  ;;  %v453_v58 = vpop.f32.mrb[15].mxu0  ;;  %4887 = vrcp.f32 %v641_v45 }
 0x199   :  { %v4872_v60 = vpop.eup %4871  ;;  %v5781_v61 = vadd.f32 %v5697_v35, %v453_v58  ;;  %4889 = vpow2.f32 %v3978_v47  ;;  %v643_v4 = vadd.f32 1.0, %v4870_v52  ;;  %v3981_v48 = vmul.f32 -1.442695, %v5803_v37 }
 0x19a   :  { %v4874_v62 = vpop.eup %4873  ;;  %4891 = vrcp.f32 %v665_v49 }
 0x19b   :  { %814 = vrot.lane.b32.xlu0 %v4874_v62, %s5318_s18  ;;  %v4288_v2 = vpop.f32.mrb[16].mxu0  ;;  %4893 = vrcp.f32 %v642_v56 }
 0x19c   :  { %v4876_v3 = vpop.eup %4875  ;;  %v5785_v5 = vadd.f32 %v4288_v2, %v5697_v35  ;;  %816 = vrot.lane.b32.xlu1 %v4872_v60, %s5318_s18  ;;  %v463_v6 = vpop.f32.mrb[17].mxu0  ;;  %4895 = vrcp.f32 %v643_v4 }
 0x19d   :  { %v5789_v8 = vadd.f32 %v5697_v35, %v463_v6  ;;  %v4878_v10 = vpop.eup %4877 }
 0x19e   :  { %v3987_v11 = vmul.f32 -1.442695, %v5785_v5  ;;  %v4880_v12 = vpop.eup %4879  ;;  %v645_v20 = vadd.f32 1.0, %v4878_v10 }
 0x19f   :  { %v3986_v13 = vmul.f32 -1.442695, %v5789_v8  ;;  %770 = vrot.lane.b32.xlu0 %v4876_v3, %s5318_s18  ;;  %v4291_v14 = vpop.f32.mrb[18].mxu0  ;;  %v4882_v15 = vpop.eup %4881 }
 0x1a0   :  { %v5795_v17 = vadd.f32 %v4291_v14, %v5697_v35  ;;  %766 = vrot.lane.b32.xlu1 %v4880_v12, %s5318_s18  ;;  %v473_v18 = vpop.f32.mrb[19].mxu0  ;;  %v4884_v19 = vpop.eup %4883  ;;  %4897 = vpow2.f32 %v3987_v11  ;;  %v5830_v12 = vadd.f32 %v5729_v59, %v5697_v35  ;;  %v5834_v14 = vadd.f32 %v5697_v35, %v5762_v27 }
 0x1a1   :  { %v4886_v21 = vpop.eup %4885  ;;  %v644_v24 = vadd.f32 1.0, %v4884_v19  ;;  %4899 = vpow2.f32 %v3986_v13  ;;  %v5807_v45 = vadd.f32 %v5697_v35, %v473_v18  ;;  %v3998_v27 = vmul.f32 -1.442695, %v5736_v0 }
 0x1a2   :  { %v3989_v25 = vmul.f32 -1.442695, %v5795_v17  ;;  %v4888_v28 = vpop.eup %4887  ;;  %v647_v34 = vadd.f32 1.0, %v4886_v21  ;;  %v3999_v59 = vmul.f32 -1.442695, %v5830_v12 }
 0x1a3   :  { %818 = vrot.lane.b32.xlu0 %v4882_v15, %s5318_s18  ;;  %v4294_v29 = vpop.f32.mrb[20].mxu0  ;;  %v4890_v30 = vpop.eup %4889  ;;  %4901 = vrcp.f32 %v644_v24  ;;  %v3988_v60 = vmul.f32 -1.442695, %v5807_v45 }
 0x1a4   :  { %772 = vrot.lane.b32.xlu1 %v4888_v28, %s5318_s18  ;;  %v483_v31 = vpop.f32.mrb[21].mxu0  ;;  %v4892_v33 = vpop.eup %4891  ;;  %4903 = vrcp.f32 %v645_v20  ;;  %v646_v36 = vadd.f32 1.0, %v4890_v30  ;;  %v5812_v49 = vadd.f32 %v4294_v29, %v5697_v35  ;;  %v4001_v29 = vmul.f32 -1.442695, %v5744_v7 }
 0x1a5   :  { %v4894_v41 = vpop.eup %4893  ;;  %4905 = vpow2.f32 %v3989_v25  ;;  %v5815_v51 = vadd.f32 %v5697_v35, %v483_v31  ;;  %v3983_v25 = vmul.f32 -1.442695, %v5770_v40 }
 0x1a6   :  { %4907 = vrcp.f32 %v646_v36  ;;  %v4896_v23 = vpop.eup %4895  ;;  %v3991_v3 = vmul.f32 -1.442695, %v5812_v49 }
 0x1a7   :  { %774 = vrot.lane.b32.xlu0 %v4894_v41, %s5318_s18  ;;  %v4297_v44 = vpop.f32.mrb[22].mxu0  ;;  %4909 = vrcp.f32 %v647_v34  ;;  %v3990_v10 = vmul.f32 -1.442695, %v5815_v51  ;;  %v3982_v41 = vmul.f32 -1.442695, %v5773_v46 }
 0x1a8   :  { %820 = vrot.lane.b32.xlu1 %v4892_v33, %s5318_s18  ;;  %v493_v47 = vpop.f32.mrb[23].mxu0  ;;  %v5819_v62 = vadd.f32 %v4297_v44, %v5697_v35  ;;  %4911 = vpow2.f32 %v3981_v48 }
 0x1a9   :  { %v5824_v4 = vadd.f32 %v5697_v35, %v493_v47  ;;  %v3980_v35 = vmul.f32 -1.442695, %v5834_v14 }
 0x1aa   :  { %v4898_v52 = vpop.eup %4897  ;;  %v3993_v15 = vmul.f32 -1.442695, %v5819_v62 }
 0x1ab   :  { %v4900_v56 = vpop.eup %4899  ;;  %v655_v58 = vadd.f32 1.0, %v4898_v52  ;;  %v3992_v19 = vmul.f32 -1.442695, %v5824_v4  ;;  %v4000_v52 = vmul.f32 -1.442695, %v5747_v9 }
 0x1ac   :  { %776 = vrot.lane.b32.xlu1 %v4896_v23, %s5318_s18  ;;  %v654_v2 = vadd.f32 1.0, %v4900_v56 }
 0x1ad   :  { %v4902_v6 = vpop.eup %4901  ;;  %4913 = vrcp.f32 %v655_v58 }
 0x1ae   :  { %v4904_v11 = vpop.eup %4903  ;;  %4915 = vrcp.f32 %v654_v2  ;;  %778 = vrot.lane.b32.xlu0 %v4902_v6, %s5318_s18 }
 0x1af   :  { %v4906_v13 = vpop.eup %4905  ;;  %4917 = vpow2.f32 %v3988_v60 }
 0x1b0   :  { %780 = vrot.lane.b32.xlu1 %v4904_v11, %s5318_s18  ;;  %v657_v18 = vadd.f32 1.0, %v4906_v13  ;;  %4919 = vpow2.f32 %v3991_v3  ;;  %v4908_v20 = vpop.eup %4907  ;;  %v3985_v3 = vmul.f32 -1.442695, %v5777_v57  ;;  %v3984_v11 = vmul.f32 -1.442695, %v5781_v61 }
 0x1b1   :  { %4921 = vpow2.f32 %v3990_v10  ;;  %v4910_v21 = vpop.eup %4909 }
 0x1b2   :  { %4923 = vrcp.f32 %v657_v18  ;;  %782 = vrot.lane.b32.xlu0 %v4908_v20, %s5318_s18  ;;  %v4912_v24 = vpop.eup %4911 }
 0x1b3   :  { %4925 = vpow2.f32 %v3993_v15  ;;  %v649_v10 = vadd.f32 1.0, %v4912_v24 }
 0x1b4   :  { %784 = vrot.lane.b32.xlu1 %v4910_v21, %s5318_s18  ;;  %4927 = vpow2.f32 %v3992_v19 }
 0x1b5   :  { %4929 = vpow2.f32 %v3999_v59 }
 0x1b6   :  { %4931 = vpow2.f32 %v3980_v35 }
 0x1b7   :  { %v4914_v28 = vpop.eup %4913  ;;  %4933 = vpow2.f32 %v3998_v27 }
 0x1b8   :  { %v4916_v30 = vpop.eup %4915  ;;  %800 = vrot.lane.b32.xlu0 %v4914_v28, %s5318_s18  ;;  %4935 = vpow2.f32 %v3983_v25 }
 0x1b9   :  { %v4918_v31 = vpop.eup %4917  ;;  %4937 = vpow2.f32 %v4001_v29 }
 0x1ba   :  { %v4920_v33 = vpop.eup %4919  ;;  %v656_v34 = vadd.f32 1.0, %v4918_v31 }
 0x1bb   :  { %v4922_v36 = vpop.eup %4921  ;;  %v659_v44 = vadd.f32 1.0, %v4920_v33 }
 0x1bc   :  { %v4924_v47 = vpop.eup %4923  ;;  %4939 = vrcp.f32 %v656_v34  ;;  %v658_v48 = vadd.f32 1.0, %v4922_v36  ;;  %798 = vrot.lane.b32.xlu0 %v4916_v30, %s5318_s18 }
 0x1bd   :  { %v4926_v23 = vpop.eup %4925  ;;  %4941 = vrcp.f32 %v659_v44  ;;  %804 = vrot.lane.b32.xlu1 %v4924_v47, %s5318_s18 }
 0x1be   :  { %v4928_v56 = vpop.eup %4927  ;;  %4943 = vrcp.f32 %v658_v48  ;;  %v661_v58 = vadd.f32 1.0, %v4926_v23 }
 0x1bf   :  { %4945 = vpow2.f32 %v3982_v41  ;;  %v660_v60 = vadd.f32 1.0, %v4928_v56  ;;  %v4930_v2 = vpop.eup %4929 }
 0x1c0   :  { %4947 = vrcp.f32 %v661_v58  ;;  %v4932_v6 = vpop.eup %4931  ;;  %v667_v15 = vadd.f32 1.0, %v4930_v2 }
 0x1c1   :  { %4949 = vpow2.f32 %v4000_v52  ;;  %v4934_v13 = vpop.eup %4933  ;;  %v648_v19 = vadd.f32 1.0, %v4932_v6 }
 0x1c2   :  { %4951 = vrcp.f32 %v660_v60  ;;  %v4936_v18 = vpop.eup %4935  ;;  %v666_v59 = vadd.f32 1.0, %v4934_v13  ;;  %v978_v13 = vld [vmem:[%s6904_s8 + $0x8] sm:$0xff] }
 0x1c3   :  { %4953 = vpow2.f32 %v3985_v3  ;;  %v4938_v20 = vpop.eup %4937  ;;  %v651_v25 = vadd.f32 1.0, %v4936_v18  ;;  %v895_v3 = vld [vmem:[%s6939_s2 + $0x8] sm:$0xff] }
 0x1c4   :  { %4955 = vrcp.f32 %v649_v10  ;;  %v669_v30 = vadd.f32 1.0, %v4938_v20  ;;  %962 = vmatprep.mubr.f32.mxu0 %v895_v3  ;;  %v980_v20 = vld [vmem:[%s6904_s8 + $0x18] sm:$0xff] }
 0x1c5   :  { %4957 = vpow2.f32 %v3984_v11  ;;  %v977_v11 = vld [vmem:[%s6904_s8] sm:$0xff] }
 0x1c6   :  { %v4940_v21 = vpop.eup %4939  ;;  %4959 = vrcp.f32 %v667_v15  ;;  %v979_v15 = vld [vmem:[%s6904_s8 + $0x10] sm:$0xff] }
 0x1c7   :  { %v4942_v35 = vpop.eup %4941  ;;  %802 = vrot.lane.b32.xlu0 %v4940_v21, %s5318_s18  ;;  %4961 = vrcp.f32 %v648_v19  ;;  %v4407_v19 = vpack.c.bf16 %v978_v13, %v977_v11  ;;  %v4411_v21 = vpack.c.bf16 %v980_v20, %v979_v15 }
 0x1c8   :  { %v4944_v27 = vpop.eup %4943  ;;  %808 = vrot.lane.b32.xlu1 %v4942_v35, %s5318_s18  ;;  %4963 = vrcp.f32 %v666_v59  ;;  %v981_v59 = vld [vmem:[%s6904_s8 + $0x20] sm:$0xff]  ;;  %v982_v35 = vld [vmem:[%s6904_s8 + $0x28] sm:$0xff] }
 0x1c9   :  { %v4946_v24 = vpop.eup %4945  ;;  %4965 = vrcp.f32 %v651_v25  ;;  %4408 = vmatprep.subr.bf16.mxu1 %v4407_v19  ;;  %v983_v25 = vld [vmem:[%s6904_s8 + $0x30] sm:$0xff] }
 0x1ca   :  { %v4948_v28 = vpop.eup %4947  ;;  %v650_v33 = vadd.f32 1.0, %v4946_v24  ;;  %4967 = vrcp.f32 %v669_v30  ;;  %4410 = vmatpush3.bf16.msra.mxu1 %v4407_v19  ;;  %v4415_v24 = vpack.c.bf16 %v982_v35, %v981_v59  ;;  %v976_v30 = vld [vmem:[%s6940_s26 + $0x8] sm:$0xff] }
 0x1cb   :  { %v4950_v29 = vpop.eup %4949  ;;  %806 = vrot.lane.b32.xlu0 %v4944_v27, %s5318_s18  ;;  %v975_v27 = vld [vmem:[%s6940_s26] sm:$0xff]  ;;  %4412 = vmatprep.subr.bf16.mxu1 %v4411_v21 }
 0x1cc   :  { %v4952_v31 = vpop.eup %4951  ;;  %812 = vrot.lane.b32.xlu1 %v4948_v28, %s5318_s18  ;;  %v668_v36 = vadd.f32 1.0, %v4950_v29  ;;  %4969 = vrcp.f32 %v650_v33  ;;  %4326 = vmatprep.mubr.msk.f32.mxu1 %vm985_vm4, %v975_v27  ;;  %v984_v28 = vld [vmem:[%s6904_s8 + $0x38] sm:$0xff] }
 0x1cd   :  { %v4954_v34 = vpop.eup %4953  ;;  %v4419_v29 = vpack.c.bf16 %v984_v28, %v983_v25 }
 0x1ce   :  { %v4956_v41 = vpop.eup %4955  ;;  %v653_v48 = vadd.f32 1.0, %v4954_v34  ;;  %4971 = vrcp.f32 %v668_v36  ;;  %4414 = vmatpush3.bf16.msra.mxu1 %v4411_v21 }
 0x1cf   :  { %810 = vrot.lane.b32.xlu0 %v4952_v31, %s5318_s18  ;;  %v4958_v44 = vpop.eup %4957  ;;  %4416 = vmatprep.subr.bf16.mxu1 %v4415_v24 }
 0x1d0   :  { %788 = vrot.lane.b32.xlu1 %v4956_v41, %s5318_s18  ;;  %v4960_v47 = vpop.eup %4959  ;;  %v652_v56 = vadd.f32 1.0, %v4958_v44  ;;  %4973 = vrcp.f32 %v653_v48 }
 0x1d1   :  { %v4962_v23 = vpop.eup %4961 }
 0x1d2   :  { %v4964_v52 = vpop.eup %4963  ;;  %4975 = vrcp.f32 %v652_v56  ;;  %4418 = vmatpush3.bf16.msra.mxu1 %v4415_v24 }
 0x1d3   :  { %786 = vrot.lane.b32.xlu0 %v4962_v23, %s5318_s18  ;;  %v4966_v58 = vpop.eup %4965  ;;  %4420 = vmatprep.subr.bf16.mxu1 %v4419_v29 }
 0x1d4   :  { %824 = vrot.lane.b32.xlu1 %v4960_v47, %s5318_s18  ;;  %v4968_v60 = vpop.eup %4967 }
 0x1d6   :  { %v4970_v2 = vpop.eup %4969  ;;  %4422 = vmatpush3.bf16.msra.mxu1 %v4419_v29 }
 0x1d7   :  { %822 = vrot.lane.b32.xlu0 %v4964_v52, %s5318_s18 }
 0x1d8   :  { %792 = vrot.lane.b32.xlu1 %v4966_v58, %s5318_s18  ;;  %v4972_v6 = vpop.eup %4971 }
 0x1d9   :  { %4327 = vmatmul.mubr.msk.f32.vlgmr.msra.gmra.mrb[8].mxu1 %vm985_vm4, %v976_v30 }
 0x1da   :  { %v4974_v10 = vpop.eup %4973 }
 0x1db   :  { %790 = vrot.lane.b32.xlu0 %v4970_v2, %s5318_s18 }
 0x1dc   :  { %828 = vrot.lane.b32.xlu1 %v4968_v60, %s5318_s18  ;;  %v4976_v18 = vpop.eup %4975 }
 0x1df   :  { %826 = vrot.lane.b32.xlu0 %v4972_v6, %s5318_s18 }
 0x1e0   :  { %796 = vrot.lane.b32.xlu1 %v4974_v10, %s5318_s18 }
 0x1e3   :  { %794 = vrot.lane.b32.xlu0 %v4976_v18, %s5318_s18  ;;  %s5322_s18 = smov 96  }
 0x20a   :  { %v769_v31 = vpop.permute.xlu1 %768 }
 0x20b   :  { %v863_v13 = vmul.f32 %v769_v31, %v5700_v38 }
 0x20d   :  { %v815_v33 = vpop.permute.xlu0 %814 }
 0x20e   :  { %v817_v34 = vpop.permute.xlu1 %816 }
 0x211   :  { %v771_v36 = vpop.permute.xlu0 %770 }
 0x212   :  { %v767_v41 = vpop.permute.xlu1 %766 }
 0x213   :  { %v862_v3 = vmul.f32 %v767_v41, %v5706_v42 }
 0x215   :  { %v819_v44 = vpop.permute.xlu0 %818  ;;  %v4377_v19 = vpack.c.bf16 %v863_v13, %v862_v3 }
 0x216   :  { %v773_v47 = vpop.permute.xlu1 %772 }
 0x217   :  { %v865_v21 = vmul.f32 %v773_v47, %v5716_v50 }
 0x219   :  { %v775_v48 = vpop.permute.xlu0 %774 }
 0x21a   :  { %v821_v23 = vpop.permute.xlu1 %820  ;;  %v866_v50 = vmul.f32 %v775_v48, %v5733_v63 }
 0x21e   :  { %v777_v56 = vpop.permute.xlu1 %776 }
 0x21f   :  { %v867_v38 = vmul.f32 %v777_v56, %v5739_v1 }
 0x220   :  { %v779_v52 = vpop.permute.xlu0 %778 }
 0x221   :  { %v4385_v31 = vpack.c.bf16 %v867_v38, %v866_v50  ;;  %v1158_v38 = vld [vmem:[%s6906_s10] sm:$0xff]  ;;  %v1166_v50 = vld [vmem:[#allocation2 + $0x18] sm:$0xff] }
 0x222   :  { %v781_v60 = vpop.permute.xlu1 %780 }
 0x224   :  { %v783_v58 = vpop.permute.xlu0 %782 }
 0x226   :  { %v785_v15 = vpop.permute.xlu1 %784 }
 0x227   :  { %v871_v56 = vmul.f32 %v785_v15, %v5760_v26 }
 0x22a   :  { %v801_v2 = vpop.permute.xlu0 %800 }
 0x22b   :  { %v879_v10 = vmul.f32 %v801_v2, %v5785_v5  ;;  %v864_v5 = vmul.f32 %v771_v36, %v5719_v53  ;;  %v887_v53 = vmul.f32 %v817_v34, %v5703_v39 }
 0x22e   :  { %v799_v6 = vpop.permute.xlu0 %798 }
 0x22f   :  { %v878_v11 = vmul.f32 %v799_v6, %v5789_v8  ;;  %v805_v20 = vpop.permute.xlu1 %804  ;;  %v4381_v8 = vpack.c.bf16 %v865_v21, %v864_v5  ;;  %v1159_v5 = vld [vmem:[%s6906_s10 + $0x8] sm:$0xff] }
 0x230   :  { %v881_v35 = vmul.f32 %v805_v20, %v5795_v17 }
 0x231   :  { %v4375_v18 = vpack.c.bf16 %v879_v10, %v878_v11 }
 0x233   :  { %4376 = vmatprep.subr.bf16.mxu0 %v4375_v18 }
 0x234   :  { %4378 = vmatpush3.bf16.msra.mxu0 %v4377_v19 }
 0x239   :  { %v803_v59 = vpop.permute.xlu0 %802 }
 0x23a   :  { %v880_v42 = vmul.f32 %v803_v59, %v5807_v45  ;;  %v809_v27 = vpop.permute.xlu1 %808  ;;  %v869_v45 = vmul.f32 %v781_v60, %v5751_v16  ;;  %v889_v60 = vmul.f32 %v821_v23, %v5725_v55 }
 0x23b   :  { %v883_v28 = vmul.f32 %v809_v27, %v5812_v49  ;;  %v868_v49 = vmul.f32 %v779_v52, %v5754_v22 }
 0x23c   :  { %v4379_v24 = vpack.c.bf16 %v881_v35, %v880_v42 }
 0x23d   :  { %v807_v25 = vpop.permute.xlu0 %806  ;;  %v4389_v48 = vpack.c.bf16 %v869_v45, %v868_v49  ;;  %v1165_v45 = vld [vmem:[#allocation2 + $0x10] sm:$0xff] }
 0x23e   :  { %v882_v29 = vmul.f32 %v807_v25, %v5815_v51  ;;  %v813_v30 = vpop.permute.xlu1 %812  ;;  %4380 = vmatprep.subr.bf16.mxu0 %v4379_v24  ;;  %v886_v51 = vmul.f32 %v815_v33, %v5709_v43  ;;  %v1161_v24 = vld [vmem:[%s6906_s10 + $0x18] sm:$0xff]  ;;  %v1160_v25 = vld [vmem:[%s6906_s10 + $0x10] sm:$0xff] }
 0x23f   :  { %4382 = vmatpush3.bf16.msra.mxu0 %v4381_v8  ;;  %v885_v36 = vmul.f32 %v813_v30, %v5819_v62  ;;  %v870_v62 = vmul.f32 %v783_v58, %v5765_v32  ;;  %v4427_v8 = vpack.c.bf16 %v1161_v24, %v1159_v5  ;;  %v1164_v30 = vld [vmem:[#allocation2 + $0x8] sm:$0xff]  ;;  %v1169_v49 = vld [vmem:[#allocation2 + $0x30] sm:$0xff] }
 0x240   :  { %v4383_v17 = vpack.c.bf16 %v883_v28, %v882_v29  ;;  %v4391_v16 = vpack.c.bf16 %v887_v53, %v886_v51  ;;  %v4429_v28 = vpack.c.bf16 %v1160_v25, %v1158_v38  ;;  %v5319_v29 = vmov 0.0   ;;  %v1170_v53 = vld [vmem:[#allocation2 + $0x38] sm:$0xff]  ;;  %v1172_v51 = vld [vmem:[#allocation2 + $0x48] sm:$0xff] }
 0x241   :  { %v811_v41 = vpop.permute.xlu0 %810  ;;  %v4393_v22 = vpack.c.bf16 %v871_v56, %v870_v62 }
 0x242   :  { %v884_v1 = vmul.f32 %v811_v41, %v5824_v4  ;;  %v789_v47 = vpop.permute.xlu1 %788  ;;  %4384 = vmatprep.subr.bf16.mxu0 %v4383_v17  ;;  %v888_v4 = vmul.f32 %v819_v44, %v5722_v54  ;;  %v1163_v17 = vld [vmem:[#allocation2] sm:$0xff]  ;;  %v1168_v41 = vld [vmem:[#allocation2 + $0x28] sm:$0xff] }
 0x243   :  { %4386 = vmatpush3.bf16.msra.mxu0 %v4385_v31  ;;  %v873_v3 = vmul.f32 %v789_v47, %v5803_v37  ;;  %v5966_v31 = vpack.c.bf16 %v1166_v50, %v1164_v30  ;;  %v1167_v47 = vld [vmem:[#allocation2 + $0x20] sm:$0xff] }
 0x244   :  { %v4387_v63 = vpack.c.bf16 %v885_v36, %v884_v1  ;;  %v4395_v33 = vpack.c.bf16 %v889_v60, %v888_v4  ;;  %v5968_v36 = vpack.c.bf16 %v1165_v45, %v1163_v17  ;;  %v5970_v1 = vpack.c.bf16 %v1170_v53, %v1168_v41  ;;  %v1176_v60 = vld [vmem:[#allocation2 + $0x68] sm:$0xff] }
 0x245   :  { %v787_v2 = vpop.permute.xlu0 %786 }
 0x246   :  { %v825_v39 = vpop.permute.xlu1 %824  ;;  %4388 = vmatprep.subr.bf16.mxu0 %v4387_v63  ;;  %v872_v34 = vmul.f32 %v787_v2, %v5834_v14  ;;  %v1174_v63 = vld [vmem:[#allocation2 + $0x58] sm:$0xff]  ;;  %v1171_v2 = vld [vmem:[#allocation2 + $0x40] sm:$0xff] }
 0x247   :  { %4390 = vmatpush3.bf16.msra.mxu0 %v4389_v48  ;;  %v891_v55 = vmul.f32 %v825_v39, %v5830_v12  ;;  %v5975_v48 = vpack.c.bf16 %v1169_v49, %v1167_v47  ;;  %v5978_v56 = vpack.c.bf16 %v1174_v63, %v1172_v51  ;;  %v1178_v39 = vld [vmem:[#allocation2 + $0x78] sm:$0xff] }
 0x248   :  { %4392 = vmatprep.subr.bf16.mxu0 %v4391_v16  ;;  %v4397_v23 = vpack.c.bf16 %v873_v3, %v872_v34  ;;  %v1173_v16 = vld [vmem:[#allocation2 + $0x50] sm:$0xff]  ;;  %v5984_v4 = vpack.c.bf16 %v1178_v39, %v1176_v60 }
 0x249   :  { %v823_v43 = vpop.permute.xlu0 %822  ;;  %v5981_v62 = vpack.c.bf16 %v1173_v16, %v1171_v2  ;;  %v1177_v34 = vld [vmem:[#allocation2 + $0x70] sm:$0xff] }
 0x24a   :  { %v890_v52 = vmul.f32 %v823_v43, %v5736_v0  ;;  %v793_v26 = vpop.permute.xlu1 %792 }
 0x24b   :  { %4394 = vmatpush3.bf16.msra.mxu0 %v4393_v22  ;;  %v875_v54 = vmul.f32 %v793_v26, %v5770_v40  ;;  %v1175_v22 = vld [vmem:[#allocation2 + $0x60] sm:$0xff] }
 0x24c   :  { %4396 = vmatprep.subr.bf16.mxu0 %v4395_v33  ;;  %v4399_v58 = vpack.c.bf16 %v891_v55, %v890_v52  ;;  %v5987_v43 = vpack.c.bf16 %v1177_v34, %v1175_v22  ;;  %v4006_v33 = vld [vmem:[%s6905_s9] ss:$0 sm:$0xff] }
 0x24d   :  { %v791_v32 = vpop.permute.xlu0 %790 }
 0x24e   :  { %v874_v44 = vmul.f32 %v791_v32, %v5773_v46  ;;  %v829_v6 = vpop.permute.xlu1 %828  ;;  %v894_v46 = vld [vmem:[%s6939_s2] sm:$0xff] }
 0x24f   :  { %4398 = vmatpush3.bf16.msra.mxu0 %v4397_v23  ;;  %v893_v0 = vmul.f32 %v829_v6, %v5744_v7  ;;  %v897_v7 = vld [vmem:[%s6939_s2 + $0x18] sm:$0xff]  ;;  %v1181_v23 = vlaneseq }
 0x250   :  { %v4401_v14 = vpack.c.bf16 %v875_v54, %v874_v44  ;;  %4400 = vmatprep.subr.bf16.mxu0 %v4399_v58  ;;  %v1162_v54 = vld [vmem:[%s6907_s11] sm:$0x3]  ;;  %s5321_s11 = smov 64  }
 0x251   :  { %v827_v10 = vpop.permute.xlu0 %826  ;;  %v6017_v32 = vshrl.u32 %v1181_v23, 7 }
 0x252   :  { %v892_v37 = vmul.f32 %v827_v10, %v5747_v9  ;;  %v797_v11 = vpop.permute.xlu1 %796  ;;  %v896_v9 = vld [vmem:[%s6939_s2 + $0x10] sm:$0xff] }
 0x253   :  { %4402 = vmatpush3.bf16.msra.mxu0 %v4401_v14  ;;  %v877_v15 = vmul.f32 %v797_v11, %v5777_v57  ;;  %v973_v57 = vld [vmem:[%s6941_s15] sm:$0xff]  ;;  %v6020_v58 = vsub.s32 0, %v6017_v32  ;;  %v6026_v44 = vsub.s32 1, %v6017_v32 }
 0x254   :  { %v4403_v12 = vpack.c.bf16 %v893_v0, %v892_v37 }
 0x255   :  { %v795_v13 = vpop.permute.xlu0 %794  ;;  %v1184_v6 = vrot.slane %v1162_v54, %v6020_v58  ;;  %v1188_v14 = vrot.slane %v1162_v54, %v6026_v44 }
 0x256   :  { %v876_v18 = vmul.f32 %v795_v13, %v5781_v61  ;;  %4404 = vmatprep.subr.bf16.mxu0 %v4403_v12  ;;  %v974_v61 = vld [vmem:[%s6941_s15 + $0x8] sm:$0xff] }
 0x257   :  { %v4423_v19 = vpack.c.bf16 %v974_v61, %v973_v57 }
 0x258   :  { %v4405_v40 = vpack.c.bf16 %v877_v15, %v876_v18 }
 0x259   :  { %4424 = vmatprep.subr.bf16.mxu1 %v4423_v19 }
 0x25a   :  { %4406 = vmatpush3.bf16.msra.mxu0 %v4405_v40  ;;  %4426 = vmatpush3.bf16.msra.mxu1 %v4423_v19 }
 0x25b   :  { %4428 = vmatprep.subr.bf16.mxu1 %v4427_v8  ;;  %4432 = vmatprep.subr.bf16.mxu0 %v5966_v31 }
 0x25d   :  { %963 = vmatmul.mubr.f32.vlgmr.msra.gmra.mrb[24].mxu0 %v894_v46 }
 0x25e   :  { %967 = vmatprep.mubr.f32.mxu0 %v897_v7  ;;  %4434 = vmatpush1.bf16.msra.mxu0 %v5968_v36 }
 0x25f   :  { %4436 = vmatprep.subr.bf16.mxu0 %v5970_v1 }
 0x261   :  { %968 = vmatmul.mubr.f32.gmra.mrb[26].mxu0 %v896_v9 }
 0x262   :  { %1425 = vmatprep.mubr.f32.mxu0 %v5319_v29  ;;  %4438 = vmatpush1.bf16.msra.mxu0 %v5975_v48 }
 0x263   :  { %4440 = vmatprep.subr.bf16.mxu0 %v5978_v56 }
 0x266   :  { %4442 = vmatpush1.bf16.msra.mxu0 %v5981_v62 }
 0x267   :  { %4444 = vmatprep.subr.bf16.mxu0 %v5984_v4 }
 0x26a   :  { %4446 = vmatpush1.bf16.msra.mxu0 %v5987_v43 }
 0x26b   :  { %4464 = vmatprep.subr.bf16.mxu0 %v5966_v31 }
 0x26d   :  { %1426 = vmatmul.mubr.f32.vlgmr.msra.gmra.mrb[28].mxu0 %v5319_v29 }
 0x26e   :  { %4466 = vmatpush1.bf16.msra.mxu0 %v5968_v36  ;;  %1622 = vmatprep.mubr.f32.mxu0 %v5319_v29 }
 0x26f   :  { %4468 = vmatprep.subr.bf16.mxu0 %v5970_v1 }
 0x272   :  { %4470 = vmatpush1.bf16.msra.mxu0 %v5975_v48 }
 0x273   :  { %4472 = vmatprep.subr.bf16.mxu0 %v5978_v56 }
 0x276   :  { %4474 = vmatpush1.bf16.msra.mxu0 %v5981_v62 }
 0x277   :  { %4476 = vmatprep.subr.bf16.mxu0 %v5984_v4 }
 0x27a   :  { %4478 = vmatpush1.bf16.msra.mxu0 %v5987_v43 }
 0x27b   :  { %4496 = vmatprep.subr.bf16.mxu0 %v5966_v31 }
 0x330   :  { %v4117_v20 = vpop.f32.mrb[24].mxu0 }
 0x331   :  { %v4118_v21 = vpop.f32.mrb[25].mxu0 }
 0x332   :  { %v4119_v59 = vadd.f32 %v4118_v21, %v4117_v20 }
 0x334   :  { %v4120_v35 = vpop.f32.mrb[26].mxu0  ;;  %4333 = vmatprep.mubr.msk.f32.mxu1 %vm1067_vm5, %v4119_v59 }
 0x335   :  { %v4121_v42 = vpop.f32.mrb[27].mxu0 }
 0x336   :  { %v4122_v27 = vadd.f32 %v4121_v42, %v4120_v35 }
 0x338   :  { %4334 = vmatmul.mubr.msk.f32.vlgmr.msra.gmra.mrb[8].mxu1 %vm1067_vm5, %v4122_v27  ;;  %v1179_v27 = vld [vmem:[%s6909_s13] sm:$0x3] }
 0x339   :  { %4430 = vmatpush1.bf16.msra.mxu1 %v4429_v28  ;;  %1261 = vmatprep.mubr.f32.mxu1 %v5319_v29  ;;  %v6054_v5 = vrot.slane %v1179_v27, %v6020_v58  ;;  %v6065_v47 = vrot.slane %v1179_v27, %v6026_v44 }
 0x33a   :  { %4448 = vmatprep.subr.bf16.mxu1 %v5966_v31 }
 0x340   :  { %v1427_v10 = vpop.f32.mrb[28].mxu0 }
 0x341   :  { %v1429_v13 = vpop.f32.mrb[29].mxu0  ;;  %v1428_v38 = vadd.f32 %v1427_v10, %v6054_v5 }
 0x342   :  { %v1430_v51 = vadd.f32 %v1429_v13, %v6065_v47 }
 0x40b   :  { %v4335_v52 = vpop.f32.mrb[8].mxu1 }
 0x40c   :  { %v1140_v26 = vpop.f32.mrb[9].mxu1  ;;  %v1157_v55 = vadd.f32 %v4335_v52, %v4006_v33 }
 0x40d   :  { %v1156_v3 = vadd.f32 %v4006_v33, %v1140_v26 }
 0x40f   :  { %4007 = vmatmul.mubr.msk.f32.vlgmr.msra.gmra.mrb[10].mxu1 %vm1067_vm5, %v1156_v3 }
 0x410   :  { %1267 = vmatprep.mubr.f32.mxu1 %v5319_v29  ;;  %4450 = vmatpush1.bf16.msra.mxu1 %v5968_v36 }
 0x411   :  { %4452 = vmatprep.subr.bf16.mxu1 %v5970_v1 }
 0x413   :  { %4008 = vmatmul.mubr.msk.f32.gmra.mrb[12].mxu1 %vm1067_vm5, %v1157_v55 }
 0x414   :  { %4454 = vmatpush1.bf16.msra.mxu1 %v5975_v48  ;;  %1519 = vmatprep.mubr.f32.mxu1 %v5319_v29 }
 0x415   :  { %4456 = vmatprep.subr.bf16.mxu1 %v5978_v56 }
 0x418   :  { %4458 = vmatpush1.bf16.msra.mxu1 %v5981_v62 }
 0x419   :  { %4460 = vmatprep.subr.bf16.mxu1 %v5984_v4 }
 0x41c   :  { %4462 = vmatpush1.bf16.msra.mxu1 %v5987_v43 }
 0x41d   :  { %4480 = vmatprep.subr.bf16.mxu1 %v5966_v31 }
 0x4e2   :  { %v1263_v0 = vpop.f32.mrb[10].mxu1 }
 0x4e3   :  { %v6030_v37 = vadd.f32 %v1263_v0, %v1184_v6  ;;  %v1265_v11 = vpop.f32.mrb[11].mxu1 }
 0x4e4   :  { %v6032_v12 = vadd.f32 %v1265_v11, %v1188_v14 }
 0x4e5   :  { %1317 = vrot.lane.b32.xlu1 %v6030_v37, %s5320_s28 }
 0x4e6   :  { %v1269_v15 = vpop.f32.mrb[12].mxu1 }
 0x4e7   :  { %v6036_v18 = vadd.f32 %v1269_v15, %v1184_v6  ;;  %v1271_v40 = vpop.f32.mrb[13].mxu1 }
 0x4e8   :  { %v1272_v46 = vadd.f32 %v1271_v40, %v1188_v14 }
 0x4e9   :  { %1331 = vrot.lane.b32.xlu1 %v6030_v37, %s5321_s11  ;;  %v1276_v7 = vrot.slane %v6036_v18, 6  ;;  %v1280_v9 = vrot.slane %v6036_v18, 2 }
 0x4ea   :  { %v1277_v57 = vrot.slane %v1272_v46, 6  ;;  %v1281_v61 = vrot.slane %v1272_v46, 2 }
 0x4eb   :  { %v1295_v19 = vsel %vm1294_vm6, %v1276_v7, %v1280_v9 }
 0x4ec   :  { %v1298_v20 = vsel %vm1297_vm7, %v1295_v19, %v1276_v7  ;;  %v1296_v21 = vsel %vm1294_vm6, %v1277_v57, %v1281_v61 }
 0x4ed   :  { %v1301_v59 = vsel %vm1300_vm8, %v1298_v20, %v1280_v9  ;;  %v1299_v35 = vsel %vm1297_vm7, %v1296_v21, %v1277_v57 }
 0x4ee   :  { %1311 = vrot.lane.b32.xlu0 %v1301_v59, %s5321_s11  ;;  %v1302_v42 = vsel %vm1300_vm8, %v1299_v35, %v1281_v61 }
 0x4f2   :  { %1325 = vrot.lane.b32.xlu0 %v1302_v42, %s5322_s18 }
 0x557   :  { %v1318_v25 = vpop.permute.xlu1 %1317 }
 0x55b   :  { %v1332_v49 = vpop.permute.xlu1 %1331 }
 0x55c   :  { %v6069_v16 = vsel %vm1337_vm9, %v1332_v49, %v1302_v42 }
 0x560   :  { %v1312_v24 = vpop.permute.xlu0 %1311 }
 0x561   :  { %v1338_v8 = vsel %vm1337_vm9, %v6030_v37, %v1312_v24 }
 0x562   :  { %v1340_v30 = vsel %vm985_vm4, %v1338_v8, %v1318_v25 }
 0x564   :  { %v1326_v28 = vpop.permute.xlu0 %1325 }
 0x565   :  { %v6061_v50 = vsel %vm1342_vm10, %v1340_v30, %v1326_v28 }
 0x566   :  { %v1432_v17 = vadd.f32 %v1428_v38, %v6061_v50 }
 0x568   :  { %v4009_v45 = vmul.f32 -1.442695, %v1432_v17 }
 0x56a   :  { %4977 = vpow2.f32 %v4009_v45 }
 0x574   :  { %v4978_v41 = vpop.eup %4977 }
 0x575   :  { %v1436_v53 = vadd.f32 1.0, %v4978_v41 }
 0x577   :  { %4979 = vrcp.f32 %v1436_v53 }
 0x581   :  { %v4980_v63 = vpop.eup %4979 }
 0x582   :  { %v1439_v2 = vmul.f32 %v4980_v63, %v1430_v51  ;;  %v1442_v22 = vsub.f32 1.0, %v4980_v63  ;;  %v1448_v33 = vmul.f32 0.0, %v4980_v63 }
 0x584   :  { %v1440_v60 = vadd.f32 %v1439_v2, %v6069_v16 }
 0x586   :  { %4981 = vtanh.f32 %v1440_v60 }
 0x590   :  { %v4982_v39 = vpop.eup %4981 }
 0x591   :  { %1444 = vrot.lane.b32.xlu0 %v4982_v39, %s5321_s11 }
 0x603   :  { %v1445_v34 = vpop.permute.xlu0 %1444 }
 0x604   :  { %v1447_v52 = vmul.f32 %v1445_v34, %v1442_v22 }
 0x606   :  { %v6073_v26 = vadd.f32 %v1448_v33, %v1447_v52 }
 0x608   :  { %1451 = vrot.lane.b32.xlu1 %v6073_v26, %s5321_s11  ;;  %v1548_v61 = vrot.slane %v6073_v26, 6 }
 0x67a   :  { %v1452_v3 = vpop.permute.xlu1 %1451 }
 0x67b   :  { %4010 = vmatmul.mubr.msk.f32.vlgmr.msra.gmra.mrb[14].mxu1 %vm985_vm4, %v1452_v3 }
 0x67c   :  { %4482 = vmatpush1.bf16.msra.mxu1 %v5968_v36  ;;  %1725 = vmatprep.mubr.f32.mxu1 %v5319_v29 }
 0x67d   :  { %4484 = vmatprep.subr.bf16.mxu1 %v5970_v1 }
 0x680   :  { %4486 = vmatpush1.bf16.msra.mxu1 %v5975_v48 }
 0x681   :  { %4488 = vmatprep.subr.bf16.mxu1 %v5978_v56 }
 0x684   :  { %4490 = vmatpush1.bf16.msra.mxu1 %v5981_v62 }
 0x685   :  { %4492 = vmatprep.subr.bf16.mxu1 %v5984_v4 }
 0x688   :  { %4494 = vmatpush1.bf16.msra.mxu1 %v5987_v43 }
 0x689   :  { %4512 = vmatprep.subr.bf16.mxu1 %v5966_v31 }
 0x74e   :  { %v1521_v55 = vpop.f32.mrb[14].mxu1 }
 0x74f   :  { %v1522_v23 = vadd.f32 %v1521_v55, %v6054_v5  ;;  %v1523_v54 = vpop.f32.mrb[15].mxu1 }
 0x750   :  { %v1524_v13 = vadd.f32 %v1523_v54, %v6065_v47 }
 0x751   :  { %v1527_v6 = vrot.slane %v1522_v23, 6 }
 0x752   :  { %v1537_v15 = vrot.slane %v1524_v13, 6 }
 0x753   :  { %v1529_v14 = vadd.f32 %v1527_v6, %v6061_v50 }
 0x755   :  { %v4011_v10 = vmul.f32 -1.442695, %v1529_v14 }
 0x757   :  { %4983 = vpow2.f32 %v4011_v10 }
 0x761   :  { %v4984_v0 = vpop.eup %4983 }
 0x762   :  { %v1533_v11 = vadd.f32 1.0, %v4984_v0 }
 0x764   :  { %4985 = vrcp.f32 %v1533_v11 }
 0x76e   :  { %v4986_v40 = vpop.eup %4985 }
 0x76f   :  { %v1539_v46 = vmul.f32 %v4986_v40, %v1537_v15  ;;  %v1542_v57 = vsub.f32 1.0, %v4986_v40  ;;  %v1550_v21 = vmul.f32 %v4986_v40, %v1548_v61 }
 0x771   :  { %v1540_v7 = vadd.f32 %v1539_v46, %v6069_v16 }
 0x773   :  { %4987 = vtanh.f32 %v1540_v7 }
 0x77d   :  { %v4988_v9 = vpop.eup %4987 }
 0x77e   :  { %1544 = vrot.lane.b32.xlu0 %v4988_v9, %s5321_s11 }
 0x7f0   :  { %v1545_v19 = vpop.permute.xlu0 %1544 }
 0x7f1   :  { %v1547_v20 = vmul.f32 %v1545_v19, %v1542_v57  ;;  %v1286_v19 = vrot.slane %v6030_v37, 6 }
 0x7f3   :  { %v6093_v59 = vadd.f32 %v1550_v21, %v1547_v20  ;;  %v1287_v20 = vrot.slane %v6032_v12, 6  ;;  %v1291_v21 = vrot.slane %v6032_v12, 2 }
 0x7f5   :  { %v1553_v35 = vrot.slane %v6093_v59, 2  ;;  %v1651_v60 = vrot.slane %v6093_v59, 6  ;;  %v2162_v52 = vsel %vm1294_vm6, %v6073_v26, %v6093_v59 }
 0x7f7   :  { %1554 = vrot.lane.b32.xlu1 %v1553_v35, %s5321_s11 }
 0x869   :  { %v1555_v42 = vpop.permute.xlu1 %1554 }
 0x86a   :  { %4012 = vmatmul.mubr.msk.f32.vlgmr.msra.gmra.mrb[30].mxu0 %vm985_vm4, %v1555_v42 }
 0x86b   :  { %4498 = vmatpush1.bf16.msra.mxu0 %v5968_v36  ;;  %1828 = vmatprep.mubr.f32.mxu0 %v5319_v29 }
 0x86c   :  { %4500 = vmatprep.subr.bf16.mxu0 %v5970_v1 }
 0x86f   :  { %4502 = vmatpush1.bf16.msra.mxu0 %v5975_v48 }
 0x870   :  { %4504 = vmatprep.subr.bf16.mxu0 %v5978_v56 }
 0x873   :  { %4506 = vmatpush1.bf16.msra.mxu0 %v5981_v62 }
 0x874   :  { %4508 = vmatprep.subr.bf16.mxu0 %v5984_v4 }
 0x877   :  { %4510 = vmatpush1.bf16.msra.mxu0 %v5987_v43 }
 0x878   :  { %4528 = vmatprep.subr.bf16.mxu0 %v5966_v31 }
 0x93d   :  { %v1624_v27 = vpop.f32.mrb[30].mxu0 }
 0x93e   :  { %v1625_v24 = vadd.f32 %v1624_v27, %v6054_v5  ;;  %v1626_v8 = vpop.f32.mrb[31].mxu0 }
 0x93f   :  { %v1627_v45 = vadd.f32 %v1626_v8, %v6065_v47 }
 0x940   :  { %v1630_v38 = vrot.slane %v1625_v24, 4  ;;  %v1304_v24 = vsel %vm1294_vm6, %v1287_v20, %v1291_v21 }
 0x941   :  { %v1640_v41 = vrot.slane %v1627_v45, 4  ;;  %v1306_v8 = vsel %vm1297_vm7, %v1304_v24, %v1287_v20 }
 0x942   :  { %v1632_v25 = vadd.f32 %v1630_v38, %v6061_v50 }
 0x944   :  { %v4013_v28 = vmul.f32 -1.442695, %v1632_v25 }
 0x946   :  { %4989 = vpow2.f32 %v4013_v28 }
 0x950   :  { %v4990_v30 = vpop.eup %4989 }
 0x951   :  { %v1636_v17 = vadd.f32 1.0, %v4990_v30 }
 0x953   :  { %4991 = vrcp.f32 %v1636_v17 }
 0x95d   :  { %v4992_v53 = vpop.eup %4991 }
 0x95e   :  { %v1642_v49 = vmul.f32 %v4992_v53, %v1640_v41  ;;  %v1645_v2 = vsub.f32 1.0, %v4992_v53  ;;  %v1653_v22 = vmul.f32 %v4992_v53, %v1651_v60 }
 0x960   :  { %v1643_v51 = vadd.f32 %v1642_v49, %v6069_v16 }
 0x962   :  { %4993 = vtanh.f32 %v1643_v51 }
 0x96c   :  { %v4994_v63 = vpop.eup %4993 }
 0x96d   :  { %1647 = vrot.lane.b32.xlu0 %v4994_v63, %s5321_s11 }
 0x9df   :  { %v1648_v39 = vpop.permute.xlu0 %1647 }
 0x9e0   :  { %v1650_v34 = vmul.f32 %v1648_v39, %v1645_v2 }
 0x9e2   :  { %v6115_v33 = vadd.f32 %v1653_v22, %v1650_v34 }
 0x9e4   :  { %v1656_v3 = vrot.slane %v6115_v33, 4  ;;  %v2163_v55 = vsel %vm1297_vm7, %v2162_v52, %v6115_v33  ;;  %v1754_v7 = vrot.slane %v6115_v33, 6 }
 0x9e6   :  { %1657 = vrot.lane.b32.xlu1 %v1656_v3, %s5321_s11 }
 0xa58   :  { %v1658_v23 = vpop.permute.xlu1 %1657 }
 0xa59   :  { %4014 = vmatmul.mubr.msk.f32.vlgmr.msra.gmra.mrb[16].mxu1 %vm985_vm4, %v1658_v23 }
 0xa5a   :  { %4514 = vmatpush1.bf16.msra.mxu1 %v5968_v36  ;;  %1923 = vmatprep.mubr.f32.mxu1 %v5319_v29 }
 0xa5b   :  { %4516 = vmatprep.subr.bf16.mxu1 %v5970_v1 }
 0xa5e   :  { %4518 = vmatpush1.bf16.msra.mxu1 %v5975_v48 }
 0xa5f   :  { %4520 = vmatprep.subr.bf16.mxu1 %v5978_v56 }
 0xa62   :  { %4522 = vmatpush1.bf16.msra.mxu1 %v5981_v62 }
 0xa63   :  { %4524 = vmatprep.subr.bf16.mxu1 %v5984_v4 }
 0xa66   :  { %4526 = vmatpush1.bf16.msra.mxu1 %v5987_v43 }
 0xa67   :  { %4544 = vmatprep.subr.bf16.mxu1 %v5966_v31 }
 0xb2c   :  { %v1727_v54 = vpop.f32.mrb[16].mxu1 }
 0xb2d   :  { %v1728_v6 = vadd.f32 %v1727_v54, %v6054_v5  ;;  %v1729_v14 = vpop.f32.mrb[17].mxu1 }
 0xb2e   :  { %v1730_v40 = vadd.f32 %v1729_v14, %v6065_v47 }
 0xb2f   :  { %v1733_v10 = vrot.slane %v1728_v6, 2 }
 0xb30   :  { %v1743_v46 = vrot.slane %v1730_v40, 2 }
 0xb31   :  { %v1735_v0 = vadd.f32 %v1733_v10, %v6061_v50  ;;  %v1290_v50 = vrot.slane %v6030_v37, 2  ;;  %v1308_v37 = vsel %vm1300_vm8, %v1306_v8, %v1291_v21 }
 0xb33   :  { %v4015_v11 = vmul.f32 -1.442695, %v1735_v0  ;;  %v1303_v35 = vsel %vm1294_vm6, %v1286_v19, %v1290_v50 }
 0xb34   :  { %v1305_v27 = vsel %vm1297_vm7, %v1303_v35, %v1286_v19 }
 0xb35   :  { %4995 = vpow2.f32 %v4015_v11 }
 0xb3f   :  { %v4996_v13 = vpop.eup %4995 }
 0xb40   :  { %v1739_v15 = vadd.f32 1.0, %v4996_v13 }
 0xb42   :  { %4997 = vrcp.f32 %v1739_v15 }
 0xb4c   :  { %v4998_v9 = vpop.eup %4997 }
 0xb4d   :  { %v1745_v57 = vmul.f32 %v4998_v9, %v1743_v46  ;;  %v1756_v31 = vmul.f32 %v4998_v9, %v1754_v7  ;;  %v1748_v12 = vsub.f32 1.0, %v4998_v9 }
 0xb4f   :  { %v1746_v61 = vadd.f32 %v1745_v57, %v6069_v16  ;;  %v1307_v16 = vsel %vm1300_vm8, %v1305_v27, %v1290_v50 }
 0xb51   :  { %4999 = vtanh.f32 %v1746_v61 }
 0xb5b   :  { %v5000_v42 = vpop.eup %4999 }
 0xb5c   :  { %1750 = vrot.lane.b32.xlu0 %v5000_v42, %s5321_s11 }
 0xb60   :  { %1313 = vrot.lane.b32.xlu0 %v1307_v16, %s5321_s11 }
 0xb64   :  { %1327 = vrot.lane.b32.xlu0 %v1308_v37, %s5322_s18 }
 0xbce   :  { %v1751_v38 = vpop.permute.xlu0 %1750 }
 0xbcf   :  { %v1753_v25 = vmul.f32 %v1751_v38, %v1748_v12 }
 0xbd1   :  { %v1757_v28 = vadd.f32 %v1756_v31, %v1753_v25 }
 0xbd2   :  { %v1314_v41 = vpop.permute.xlu0 %1313 }
 0xbd3   :  { %v6152_v30 = vrot.slane %v1757_v28, 6  ;;  %v6155_v17 = vsel %vm1300_vm8, %v2163_v55, %v1757_v28  ;;  %v1339_v49 = vsel %vm1337_vm9, %v6036_v18, %v1314_v41 }
 0xbd5   :  { %1760 = vrot.lane.b32.xlu1 %v6152_v30, %s5321_s11 }
 0xbd6   :  { %v1328_v2 = vpop.permute.xlu0 %1327 }
 0xbd9   :  { %1319 = vrot.lane.b32.xlu1 %v6036_v18, %s5320_s28 }
 0xbdd   :  { %1333 = vrot.lane.b32.xlu1 %v6036_v18, %s5321_s11 }
 0xc47   :  { %v1761_v45 = vpop.permute.xlu1 %1760 }
 0xc48   :  { %4016 = vmatmul.mubr.msk.f32.vlgmr.msra.gmra.mrb[32].mxu0 %vm985_vm4, %v1761_v45 }
 0xc49   :  { %4530 = vmatpush1.bf16.msra.mxu0 %v5968_v36  ;;  %2026 = vmatprep.mubr.f32.mxu0 %v5319_v29 }
 0xc4a   :  { %4532 = vmatprep.subr.bf16.mxu0 %v5970_v1 }
 0xc4b   :  { %v1320_v53 = vpop.permute.xlu1 %1319 }
 0xc4c   :  { %v1341_v51 = vsel %vm985_vm4, %v1339_v49, %v1320_v53 }
 0xc4d   :  { %4534 = vmatpush1.bf16.msra.mxu0 %v5975_v48  ;;  %v6177_v34 = vsel %vm1342_vm10, %v1341_v51, %v1328_v2 }
 0xc4e   :  { %4536 = vmatprep.subr.bf16.mxu0 %v5978_v56 }
 0xc4f   :  { %v1334_v54 = vpop.permute.xlu1 %1333 }
 0xc50   :  { %v6182_v10 = vsel %vm1337_vm9, %v1334_v54, %v1308_v37 }
 0xc51   :  { %4538 = vmatpush1.bf16.msra.mxu0 %v5981_v62 }
 0xc52   :  { %4540 = vmatprep.subr.bf16.mxu0 %v5984_v4 }
 0xc55   :  { %4542 = vmatpush1.bf16.msra.mxu0 %v5987_v43 }
 0xd1b   :  { %v1830_v63 = vpop.f32.mrb[32].mxu0 }
 0xd1c   :  { %v1831_v39 = vadd.f32 %v1830_v63, %v6054_v5  ;;  %v1832_v22 = vpop.f32.mrb[33].mxu0 }
 0xd1d   :  { %v1833_v18 = vadd.f32 %v1832_v22, %v6065_v47 }
 0xd1e   :  { %v1835_v52 = vadd.f32 %v1831_v39, %v6177_v34 }
 0xd20   :  { %v4017_v3 = vmul.f32 -1.442695, %v1835_v52 }
 0xd22   :  { %5001 = vpow2.f32 %v4017_v3 }
 0xd2c   :  { %v5002_v55 = vpop.eup %5001 }
 0xd2d   :  { %v1839_v23 = vadd.f32 1.0, %v5002_v55 }
 0xd2f   :  { %5003 = vrcp.f32 %v1839_v23 }
 0xd39   :  { %v5004_v6 = vpop.eup %5003 }
 0xd3a   :  { %v1842_v14 = vmul.f32 %v5004_v6, %v1833_v18  ;;  %v1845_v13 = vsub.f32 1.0, %v5004_v6  ;;  %v1852_v40 = vmul.f32 %v5004_v6, %v6152_v30 }
 0xd3c   :  { %v1843_v0 = vadd.f32 %v1842_v14, %v6182_v10 }
 0xd3e   :  { %5005 = vtanh.f32 %v1843_v0 }
 0xd48   :  { %v5006_v11 = vpop.eup %5005 }
 0xd49   :  { %1847 = vrot.lane.b32.xlu0 %v5006_v11, %s5321_s11 }
 0xdbb   :  { %v1848_v15 = vpop.permute.xlu0 %1847 }
 0xdbc   :  { %v1850_v46 = vmul.f32 %v1848_v15, %v1845_v13 }
 0xdbe   :  { %v6187_v7 = vadd.f32 %v1852_v40, %v1850_v46 }
 0xdc0   :  { %1855 = vrot.lane.b32.xlu1 %v6187_v7, %s5321_s11  ;;  %v1952_v42 = vrot.slane %v6187_v7, 6 }
 0xe32   :  { %v1856_v9 = vpop.permute.xlu1 %1855 }
 0xe33   :  { %4018 = vmatmul.mubr.msk.f32.vlgmr.msra.gmra.mrb[18].mxu1 %vm985_vm4, %v1856_v9 }
 0xe34   :  { %4546 = vmatpush1.bf16.msra.mxu1 %v5968_v36  ;;  %2129 = vmatprep.mubr.f32.mxu1 %v5319_v29 }
 0xe35   :  { %4548 = vmatprep.subr.bf16.mxu1 %v5970_v1 }
 0xe38   :  { %4550 = vmatpush1.bf16.msra.mxu1 %v5975_v48 }
 0xe39   :  { %4552 = vmatprep.subr.bf16.mxu1 %v5978_v56 }
 0xe3c   :  { %4554 = vmatpush1.bf16.msra.mxu1 %v5981_v62 }
 0xe3d   :  { %4556 = vmatprep.subr.bf16.mxu1 %v5984_v4 }
 0xe40   :  { %4558 = vmatpush1.bf16.msra.mxu1 %v5987_v43 }
 0xf06   :  { %v1925_v57 = vpop.f32.mrb[18].mxu1 }
 0xf07   :  { %v1926_v31 = vadd.f32 %v1925_v57, %v6054_v5  ;;  %v1927_v61 = vpop.f32.mrb[19].mxu1 }
 0xf08   :  { %v1928_v48 = vadd.f32 %v1927_v61, %v6065_v47 }
 0xf09   :  { %v1931_v19 = vrot.slane %v1926_v31, 6 }
 0xf0a   :  { %v1941_v56 = vrot.slane %v1928_v48, 6 }
 0xf0b   :  { %v1933_v36 = vadd.f32 %v1931_v19, %v6177_v34 }
 0xf0d   :  { %v4019_v50 = vmul.f32 -1.442695, %v1933_v36 }
 0xf0f   :  { %5007 = vpow2.f32 %v4019_v50 }
 0xf19   :  { %v5008_v1 = vpop.eup %5007 }
 0xf1a   :  { %v1937_v20 = vadd.f32 1.0, %v5008_v1 }
 0xf1c   :  { %5009 = vrcp.f32 %v1937_v20 }
 0xf26   :  { %v5010_v62 = vpop.eup %5009 }
 0xf27   :  { %v1943_v21 = vmul.f32 %v5010_v62, %v1941_v56  ;;  %v1946_v35 = vsub.f32 1.0, %v5010_v62  ;;  %v1954_v16 = vmul.f32 %v5010_v62, %v1952_v42  ;;  %v2208_v42 = vld [vmem:[#allocation5 + $0x28] sm:$0xff] }
 0xf29   :  { %v1944_v4 = vadd.f32 %v1943_v21, %v6182_v10  ;;  %v2206_v21 = vld [vmem:[#allocation5 + $0x18] sm:$0xff] }
 0xf2b   :  { %5011 = vtanh.f32 %v1944_v4  ;;  %v2203_v4 = vld [vmem:[#allocation5] sm:$0xff] }
 0xf35   :  { %v5012_v43 = vpop.eup %5011 }
 0xf36   :  { %1948 = vrot.lane.b32.xlu0 %v5012_v43, %s5321_s11 }
 0xfa8   :  { %v1949_v27 = vpop.permute.xlu0 %1948 }
 0xfa9   :  { %v1951_v24 = vmul.f32 %v1949_v27, %v1946_v35  ;;  %v2205_v35 = vld [vmem:[#allocation5 + $0x10] sm:$0xff]  ;;  %v2210_v27 = vld [vmem:[#allocation5 + $0x38] sm:$0xff] }
 0xfab   :  { %v6206_v8 = vadd.f32 %v1954_v16, %v1951_v24  ;;  %v4563_v24 = vpack.c.bf16 %v2210_v27, %v2208_v42  ;;  %v2207_v16 = vld [vmem:[#allocation5 + $0x20] sm:$0xff] }
 0xfad   :  { %v1957_v37 = vrot.slane %v6206_v8, 2  ;;  %v2055_v23 = vrot.slane %v6206_v8, 6  ;;  %v2165_v0 = vsel %vm1294_vm6, %v6187_v7, %v6206_v8 }
 0xfaf   :  { %1958 = vrot.lane.b32.xlu1 %v1957_v37, %s5321_s11  ;;  %v2209_v37 = vld [vmem:[#allocation5 + $0x30] sm:$0xff] }
0x1021   :  { %v1959_v12 = vpop.permute.xlu1 %1958 }
0x1022   :  { %4020 = vmatmul.mubr.msk.f32.vlgmr.msra.gmra.mrb[34].mxu0 %vm985_vm4, %v1959_v12  ;;  %v2212_v12 = vld [vmem:[#allocation5 + $0x48] sm:$0xff] }
0x1023   :  { %2318 = vmatprep.mubr.f32.mxu0 %v5319_v29 }
0x10f5   :  { %v2028_v38 = vpop.f32.mrb[34].mxu0 }
0x10f6   :  { %v2029_v25 = vadd.f32 %v2028_v38, %v6054_v5  ;;  %v2030_v28 = vpop.f32.mrb[35].mxu0  ;;  %v2214_v38 = vld [vmem:[#allocation5 + $0x58] sm:$0xff] }
0x10f7   :  { %v2031_v63 = vadd.f32 %v2030_v28, %v6065_v47  ;;  %v2211_v28 = vld [vmem:[#allocation5 + $0x40] sm:$0xff] }
0x10f8   :  { %v2034_v45 = vrot.slane %v2029_v25, 4  ;;  %v4567_v25 = vpack.c.bf16 %v2214_v38, %v2212_v12 }
0x10f9   :  { %v2044_v2 = vrot.slane %v2031_v63, 4 }
0x10fa   :  { %v2036_v41 = vadd.f32 %v2034_v45, %v6177_v34  ;;  %v2213_v45 = vld [vmem:[#allocation5 + $0x50] sm:$0xff] }
0x10fc   :  { %v4021_v53 = vmul.f32 -1.442695, %v2036_v41  ;;  %v4569_v41 = vpack.c.bf16 %v2213_v45, %v2211_v28 }
0x10fe   :  { %5013 = vpow2.f32 %v4021_v53  ;;  %v2216_v53 = vld [vmem:[#allocation5 + $0x68] sm:$0xff] }
0x1108   :  { %v5014_v49 = vpop.eup %5013 }
0x1109   :  { %v2040_v51 = vadd.f32 1.0, %v5014_v49  ;;  %v2218_v49 = vld [vmem:[#allocation5 + $0x78] sm:$0xff] }
0x110a   :  { %v4571_v63 = vpack.c.bf16 %v2218_v49, %v2216_v53 }
0x110b   :  { %5015 = vrcp.f32 %v2040_v51  ;;  %v2215_v51 = vld [vmem:[#allocation5 + $0x60] sm:$0xff] }
0x1115   :  { %v5016_v39 = vpop.eup %5015 }
0x1116   :  { %v2046_v22 = vmul.f32 %v5016_v39, %v2044_v2  ;;  %v2049_v55 = vsub.f32 1.0, %v5016_v39  ;;  %v2057_v18 = vmul.f32 %v5016_v39, %v2055_v23  ;;  %v2217_v2 = vld [vmem:[#allocation5 + $0x70] sm:$0xff] }
0x1117   :  { %v4573_v39 = vpack.c.bf16 %v2217_v2, %v2215_v51 }
0x1118   :  { %v2047_v52 = vadd.f32 %v2046_v22, %v6182_v10 }
0x111a   :  { %5017 = vtanh.f32 %v2047_v52 }
0x1124   :  { %v5018_v3 = vpop.eup %5017 }
0x1125   :  { %2051 = vrot.lane.b32.xlu0 %v5018_v3, %s5321_s11 }
0x1197   :  { %v2052_v54 = vpop.permute.xlu0 %2051 }
0x1198   :  { %v2054_v6 = vmul.f32 %v2052_v54, %v2049_v55  ;;  %v2221_v55 = vld [vmem:[#allocation8 + $0x8] sm:$0xff]  ;;  %v2223_v54 = vld [vmem:[#allocation8 + $0x18] sm:$0xff] }
0x119a   :  { %v6220_v14 = vadd.f32 %v2057_v18, %v2054_v6  ;;  %v2220_v18 = vld [vmem:[#allocation8] sm:$0xff] }
0x119c   :  { %v2060_v11 = vrot.slane %v6220_v14, 4  ;;  %v6228_v13 = vsel %vm1297_vm7, %v2165_v0, %v6220_v14  ;;  %v2158_v1 = vrot.slane %v6220_v14, 6  ;;  %v6241_v0 = vpack.c.bf16 %v2223_v54, %v2221_v55 }
0x119e   :  { %2061 = vrot.lane.b32.xlu1 %v2060_v11, %s5321_s11  ;;  %v2222_v11 = vld [vmem:[#allocation8 + $0x10] sm:$0xff]  ;;  %4576 = vmatprep.subr.bf16.mxu1 %v6241_v0 }
0x11a2   :  { %2187 = vrot.lane.b32.xlu1 %v6155_v17, %s5321_s11 }
0x1210   :  { %v2062_v15 = vpop.permute.xlu1 %2061 }
0x1211   :  { %4022 = vmatmul.mubr.msk.f32.vlgmr.msra.gmra.mrb[20].mxu1 %vm985_vm4, %v2062_v15  ;;  %v2225_v15 = vld [vmem:[#allocation8 + $0x28] sm:$0xff] }
0x1212   :  { %2474 = vmatprep.mubr.f32.mxu1 %v5319_v29 }
0x12e4   :  { %v2131_v40 = vpop.f32.mrb[20].mxu1 }
0x12e5   :  { %v2132_v46 = vadd.f32 %v2131_v40, %v6054_v5  ;;  %v2133_v9 = vpop.f32.mrb[21].mxu1  ;;  %v2227_v40 = vld [vmem:[#allocation8 + $0x38] sm:$0xff] }
0x12e6   :  { %v2134_v50 = vadd.f32 %v2133_v9, %v6065_v47  ;;  %v4561_v47 = vpack.c.bf16 %v2205_v35, %v2203_v4  ;;  %v6245_v9 = vpack.c.bf16 %v2227_v40, %v2225_v15  ;;  %v2234_v35 = vld [vmem:[#allocation8 + $0x70] sm:$0xff]  ;;  %v2236_v40 = vld [vmem:[#allocation10] sm:$0x3] }
0x12e7   :  { %v2137_v57 = vrot.slane %v2132_v46, 2  ;;  %v6243_v46 = vpack.c.bf16 %v2222_v11, %v2220_v18 }
0x12e8   :  { %v2147_v17 = vrot.slane %v2134_v50, 2 }
0x12e9   :  { %v2139_v31 = vadd.f32 %v2137_v57, %v6177_v34  ;;  %v2204_v34 = vld [vmem:[#allocation5 + $0x8] sm:$0xff]  ;;  %4578 = vmatpush1.bf16.msra.mxu1 %v6243_v46 }
0x12ea   :  { %v4559_v43 = vpack.c.bf16 %v2206_v21, %v2204_v34  ;;  %v2224_v57 = vld [vmem:[#allocation8 + $0x20] sm:$0xff]  ;;  %4580 = vmatprep.subr.bf16.mxu1 %v6245_v9  ;;  %v2233_v34 = vld [vmem:[#allocation8 + $0x68] sm:$0xff]  ;;  %v2235_v21 = vld [vmem:[#allocation8 + $0x78] sm:$0xff] }
0x12eb   :  { %v4023_v61 = vmul.f32 -1.442695, %v2139_v31  ;;  %v2226_v31 = vld [vmem:[#allocation8 + $0x30] sm:$0xff]  ;;  %v6277_v8 = vpack.c.bf16 %v2235_v21, %v2233_v34 }
0x12ec   :  { %4560 = vmatprep.subr.bf16.mxu0 %v4559_v43  ;;  %v2177_v43 = vrot.slane %v6073_v26, 2  ;;  %v2188_v26 = vpop.permute.xlu1 %2187 }
0x12ed   :  { %5019 = vpow2.f32 %v4023_v61  ;;  %4562 = vmatpush1.bf16.msra.mxu0 %v4561_v47  ;;  %v2229_v61 = vld [vmem:[#allocation8 + $0x48] sm:$0xff] }
0x12ee   :  { %4564 = vmatprep.subr.bf16.mxu0 %v4563_v24 }
0x12f7   :  { %v5020_v19 = vpop.eup %5019 }
0x12f8   :  { %v2143_v36 = vadd.f32 1.0, %v5020_v19  ;;  %v2175_v19 = vrot.slane %v6115_v33, 2 }
0x12fa   :  { %5021 = vrcp.f32 %v2143_v36  ;;  %v2171_v36 = vrot.slane %v6220_v14, 2  ;;  %v2182_v14 = vsel %vm1294_vm6, %v6152_v30, %v2175_v19 }
0x12fb   :  { %v2183_v30 = vsel %vm1297_vm7, %v2182_v14, %v1651_v60 }
0x12fc   :  { %v2184_v42 = vsel %vm1300_vm8, %v2183_v30, %v2177_v43 }
0x1304   :  { %v5022_v20 = vpop.eup %5021 }
0x1305   :  { %v2149_v48 = vmul.f32 %v5022_v20, %v2147_v17  ;;  %v2160_v56 = vmul.f32 %v5022_v20, %v2158_v1  ;;  %v2152_v22 = vsub.f32 1.0, %v5022_v20  ;;  %v2231_v1 = vld [vmem:[#allocation8 + $0x58] sm:$0xff]  ;;  %v6255_v20 = vpack.c.bf16 %v2226_v31, %v2224_v57 }
0x1306   :  { %v6334_v57 = vrot.slane %v2236_v40, %v6020_v58 }
0x1307   :  { %v2150_v62 = vadd.f32 %v2149_v48, %v6182_v10  ;;  %v4565_v10 = vpack.c.bf16 %v2209_v37, %v2207_v16  ;;  %v2173_v48 = vrot.slane %v6187_v7, 2  ;;  %4582 = vmatpush1.bf16.msra.mxu1 %v6255_v20  ;;  %v2219_v37 = vld [vmem:[#allocation7] sm:$0x3] }
0x1308   :  { %v2241_v12 = vrot.slane %v2219_v37, %v6020_v58  ;;  %v2245_v38 = vrot.slane %v2219_v37, %v6026_v44 }
0x1309   :  { %5023 = vtanh.f32 %v2150_v62  ;;  %4566 = vmatpush1.bf16.msra.mxu0 %v4565_v10  ;;  %v2230_v62 = vld [vmem:[#allocation8 + $0x50] sm:$0xff] }
0x130a   :  { %4568 = vmatprep.subr.bf16.mxu0 %v4567_v25 }
0x130d   :  { %4570 = vmatpush1.bf16.msra.mxu0 %v4569_v41 }
0x130e   :  { %4572 = vmatprep.subr.bf16.mxu0 %v4571_v63 }
0x1311   :  { %4574 = vmatpush1.bf16.msra.mxu0 %v4573_v39 }
0x1312   :  { %4592 = vmatprep.subr.bf16.mxu0 %v6241_v0 }
0x1313   :  { %v5024_v5 = vpop.eup %5023 }
0x1314   :  { %2154 = vrot.lane.b32.xlu0 %v5024_v5, %s5321_s11 }
0x1386   :  { %v2155_v52 = vpop.permute.xlu0 %2154 }
0x1387   :  { %v2157_v3 = vmul.f32 %v2155_v52, %v2152_v22 }
0x1389   :  { %v2161_v6 = vadd.f32 %v2160_v56, %v2157_v3  ;;  %v2228_v56 = vld [vmem:[#allocation8 + $0x40] sm:$0xff] }
0x138a   :  { %v6273_v7 = vpack.c.bf16 %v2230_v62, %v2228_v56  ;;  %v6345_v56 = vrot.slane %v2236_v40, %v6026_v44 }
0x138b   :  { %v2169_v50 = vrot.slane %v2161_v6, 6  ;;  %v2167_v17 = vsel %vm1300_vm8, %v6228_v13, %v2161_v6  ;;  %v6262_v13 = vpack.c.bf16 %v2231_v1, %v2229_v61 }
0x138c   :  { %2189 = vrot.lane.b32.xlu1 %v2167_v17, %s5321_s11 }
0x138d   :  { %v2179_v33 = vsel %vm1294_vm6, %v2169_v50, %v2171_v36  ;;  %4584 = vmatprep.subr.bf16.mxu1 %v6262_v13 }
0x138e   :  { %v2180_v5 = vsel %vm1297_vm7, %v2179_v33, %v2055_v23  ;;  %v2232_v23 = vld [vmem:[#allocation8 + $0x60] sm:$0xff]  ;;  %4586 = vmatpush1.bf16.msra.mxu1 %v6273_v7 }
0x138f   :  { %v2181_v4 = vsel %vm1300_vm8, %v2180_v5, %v2173_v48  ;;  %v6282_v59 = vpack.c.bf16 %v2234_v35, %v2232_v23  ;;  %4588 = vmatprep.subr.bf16.mxu1 %v6277_v8 }
0x1390   :  { %2195 = vrot.lane.b32.xlu0 %v2181_v4, %s5321_s11 }
0x1392   :  { %4590 = vmatpush1.bf16.msra.mxu1 %v6282_v59 }
0x1393   :  { %4608 = vmatprep.subr.bf16.mxu1 %v6241_v0 }
0x1394   :  { %2197 = vrot.lane.b32.xlu0 %v2184_v42, %s5321_s11 }
0x1395   :  { %2475 = vmatmul.mubr.f32.vlgmr.msra.gmra.mrb[22].mxu1 %v5319_v29 }
0x1396   :  { %4610 = vmatpush1.bf16.msra.mxu1 %v6243_v46  ;;  %2671 = vmatprep.mubr.f32.mxu1 %v5319_v29 }
0x1397   :  { %4612 = vmatprep.subr.bf16.mxu1 %v6245_v9 }
0x139a   :  { %4614 = vmatpush1.bf16.msra.mxu1 %v6255_v20 }
0x139b   :  { %4616 = vmatprep.subr.bf16.mxu1 %v6262_v13 }
0x139e   :  { %4618 = vmatpush1.bf16.msra.mxu1 %v6273_v7 }
0x139f   :  { %4620 = vmatprep.subr.bf16.mxu1 %v6277_v8 }
0x13a2   :  { %4622 = vmatpush1.bf16.msra.mxu1 %v6282_v59 }
0x13a3   :  { %4640 = vmatprep.subr.bf16.mxu1 %v6241_v0 }
0x13fe   :  { %v2190_v47 = vpop.permute.xlu1 %2189 }
0x1402   :  { %v2196_v60 = vpop.permute.xlu0 %2195 }
0x1403   :  { %v2201_v27 = vsel %vm1337_vm9, %v2188_v26, %v2196_v60 }
0x1404   :  { %4024 = vmatmul.mubr.msk.f32.vlgmr.msra.gmra.mrb[36].mxu0 %vm985_vm4, %v2201_v27 }
0x1405   :  { %2324 = vmatprep.mubr.f32.mxu0 %v5319_v29  ;;  %4594 = vmatpush1.bf16.msra.mxu0 %v6243_v46 }
0x1406   :  { %v2198_v24 = vpop.permute.xlu0 %2197  ;;  %4596 = vmatprep.subr.bf16.mxu0 %v6245_v9 }
0x1407   :  { %v2202_v16 = vsel %vm1337_vm9, %v2190_v47, %v2198_v24 }
0x1408   :  { %4025 = vmatmul.mubr.msk.f32.gmra.mrb[38].mxu0 %vm985_vm4, %v2202_v16 }
0x1409   :  { %4598 = vmatpush1.bf16.msra.mxu0 %v6255_v20  ;;  %2568 = vmatprep.mubr.f32.mxu0 %v5319_v29 }
0x140a   :  { %4600 = vmatprep.subr.bf16.mxu0 %v6262_v13 }
0x140d   :  { %4602 = vmatpush1.bf16.msra.mxu0 %v6273_v7 }
0x140e   :  { %4604 = vmatprep.subr.bf16.mxu0 %v6277_v8 }
0x1411   :  { %4606 = vmatpush1.bf16.msra.mxu0 %v6282_v59 }
0x1412   :  { %4624 = vmatprep.subr.bf16.mxu0 %v6241_v0 }
0x1468   :  { %v2476_v10 = vpop.f32.mrb[22].mxu1 }
0x1469   :  { %v2478_v53 = vpop.f32.mrb[23].mxu1  ;;  %v2477_v19 = vadd.f32 %v2476_v10, %v6334_v57 }
0x146a   :  { %v2479_v5 = vadd.f32 %v2478_v53, %v6345_v56 }
0x14d7   :  { %v2320_v25 = vpop.f32.mrb[36].mxu0 }
0x14d8   :  { %v6313_v28 = vadd.f32 %v2320_v25, %v2241_v12  ;;  %v2322_v45 = vpop.f32.mrb[37].mxu0 }
0x14d9   :  { %v6315_v41 = vadd.f32 %v2322_v45, %v2245_v38 }
0x14da   :  { %2371 = vrot.lane.b32.xlu0 %v6313_v28, %s5320_s28 }
0x14db   :  { %v2326_v49 = vpop.f32.mrb[38].mxu0 }
0x14dc   :  { %v6319_v51 = vadd.f32 %v2326_v49, %v2241_v12  ;;  %v2328_v63 = vpop.f32.mrb[39].mxu0 }
0x14dd   :  { %v2329_v2 = vadd.f32 %v2328_v63, %v2245_v38 }
0x14de   :  { %2385 = vrot.lane.b32.xlu0 %v6313_v28, %s5321_s11  ;;  %v2333_v39 = vrot.slane %v6319_v51, 6  ;;  %v2337_v22 = vrot.slane %v6319_v51, 2 }
0x14df   :  { %v2334_v52 = vrot.slane %v2329_v2, 6  ;;  %v2338_v3 = vrot.slane %v2329_v2, 2 }
0x14e0   :  { %v2351_v55 = vsel %vm1294_vm6, %v2333_v39, %v2337_v22 }
0x14e1   :  { %v2353_v54 = vsel %vm1297_vm7, %v2351_v55, %v2333_v39  ;;  %v2352_v18 = vsel %vm1294_vm6, %v2334_v52, %v2338_v3 }
0x14e2   :  { %v2355_v6 = vsel %vm1300_vm8, %v2353_v54, %v2337_v22  ;;  %v2354_v11 = vsel %vm1297_vm7, %v2352_v18, %v2334_v52 }
0x14e3   :  { %2365 = vrot.lane.b32.xlu1 %v2355_v6, %s5321_s11  ;;  %v2356_v15 = vsel %vm1300_vm8, %v2354_v11, %v2338_v3 }
0x14e7   :  { %2379 = vrot.lane.b32.xlu1 %v2356_v15, %s5322_s18 }
0x154c   :  { %v2372_v36 = vpop.permute.xlu0 %2371 }
0x1550   :  { %v2386_v62 = vpop.permute.xlu0 %2385 }
0x1551   :  { %v6349_v4 = vsel %vm1337_vm9, %v2386_v62, %v2356_v15 }
0x1555   :  { %v2366_v31 = vpop.permute.xlu1 %2365 }
0x1556   :  { %v2391_v61 = vsel %vm1337_vm9, %v6313_v28, %v2366_v31 }
0x1557   :  { %v2393_v50 = vsel %vm985_vm4, %v2391_v61, %v2372_v36 }
0x1559   :  { %v2380_v17 = vpop.permute.xlu1 %2379 }
0x155a   :  { %v6341_v1 = vsel %vm1342_vm10, %v2393_v50, %v2380_v17 }
0x155b   :  { %v2481_v48 = vadd.f32 %v2477_v19, %v6341_v1 }
0x155d   :  { %v4026_v33 = vmul.f32 -1.442695, %v2481_v48 }
0x155f   :  { %5025 = vpow2.f32 %v4026_v33 }
0x1569   :  { %v5026_v14 = vpop.eup %5025 }
0x156a   :  { %v2485_v58 = vadd.f32 1.0, %v5026_v14 }
0x156c   :  { %5027 = vrcp.f32 %v2485_v58 }
0x1576   :  { %v5028_v34 = vpop.eup %5027 }
0x1577   :  { %v2488_v21 = vmul.f32 %v5028_v34, %v2479_v5  ;;  %v2491_v23 = vsub.f32 1.0, %v5028_v34  ;;  %v2497_v42 = vmul.f32 0.0, %v5028_v34 }
0x1579   :  { %v2489_v30 = vadd.f32 %v2488_v21, %v6349_v4 }
0x157b   :  { %5029 = vtanh.f32 %v2489_v30 }
0x1585   :  { %v5030_v43 = vpop.eup %5029 }
0x1586   :  { %2493 = vrot.lane.b32.xlu1 %v5030_v43, %s5321_s11 }
0x15f8   :  { %v2494_v35 = vpop.permute.xlu1 %2493 }
0x15f9   :  { %v2496_v26 = vmul.f32 %v2494_v35, %v2491_v23 }
0x15fb   :  { %v6353_v44 = vadd.f32 %v2497_v42, %v2496_v26 }
0x15fd   :  { %2500 = vrot.lane.b32.xlu0 %v6353_v44, %s5321_s11  ;;  %v2597_v22 = vrot.slane %v6353_v44, 6 }
0x166f   :  { %v2501_v60 = vpop.permute.xlu0 %2500 }
0x1670   :  { %4027 = vmatmul.mubr.msk.f32.vlgmr.msra.gmra.mrb[40].mxu0 %vm985_vm4, %v2501_v60 }
0x1671   :  { %4626 = vmatpush1.bf16.msra.mxu0 %v6243_v46  ;;  %2774 = vmatprep.mubr.f32.mxu0 %v5319_v29 }
0x1672   :  { %4628 = vmatprep.subr.bf16.mxu0 %v6245_v9 }
0x1675   :  { %4630 = vmatpush1.bf16.msra.mxu0 %v6255_v20 }
0x1676   :  { %4632 = vmatprep.subr.bf16.mxu0 %v6262_v13 }
0x1679   :  { %4634 = vmatpush1.bf16.msra.mxu0 %v6273_v7 }
0x167a   :  { %4636 = vmatprep.subr.bf16.mxu0 %v6277_v8 }
0x167d   :  { %4638 = vmatpush1.bf16.msra.mxu0 %v6282_v59 }
0x167e   :  { %4656 = vmatprep.subr.bf16.mxu0 %v6241_v0 }
0x1743   :  { %v2570_v27 = vpop.f32.mrb[40].mxu0 }
0x1744   :  { %v2571_v47 = vadd.f32 %v2570_v27, %v6334_v57  ;;  %v2572_v24 = vpop.f32.mrb[41].mxu0 }
0x1745   :  { %v2573_v25 = vadd.f32 %v2572_v24, %v6345_v56 }
0x1746   :  { %v2576_v16 = vrot.slane %v2571_v47, 6 }
0x1747   :  { %v2586_v45 = vrot.slane %v2573_v25, 6 }
0x1748   :  { %v2578_v37 = vadd.f32 %v2576_v16, %v6341_v1 }
0x174a   :  { %v4028_v12 = vmul.f32 -1.442695, %v2578_v37 }
0x174c   :  { %5031 = vpow2.f32 %v4028_v12 }
0x1756   :  { %v5032_v38 = vpop.eup %5031 }
0x1757   :  { %v2582_v10 = vadd.f32 1.0, %v5032_v38 }
0x1759   :  { %5033 = vrcp.f32 %v2582_v10 }
0x1763   :  { %v5034_v53 = vpop.eup %5033 }
0x1764   :  { %v2588_v49 = vmul.f32 %v5034_v53, %v2586_v45  ;;  %v2591_v39 = vsub.f32 1.0, %v5034_v53  ;;  %v2599_v55 = vmul.f32 %v5034_v53, %v2597_v22  ;;  %v2344_v22 = vrot.slane %v6315_v41, 6 }
0x1766   :  { %v2589_v63 = vadd.f32 %v2588_v49, %v6349_v4 }
0x1768   :  { %5035 = vtanh.f32 %v2589_v63 }
0x1772   :  { %v5036_v2 = vpop.eup %5035 }
0x1773   :  { %2593 = vrot.lane.b32.xlu1 %v5036_v2, %s5321_s11 }
0x17e5   :  { %v2594_v52 = vpop.permute.xlu1 %2593 }
0x17e6   :  { %v2596_v3 = vmul.f32 %v2594_v52, %v2591_v39  ;;  %v2343_v39 = vrot.slane %v6313_v28, 6  ;;  %v2348_v52 = vrot.slane %v6315_v41, 2 }
0x17e8   :  { %v6373_v54 = vadd.f32 %v2599_v55, %v2596_v3 }
0x17ea   :  { %v2602_v18 = vrot.slane %v6373_v54, 2  ;;  %v2700_v34 = vrot.slane %v6373_v54, 6  ;;  %v3211_v35 = vsel %vm1294_vm6, %v6353_v44, %v6373_v54  ;;  %v4041_v54 = vld [vmem:[#allocation13] ss:$0 sm:$0xff] }
0x17ec   :  { %2603 = vrot.lane.b32.xlu0 %v2602_v18, %s5321_s11 }
0x185e   :  { %v2604_v6 = vpop.permute.xlu0 %2603 }
0x185f   :  { %4029 = vmatmul.mubr.msk.f32.vlgmr.msra.gmra.mrb[24].mxu1 %vm985_vm4, %v2604_v6  ;;  %v2358_v6 = vsel %vm1294_vm6, %v2344_v22, %v2348_v52 }
0x1860   :  { %4642 = vmatpush1.bf16.msra.mxu1 %v6243_v46  ;;  %2877 = vmatprep.mubr.f32.mxu1 %v5319_v29 }
0x1861   :  { %4644 = vmatprep.subr.bf16.mxu1 %v6245_v9 }
0x1864   :  { %4646 = vmatpush1.bf16.msra.mxu1 %v6255_v20 }
0x1865   :  { %4648 = vmatprep.subr.bf16.mxu1 %v6262_v13 }
0x1868   :  { %4650 = vmatpush1.bf16.msra.mxu1 %v6273_v7 }
0x1869   :  { %4652 = vmatprep.subr.bf16.mxu1 %v6277_v8 }
0x186c   :  { %4654 = vmatpush1.bf16.msra.mxu1 %v6282_v59 }
0x186d   :  { %4672 = vmatprep.subr.bf16.mxu1 %v6241_v0 }
0x1932   :  { %v2673_v11 = vpop.f32.mrb[24].mxu1 }
0x1933   :  { %v2674_v15 = vadd.f32 %v2673_v11, %v6334_v57  ;;  %v2675_v40 = vpop.f32.mrb[25].mxu1  ;;  %v2360_v11 = vsel %vm1297_vm7, %v2358_v6, %v2344_v22 }
0x1934   :  { %v2676_v17 = vadd.f32 %v2675_v40, %v6345_v56 }
0x1935   :  { %v2679_v31 = vrot.slane %v2674_v15, 4 }
0x1936   :  { %v2689_v48 = vrot.slane %v2676_v17, 4 }
0x1937   :  { %v2681_v61 = vadd.f32 %v2679_v31, %v6341_v1 }
0x1939   :  { %v4030_v19 = vmul.f32 -1.442695, %v2681_v61 }
0x193b   :  { %5037 = vpow2.f32 %v4030_v19 }
0x1945   :  { %v5038_v36 = vpop.eup %5037 }
0x1946   :  { %v2685_v50 = vadd.f32 1.0, %v5038_v36 }
0x1948   :  { %5039 = vrcp.f32 %v2685_v50 }
0x1952   :  { %v5040_v33 = vpop.eup %5039 }
0x1953   :  { %v2691_v14 = vmul.f32 %v5040_v33, %v2689_v48  ;;  %v2694_v5 = vsub.f32 1.0, %v5040_v33  ;;  %v2702_v30 = vmul.f32 %v5040_v33, %v2700_v34 }
0x1955   :  { %v2692_v58 = vadd.f32 %v2691_v14, %v6349_v4 }
0x1957   :  { %5041 = vtanh.f32 %v2692_v58 }
0x1961   :  { %v5042_v62 = vpop.eup %5041 }
0x1962   :  { %2696 = vrot.lane.b32.xlu1 %v5042_v62, %s5321_s11 }
0x19d4   :  { %v2697_v21 = vpop.permute.xlu1 %2696 }
0x19d5   :  { %v2699_v43 = vmul.f32 %v2697_v21, %v2694_v5 }
0x19d7   :  { %v6395_v23 = vadd.f32 %v2702_v30, %v2699_v43 }
0x19d9   :  { %v2705_v42 = vrot.slane %v6395_v23, 4  ;;  %v3212_v26 = vsel %vm1297_vm7, %v3211_v35, %v6395_v23  ;;  %v2803_v53 = vrot.slane %v6395_v23, 6 }
0x19db   :  { %2706 = vrot.lane.b32.xlu0 %v2705_v42, %s5321_s11 }
0x1a4d   :  { %v2707_v60 = vpop.permute.xlu0 %2706 }
0x1a4e   :  { %4031 = vmatmul.mubr.msk.f32.vlgmr.msra.gmra.mrb[42].mxu0 %vm985_vm4, %v2707_v60 }
0x1a4f   :  { %4658 = vmatpush1.bf16.msra.mxu0 %v6243_v46  ;;  %2972 = vmatprep.mubr.f32.mxu0 %v5319_v29 }
0x1a50   :  { %4660 = vmatprep.subr.bf16.mxu0 %v6245_v9 }
0x1a53   :  { %4662 = vmatpush1.bf16.msra.mxu0 %v6255_v20 }
0x1a54   :  { %4664 = vmatprep.subr.bf16.mxu0 %v6262_v13 }
0x1a57   :  { %4666 = vmatpush1.bf16.msra.mxu0 %v6273_v7 }
0x1a58   :  { %4668 = vmatprep.subr.bf16.mxu0 %v6277_v8 }
0x1a5b   :  { %4670 = vmatpush1.bf16.msra.mxu0 %v6282_v59 }
0x1a5c   :  { %4688 = vmatprep.subr.bf16.mxu0 %v6241_v0 }
0x1b21   :  { %v2776_v27 = vpop.f32.mrb[42].mxu0 }
0x1b22   :  { %v2777_v47 = vadd.f32 %v2776_v27, %v6334_v57  ;;  %v2778_v24 = vpop.f32.mrb[43].mxu0 }
0x1b23   :  { %v2779_v25 = vadd.f32 %v2778_v24, %v6345_v56 }
0x1b24   :  { %v2782_v16 = vrot.slane %v2777_v47, 2 }
0x1b25   :  { %v2792_v45 = vrot.slane %v2779_v25, 2 }
0x1b26   :  { %v2784_v37 = vadd.f32 %v2782_v16, %v6341_v1  ;;  %v2347_v1 = vrot.slane %v6313_v28, 2  ;;  %v2362_v28 = vsel %vm1300_vm8, %v2360_v11, %v2348_v52 }
0x1b28   :  { %v4032_v12 = vmul.f32 -1.442695, %v2784_v37  ;;  %v2357_v3 = vsel %vm1294_vm6, %v2343_v39, %v2347_v1 }
0x1b29   :  { %v2359_v18 = vsel %vm1297_vm7, %v2357_v3, %v2343_v39 }
0x1b2a   :  { %5043 = vpow2.f32 %v4032_v12 }
0x1b34   :  { %v5044_v38 = vpop.eup %5043 }
0x1b35   :  { %v2788_v10 = vadd.f32 1.0, %v5044_v38 }
0x1b37   :  { %5045 = vrcp.f32 %v2788_v10 }
0x1b41   :  { %v5046_v49 = vpop.eup %5045 }
0x1b42   :  { %v2794_v63 = vmul.f32 %v5046_v49, %v2792_v45  ;;  %v2805_v0 = vmul.f32 %v5046_v49, %v2803_v53  ;;  %v2797_v41 = vsub.f32 1.0, %v5046_v49 }
0x1b44   :  { %v2795_v2 = vadd.f32 %v2794_v63, %v6349_v4  ;;  %v2361_v4 = vsel %vm1300_vm8, %v2359_v18, %v2347_v1 }
0x1b46   :  { %5047 = vtanh.f32 %v2795_v2 }
0x1b50   :  { %v5048_v55 = vpop.eup %5047 }
0x1b51   :  { %2799 = vrot.lane.b32.xlu1 %v5048_v55, %s5321_s11 }
0x1b55   :  { %2367 = vrot.lane.b32.xlu1 %v2361_v4, %s5321_s11 }
0x1b59   :  { %2381 = vrot.lane.b32.xlu1 %v2362_v28, %s5322_s18 }
0x1bc3   :  { %v2800_v15 = vpop.permute.xlu1 %2799 }
0x1bc4   :  { %v2802_v40 = vmul.f32 %v2800_v15, %v2797_v41 }
0x1bc6   :  { %v2806_v31 = vadd.f32 %v2805_v0, %v2802_v40 }
0x1bc7   :  { %v2368_v50 = vpop.permute.xlu1 %2367 }
0x1bc8   :  { %v6432_v61 = vrot.slane %v2806_v31, 6  ;;  %v6435_v19 = vsel %vm1300_vm8, %v3212_v26, %v2806_v31  ;;  %v2392_v48 = vsel %vm1337_vm9, %v6319_v51, %v2368_v50 }
0x1bca   :  { %2809 = vrot.lane.b32.xlu0 %v6432_v61, %s5321_s11 }
0x1bcb   :  { %v2382_v58 = vpop.permute.xlu1 %2381 }
0x1bce   :  { %2373 = vrot.lane.b32.xlu0 %v6319_v51, %s5320_s28 }
0x1bd2   :  { %2387 = vrot.lane.b32.xlu0 %v6319_v51, %s5321_s11 }
0x1c3c   :  { %v2810_v36 = vpop.permute.xlu0 %2809 }
0x1c3d   :  { %4033 = vmatmul.mubr.msk.f32.vlgmr.msra.gmra.mrb[26].mxu1 %vm985_vm4, %v2810_v36 }
0x1c3e   :  { %4674 = vmatpush1.bf16.msra.mxu1 %v6243_v46  ;;  %3075 = vmatprep.mubr.f32.mxu1 %v5319_v29 }
0x1c3f   :  { %4676 = vmatprep.subr.bf16.mxu1 %v6245_v9 }
0x1c40   :  { %v2374_v17 = vpop.permute.xlu0 %2373 }
0x1c41   :  { %v2394_v33 = vsel %vm985_vm4, %v2392_v48, %v2374_v17 }
0x1c42   :  { %4678 = vmatpush1.bf16.msra.mxu1 %v6255_v20  ;;  %v6457_v21 = vsel %vm1342_vm10, %v2394_v33, %v2382_v58 }
0x1c43   :  { %4680 = vmatprep.subr.bf16.mxu1 %v6262_v13 }
0x1c44   :  { %v2388_v26 = vpop.permute.xlu0 %2387 }
0x1c45   :  { %v6462_v47 = vsel %vm1337_vm9, %v2388_v26, %v2362_v28 }
0x1c46   :  { %4682 = vmatpush1.bf16.msra.mxu1 %v6273_v7 }
0x1c47   :  { %4684 = vmatprep.subr.bf16.mxu1 %v6277_v8 }
0x1c4a   :  { %4686 = vmatpush1.bf16.msra.mxu1 %v6282_v59 }
0x1d10   :  { %v2879_v14 = vpop.f32.mrb[26].mxu1 }
0x1d11   :  { %v2880_v62 = vadd.f32 %v2879_v14, %v6334_v57  ;;  %v2881_v5 = vpop.f32.mrb[27].mxu1 }
0x1d12   :  { %v2882_v51 = vadd.f32 %v2881_v5, %v6345_v56 }
0x1d13   :  { %v2884_v30 = vadd.f32 %v2880_v62, %v6457_v21 }
0x1d15   :  { %v4034_v43 = vmul.f32 -1.442695, %v2884_v30 }
0x1d17   :  { %5049 = vpow2.f32 %v4034_v43 }
0x1d21   :  { %v5050_v35 = vpop.eup %5049 }
0x1d22   :  { %v2888_v42 = vadd.f32 1.0, %v5050_v35 }
0x1d24   :  { %5051 = vrcp.f32 %v2888_v42 }
0x1d2e   :  { %v5052_v60 = vpop.eup %5051 }
0x1d2f   :  { %v2891_v27 = vmul.f32 %v5052_v60, %v2882_v51  ;;  %v2894_v37 = vsub.f32 1.0, %v5052_v60  ;;  %v2901_v38 = vmul.f32 %v5052_v60, %v6432_v61 }
0x1d31   :  { %v2892_v24 = vadd.f32 %v2891_v27, %v6462_v47 }
0x1d33   :  { %5053 = vtanh.f32 %v2892_v24 }
0x1d3d   :  { %v5054_v16 = vpop.eup %5053 }
0x1d3e   :  { %2896 = vrot.lane.b32.xlu1 %v5054_v16, %s5321_s11 }
0x1db0   :  { %v2897_v12 = vpop.permute.xlu1 %2896 }
0x1db1   :  { %v2899_v10 = vmul.f32 %v2897_v12, %v2894_v37 }
0x1db3   :  { %v6467_v25 = vadd.f32 %v2901_v38, %v2899_v10 }
0x1db5   :  { %2904 = vrot.lane.b32.xlu0 %v6467_v25, %s5321_s11  ;;  %v3001_v52 = vrot.slane %v6467_v25, 6 }
0x1e27   :  { %v2905_v45 = vpop.permute.xlu0 %2904 }
0x1e28   :  { %4035 = vmatmul.mubr.msk.f32.vlgmr.msra.gmra.mrb[44].mxu0 %vm985_vm4, %v2905_v45 }
0x1e29   :  { %4690 = vmatpush1.bf16.msra.mxu0 %v6243_v46  ;;  %3178 = vmatprep.mubr.f32.mxu0 %v5319_v29 }
0x1e2a   :  { %4692 = vmatprep.subr.bf16.mxu0 %v6245_v9 }
0x1e2d   :  { %4694 = vmatpush1.bf16.msra.mxu0 %v6255_v20 }
0x1e2e   :  { %4696 = vmatprep.subr.bf16.mxu0 %v6262_v13 }
0x1e31   :  { %4698 = vmatpush1.bf16.msra.mxu0 %v6273_v7 }
0x1e32   :  { %4700 = vmatprep.subr.bf16.mxu0 %v6277_v8 }
0x1e35   :  { %4702 = vmatpush1.bf16.msra.mxu0 %v6282_v59 }
0x1efb   :  { %v2974_v53 = vpop.f32.mrb[44].mxu0 }
0x1efc   :  { %v2975_v49 = vadd.f32 %v2974_v53, %v6334_v57  ;;  %v2976_v63 = vpop.f32.mrb[45].mxu0 }
0x1efd   :  { %v2977_v20 = vadd.f32 %v2976_v63, %v6345_v56 }
0x1efe   :  { %v2980_v0 = vrot.slane %v2975_v49, 6 }
0x1eff   :  { %v2990_v13 = vrot.slane %v2977_v20, 6 }
0x1f00   :  { %v2982_v46 = vadd.f32 %v2980_v0, %v6457_v21 }
0x1f02   :  { %v4036_v2 = vmul.f32 -1.442695, %v2982_v46 }
0x1f04   :  { %5055 = vpow2.f32 %v4036_v2 }
0x1f0e   :  { %v5056_v9 = vpop.eup %5055 }
0x1f0f   :  { %v2986_v39 = vadd.f32 1.0, %v5056_v9 }
0x1f11   :  { %5057 = vrcp.f32 %v2986_v39 }
0x1f1b   :  { %v5058_v7 = vpop.eup %5057 }
0x1f1c   :  { %v2992_v1 = vmul.f32 %v5058_v7, %v2990_v13  ;;  %v2995_v22 = vsub.f32 1.0, %v5058_v7  ;;  %v3003_v18 = vmul.f32 %v5058_v7, %v3001_v52  ;;  %v3252_v13 = vld [vmem:[#allocation11] sm:$0xff]  ;;  %v3254_v7 = vld [vmem:[#allocation11 + $0x10] sm:$0xff] }
0x1f1e   :  { %v2993_v8 = vadd.f32 %v2992_v1, %v6462_v47 }
0x1f20   :  { %5059 = vtanh.f32 %v2993_v8  ;;  %v3255_v8 = vld [vmem:[#allocation11 + $0x18] sm:$0xff] }
0x1f2a   :  { %v5060_v59 = vpop.eup %5059 }
0x1f2b   :  { %2997 = vrot.lane.b32.xlu1 %v5060_v59, %s5321_s11  ;;  %v4707_v59 = vpack.c.bf16 %v3255_v8, %v3254_v7  ;;  %v3572_v8 = vld [vmem:[%s6916_s20 + $0x90] sm:$0xff] }
0x1f9d   :  { %v2998_v3 = vpop.permute.xlu1 %2997 }
0x1f9e   :  { %v3000_v55 = vmul.f32 %v2998_v3, %v2995_v22  ;;  %v3257_v22 = vld [vmem:[#allocation11 + $0x28] sm:$0xff]  ;;  %v3259_v3 = vld [vmem:[#allocation11 + $0x38] sm:$0xff] }
0x1fa0   :  { %v6486_v6 = vadd.f32 %v3003_v18, %v3000_v55 }
0x1fa2   :  { %v3006_v4 = vrot.slane %v6486_v6, 2  ;;  %v3104_v43 = vrot.slane %v6486_v6, 6  ;;  %v3214_v60 = vsel %vm1294_vm6, %v6467_v25, %v6486_v6 }
0x1fa4   :  { %3007 = vrot.lane.b32.xlu0 %v3006_v4, %s5321_s11 }
0x2016   :  { %v3008_v11 = vpop.permute.xlu0 %3007 }
0x2017   :  { %4037 = vmatmul.mubr.msk.f32.vlgmr.msra.gmra.mrb[28].mxu1 %vm985_vm4, %v3008_v11 }
0x20ea   :  { %v3077_v28 = vpop.f32.mrb[28].mxu1 }
0x20eb   :  { %v3078_v41 = vadd.f32 %v3077_v28, %v6334_v57  ;;  %v3079_v15 = vpop.f32.mrb[29].mxu1 }
0x20ec   :  { %v3080_v48 = vadd.f32 %v3079_v15, %v6345_v56 }
0x20ed   :  { %v3083_v40 = vrot.slane %v3078_v41, 4  ;;  %v3224_v41 = vrot.slane %v6395_v23, 2 }
0x20ee   :  { %v3093_v33 = vrot.slane %v3080_v48, 4 }
0x20ef   :  { %v3085_v31 = vadd.f32 %v3083_v40, %v6457_v21 }
0x20f1   :  { %v4038_v36 = vmul.f32 -1.442695, %v3085_v31 }
0x20f3   :  { %5061 = vpow2.f32 %v4038_v36  ;;  %v3222_v36 = vrot.slane %v6467_v25, 2 }
0x20fd   :  { %v5062_v50 = vpop.eup %5061 }
0x20fe   :  { %v3089_v17 = vadd.f32 1.0, %v5062_v50 }
0x2100   :  { %5063 = vrcp.f32 %v3089_v17  ;;  %v3231_v17 = vsel %vm1294_vm6, %v6432_v61, %v3224_v41  ;;  %v3576_v41 = vld [vmem:[%s6916_s20 + $0xb0] sm:$0xff] }
0x2101   :  { %v3232_v23 = vsel %vm1297_vm7, %v3231_v17, %v2700_v34  ;;  %v3578_v17 = vld [vmem:[%s6916_s20 + $0xc0] sm:$0xff] }
0x210a   :  { %v5064_v14 = vpop.eup %5063 }
0x210b   :  { %v3095_v58 = vmul.f32 %v5064_v14, %v3093_v33  ;;  %v3098_v30 = vsub.f32 1.0, %v5064_v14  ;;  %v3106_v42 = vmul.f32 %v5064_v14, %v3104_v43  ;;  %v3226_v14 = vrot.slane %v6353_v44, 2 }
0x210d   :  { %v3096_v62 = vadd.f32 %v3095_v58, %v6462_v47  ;;  %v3233_v25 = vsel %vm1300_vm8, %v3232_v23, %v3226_v14  ;;  %v3562_v14 = vld [vmem:[%s6916_s20 + $0x40] sm:$0xff] }
0x210f   :  { %5065 = vtanh.f32 %v3096_v62 }
0x2119   :  { %v5066_v5 = vpop.eup %5065 }
0x211a   :  { %3100 = vrot.lane.b32.xlu1 %v5066_v5, %s5321_s11 }
0x218c   :  { %v3101_v35 = vpop.permute.xlu1 %3100 }
0x218d   :  { %v3103_v26 = vmul.f32 %v3101_v35, %v3098_v30 }
0x218f   :  { %v3107_v51 = vadd.f32 %v3106_v42, %v3103_v26 }
0x2191   :  { %v3109_v27 = vrot.slane %v3107_v51, 4  ;;  %v3215_v24 = vsel %vm1297_vm7, %v3214_v60, %v3107_v51  ;;  %v3207_v2 = vrot.slane %v3107_v51, 6  ;;  %v3220_v15 = vrot.slane %v3107_v51, 2 }
0x2193   :  { %3110 = vrot.lane.b32.xlu0 %v3109_v27, %s5321_s11 }
0x2197   :  { %3236 = vrot.lane.b32.xlu0 %v6435_v19, %s5321_s11 }
0x2205   :  { %v3111_v16 = vpop.permute.xlu0 %3110 }
0x2206   :  { %4039 = vmatmul.mubr.msk.f32.vlgmr.msra.gmra.mrb[46].mxu0 %vm985_vm4, %v3111_v16 }
0x2207   :  { %4359 = vmatprep.mubr.msk.f32.mxu0 %vm5326_vm13, %v5319_v29 }
0x2209   :  { %v3237_v58 = vpop.permute.xlu0 %3236 }
0x22d9   :  { %v3180_v37 = vpop.f32.mrb[46].mxu0 }
0x22da   :  { %v3181_v12 = vadd.f32 %v3180_v37, %v6334_v57  ;;  %v3182_v38 = vpop.f32.mrb[47].mxu0 }
0x22db   :  { %v3183_v0 = vadd.f32 %v3182_v38, %v6345_v56  ;;  %v3256_v56 = vld [vmem:[#allocation11 + $0x20] sm:$0xff] }
0x22dc   :  { %v3186_v10 = vrot.slane %v3181_v12, 2  ;;  %v4711_v52 = vpack.c.bf16 %v3257_v22, %v3256_v56 }
0x22dd   :  { %v3196_v46 = vrot.slane %v3183_v0, 2 }
0x22de   :  { %v3188_v45 = vadd.f32 %v3186_v10, %v6457_v21  ;;  %v3253_v21 = vld [vmem:[#allocation11 + $0x8] sm:$0xff] }
0x22df   :  { %v4703_v1 = vpack.c.bf16 %v3253_v21, %v3252_v13  ;;  %v3571_v13 = vld [vmem:[%s6916_s20 + $0x88] sm:$0xff]  ;;  %v3554_v21 = vld [vmem:[%s6916_s20] sm:$0xff] }
0x22e0   :  { %v4040_v53 = vmul.f32 -1.442695, %v3188_v45 }
0x22e1   :  { %4704 = vmatprep.subr.bf16.mxu1 %v4703_v1 }
0x22e2   :  { %5067 = vpow2.f32 %v4040_v53  ;;  %4706 = vmatpush3.bf16.msra.mxu1 %v4703_v1  ;;  %v3555_v1 = vld [vmem:[%s6916_s20 + $0x8] sm:$0xff] }
0x22e3   :  { %4708 = vmatprep.subr.bf16.mxu1 %v4707_v59  ;;  %v4727_v56 = vpack.c.bf16 %v3555_v1, %v3554_v21 }
0x22e6   :  { %4710 = vmatpush3.bf16.msra.mxu1 %v4707_v59  ;;  %v3573_v59 = vld [vmem:[%s6916_s20 + $0x98] sm:$0xff] }
0x22e7   :  { %4712 = vmatprep.subr.bf16.mxu1 %v4711_v52  ;;  %v4729_v22 = vpack.c.bf16 %v3573_v59, %v3572_v8  ;;  %v3634_v8 = vld [vmem:[%s6916_s20 + $0x280] sm:$0xff]  ;;  %v3635_v59 = vld [vmem:[%s6916_s20 + $0x288] sm:$0xff] }
0x22ea   :  { %4714 = vmatpush3.bf16.msra.mxu1 %v4711_v52  ;;  %v3556_v52 = vld [vmem:[%s6916_s20 + $0x10] sm:$0xff] }
0x22ec   :  { %v5068_v49 = vpop.eup %5067 }
0x22ed   :  { %v3192_v63 = vadd.f32 1.0, %v5068_v49 }
0x22ef   :  { %5069 = vrcp.f32 %v3192_v63 }
0x22f9   :  { %v5070_v19 = vpop.eup %5069 }
0x22fa   :  { %v3198_v9 = vmul.f32 %v5070_v19, %v3196_v46  ;;  %v3209_v39 = vmul.f32 %v5070_v19, %v3207_v2  ;;  %v3201_v18 = vsub.f32 1.0, %v5070_v19 }
0x22fc   :  { %v3199_v20 = vadd.f32 %v3198_v9, %v6462_v47  ;;  %v3258_v47 = vld [vmem:[#allocation11 + $0x30] sm:$0xff] }
0x22fd   :  { %v4715_v55 = vpack.c.bf16 %v3259_v3, %v3258_v47  ;;  %v3557_v47 = vld [vmem:[%s6916_s20 + $0x18] sm:$0xff]  ;;  %v3574_v3 = vld [vmem:[%s6916_s20 + $0xa0] sm:$0xff] }
0x22fe   :  { %5071 = vtanh.f32 %v3199_v20 }
0x22ff   :  { %4716 = vmatprep.subr.bf16.mxu1 %v4715_v55 }
0x2300   :  { %4718 = vmatpush3.bf16.msra.mxu1 %v4715_v55  ;;  %v3575_v55 = vld [vmem:[%s6916_s20 + $0xa8] sm:$0xff] }
0x2308   :  { %v5072_v57 = vpop.eup %5071 }
0x2309   :  { %3203 = vrot.lane.b32.xlu1 %v5072_v57, %s5321_s11  ;;  %v3570_v57 = vld [vmem:[%s6916_s20 + $0x80] sm:$0xff] }
0x230a   :  { %v4725_v7 = vpack.c.bf16 %v3571_v13, %v3570_v57  ;;  %v6665_v13 = vld [vmem:[%s6942_s27] sm:$0xff] }
0x230c   :  { %4726 = vmatprep.subr.bf16.mxu1 %v4725_v7 }
0x237b   :  { %v3204_v4 = vpop.permute.xlu1 %3203 }
0x237c   :  { %v3206_v11 = vmul.f32 %v3204_v4, %v3201_v18  ;;  %v4731_v18 = vpack.c.bf16 %v3557_v47, %v3556_v52  ;;  %v4733_v4 = vpack.c.bf16 %v3575_v55, %v3574_v3  ;;  %v4789_v52 = vpack.c.bf16 %v3635_v59, %v3634_v8  ;;  %v3636_v3 = vld [vmem:[%s6916_s20 + $0x290] sm:$0xff]  ;;  %v3637_v55 = vld [vmem:[%s6916_s20 + $0x298] sm:$0xff]  ;;  %v3396_v8 = vld [vmem:[%s6943_s17] sm:$0x3] }
0x237e   :  { %v3210_v28 = vadd.f32 %v3209_v39, %v3206_v11  ;;  %v3558_v11 = vld [vmem:[%s6916_s20 + $0x20] sm:$0xff] }
0x2380   :  { %v3218_v40 = vrot.slane %v3210_v28, 6  ;;  %v3216_v31 = vsel %vm1300_vm8, %v3215_v24, %v3210_v28  ;;  %v3559_v28 = vld [vmem:[%s6916_s20 + $0x28] sm:$0xff] }
0x2381   :  { %3238 = vrot.lane.b32.xlu0 %v3216_v31, %s5321_s11 }
0x2382   :  { %v3228_v50 = vsel %vm1294_vm6, %v3218_v40, %v3220_v15  ;;  %v3577_v15 = vld [vmem:[%s6916_s20 + $0xb8] sm:$0xff]  ;;  %v4735_v40 = vpack.c.bf16 %v3559_v28, %v3558_v11 }
0x2383   :  { %v3229_v48 = vsel %vm1297_vm7, %v3228_v50, %v3104_v43  ;;  %v4737_v31 = vpack.c.bf16 %v3577_v15, %v3576_v41  ;;  %v3561_v50 = vld [vmem:[%s6916_s20 + $0x38] sm:$0xff]  ;;  %v3638_v41 = vld [vmem:[%s6916_s20 + $0x2a0] sm:$0xff]  ;;  %v3639_v15 = vld [vmem:[%s6916_s20 + $0x2a8] sm:$0xff] }
0x2384   :  { %v3230_v33 = vsel %vm1300_vm8, %v3229_v48, %v3222_v36  ;;  %v3560_v36 = vld [vmem:[%s6916_s20 + $0x30] sm:$0xff]  ;;  %v3579_v48 = vld [vmem:[%s6916_s20 + $0xc8] sm:$0xff]  ;;  %v3621_v11 = vld [vmem:[%s6916_s20 + $0x218] sm:$0xff] }
0x2385   :  { %3244 = vrot.lane.b32.xlu1 %v3230_v33, %s5321_s11  ;;  %v4739_v33 = vpack.c.bf16 %v3561_v50, %v3560_v36  ;;  %v4741_v23 = vpack.c.bf16 %v3579_v48, %v3578_v17  ;;  %v3623_v36 = vld [vmem:[%s6916_s20 + $0x228] sm:$0xff]  ;;  %v3640_v17 = vld [vmem:[%s6916_s20 + $0x2b0] sm:$0xff]  ;;  %v3641_v48 = vld [vmem:[%s6916_s20 + $0x2b8] sm:$0xff] }
0x2389   :  { %3246 = vrot.lane.b32.xlu1 %v3233_v25, %s5321_s11  ;;  %v3563_v25 = vld [vmem:[%s6916_s20 + $0x48] sm:$0xff] }
0x23f3   :  { %v3239_v62 = vpop.permute.xlu0 %3238 }
0x23f7   :  { %v3245_v61 = vpop.permute.xlu1 %3244 }
0x23f8   :  { %v3250_v6 = vsel %vm1337_vm9, %v3237_v58, %v3245_v61  ;;  %v4743_v58 = vpack.c.bf16 %v3563_v25, %v3562_v14  ;;  %v3625_v14 = vld [vmem:[%s6916_s20 + $0x238] sm:$0xff] }
0x23f9   :  { %4352 = vmatprep.mubr.msk.f32.mxu1 %vm985_vm4, %v3250_v6 }
0x23fb   :  { %v3247_v5 = vpop.permute.xlu1 %3246 }
0x23fc   :  { %v3251_v30 = vsel %vm1337_vm9, %v3239_v62, %v3247_v5  ;;  %v3580_v62 = vld [vmem:[%s6916_s20 + $0xd0] sm:$0xff]  ;;  %v3581_v5 = vld [vmem:[%s6916_s20 + $0xd8] sm:$0xff] }
0x23fd   :  { %4353 = vmatmul.mubr.msk.f32.vlgmr.msra.gmra.mrb[30].mxu1 %vm985_vm4, %v3251_v30  ;;  %v4745_v30 = vpack.c.bf16 %v3581_v5, %v3580_v62  ;;  %v3626_v62 = vld [vmem:[%s6916_s20 + $0x240] sm:$0xff]  ;;  %v3627_v5 = vld [vmem:[%s6916_s20 + $0x248] sm:$0xff] }
0x23fe   :  { %4728 = vmatpush3.bf16.msra.mxu1 %v4727_v56  ;;  %v3618_v56 = vld [vmem:[%s6916_s20 + $0x200] sm:$0xff] }
0x23ff   :  { %4730 = vmatprep.subr.bf16.mxu1 %v4729_v22  ;;  %v3619_v22 = vld [vmem:[%s6916_s20 + $0x208] sm:$0xff] }
0x2400   :  { %v4791_v47 = vpack.c.bf16 %v3619_v22, %v3618_v56  ;;  %v3604_v56 = vld [vmem:[%s6916_s20 + $0x190] sm:$0xff]  ;;  %v3605_v22 = vld [vmem:[%s6916_s20 + $0x198] sm:$0xff] }
0x2402   :  { %4732 = vmatpush3.bf16.msra.mxu1 %v4731_v18  ;;  %v4793_v18 = vpack.c.bf16 %v3637_v55, %v3636_v3  ;;  %v3588_v3 = vld [vmem:[%s6916_s20 + $0x110] sm:$0xff]  ;;  %v3589_v55 = vld [vmem:[%s6916_s20 + $0x118] sm:$0xff] }
0x2403   :  { %4734 = vmatprep.subr.bf16.mxu1 %v4733_v4  ;;  %v3620_v4 = vld [vmem:[%s6916_s20 + $0x210] sm:$0xff] }
0x2404   :  { %v4795_v28 = vpack.c.bf16 %v3621_v11, %v3620_v4  ;;  %v4763_v4 = vpack.c.bf16 %v3589_v55, %v3588_v3 }
0x2406   :  { %4736 = vmatpush3.bf16.msra.mxu1 %v4735_v40  ;;  %v4797_v40 = vpack.c.bf16 %v3639_v15, %v3638_v41  ;;  %v3591_v41 = vld [vmem:[%s6916_s20 + $0x128] sm:$0xff]  ;;  %v3608_v15 = vld [vmem:[%s6916_s20 + $0x1b0] sm:$0xff] }
0x2407   :  { %4738 = vmatprep.subr.bf16.mxu1 %v4737_v31  ;;  %v3622_v31 = vld [vmem:[%s6916_s20 + $0x220] sm:$0xff] }
0x2408   :  { %v4799_v50 = vpack.c.bf16 %v3623_v36, %v3622_v31 }
0x240a   :  { %4740 = vmatpush3.bf16.msra.mxu1 %v4739_v33  ;;  %v4801_v33 = vpack.c.bf16 %v3641_v48, %v3640_v17  ;;  %v3593_v17 = vld [vmem:[%s6916_s20 + $0x138] sm:$0xff]  ;;  %v3610_v48 = vld [vmem:[%s6916_s20 + $0x1c0] sm:$0xff] }
0x240b   :  { %4742 = vmatprep.subr.bf16.mxu1 %v4741_v23  ;;  %v3624_v23 = vld [vmem:[%s6916_s20 + $0x230] sm:$0xff] }
0x240c   :  { %v4803_v25 = vpack.c.bf16 %v3625_v14, %v3624_v23 }
0x240e   :  { %4744 = vmatpush3.bf16.msra.mxu1 %v4743_v58  ;;  %v3642_v58 = vld [vmem:[%s6916_s20 + $0x2c0] sm:$0xff] }
0x240f   :  { %4746 = vmatprep.subr.bf16.mxu1 %v4745_v30  ;;  %v4807_v30 = vpack.c.bf16 %v3627_v5, %v3626_v62 }
0x24d0   :  { %v4354_v34 = vpop.f32.mrb[30].mxu1 }
0x24d1   :  { %v3345_v44 = vadd.f32 %v4354_v34, %v4041_v54  ;;  %v3339_v43 = vpop.f32.mrb[31].mxu1  ;;  %v3565_v34 = vld [vmem:[%s6916_s20 + $0x58] sm:$0xff] }
0x24d2   :  { %v3340_v35 = vadd.f32 %v4041_v54, %v3339_v43  ;;  %v3564_v54 = vld [vmem:[%s6916_s20 + $0x50] sm:$0xff]  ;;  %v5324_v43 = vmov 0.0|0.0  }
0x24d3   :  { %v4045_v42 = vmul.f32 -1.442695, %v3345_v44  ;;  %v3364_v26 = vsel %vm3360_vm11, %v3345_v44, -inf  ;;  %4719 = vmatprep.subr.bf16.mxu0 %v5324_v43 }
0x24d4   :  { %v4044_v51 = vmul.f32 -1.442695, %v3340_v35  ;;  %3365 = vmax.xlane.f32.xlu1 %v3364_v26  ;;  %v3361_v60 = vsel %vm3360_vm11, %v3340_v35, -inf }
0x24d5   :  { %5073 = vpow2.f32 %v4045_v42  ;;  %3362 = vmax.xlane.f32.xlu0 %v3361_v60  ;;  %v3583_v42 = vld [vmem:[%s6916_s20 + $0xe8] sm:$0xff] }
0x24d6   :  { %5075 = vpow2.f32 %v4044_v51  ;;  %v3566_v51 = vld [vmem:[%s6916_s20 + $0x60] sm:$0xff]  ;;  %v3567_v60 = vld [vmem:[%s6916_s20 + $0x68] sm:$0xff] }
0x24df   :  { %v5074_v27 = vpop.eup %5073 }
0x24e0   :  { %v5076_v24 = vpop.eup %5075  ;;  %v3355_v16 = vadd.f32 1.0, %v5074_v27  ;;  %v5325_v27 = vmov 1983009808  }
0x24e1   :  { %v3354_v37 = vadd.f32 1.0, %v5076_v24  ;;  %v3661_v24 = vunpack.c.l.s4 %v5325_v27 }
0x24e2   :  { %5077 = vrcp.f32 %v3355_v16 }
0x24e3   :  { %5079 = vrcp.f32 %v3354_v37  ;;  %v4751_v37 = vpack.c.bf16 %v3567_v60, %v3566_v51  ;;  %v3646_v51 = vld [vmem:[%s6916_s20 + $0x2e0] sm:$0xff]  ;;  %v3647_v60 = vld [vmem:[%s6916_s20 + $0x2e8] sm:$0xff] }
0x24e4   :  { %v4813_v27 = vpack.c.bf16 %v3647_v60, %v3646_v51  ;;  %v3599_v51 = vld [vmem:[%s6916_s20 + $0x168] sm:$0xff]  ;;  %v3616_v60 = vld [vmem:[%s6916_s20 + $0x1f0] sm:$0xff] }
0x24ec   :  { %v6534_v12 = vpop.eup %5077 }
0x24ed   :  { %v6536_v38 = vpop.eup %5079  ;;  %3907 = vst.msk [vmem:[%s6918_s22 + $0x8] sm:$0xff] %vm3381_vm12, %v6534_v12 }
0x24ee   :  { %3906 = vst.msk [vmem:[%s6918_s22] sm:$0xff] %vm3381_vm12, %v6536_v38 }
0x2561   :  { %v3366_v10 = vpop.xlane.xlu1 %3365 }
0x2562   :  { %v3368_v45 = vsub.f32 %v3345_v44, %v3366_v10  ;;  %v3363_v53 = vpop.xlane.xlu0 %3362  ;;  %v4747_v44 = vpack.c.bf16 %v3565_v34, %v3564_v54  ;;  %v3644_v54 = vld [vmem:[%s6916_s20 + $0x2d0] sm:$0xff]  ;;  %v3645_v34 = vld [vmem:[%s6916_s20 + $0x2d8] sm:$0xff] }
0x2563   :  { %v3367_v49 = vsub.f32 %v3340_v35, %v3363_v53  ;;  %v3582_v35 = vld [vmem:[%s6916_s20 + $0xe0] sm:$0xff]  ;;  %v3662_v53 = vunpack.c.0.s8 %v3661_v24 }
0x2564   :  { %v3371_v63 = vmul.f32 1.442695, %v3368_v45  ;;  %4748 = vmatpush3.bf16.msra.mxu1 %v4747_v44  ;;  %v4749_v26 = vpack.c.bf16 %v3583_v42, %v3582_v35  ;;  %v4809_v44 = vpack.c.bf16 %v3645_v34, %v3644_v54  ;;  %v3628_v35 = vld [vmem:[%s6916_s20 + $0x250] sm:$0xff]  ;;  %v3629_v42 = vld [vmem:[%s6916_s20 + $0x258] sm:$0xff]  ;;  %v3630_v24 = vld [vmem:[%s6916_s20 + $0x260] sm:$0xff] }
0x2565   :  { %v3369_v0 = vmul.f32 1.442695, %v3367_v49  ;;  %v3597_v54 = vld [vmem:[%s6916_s20 + $0x158] sm:$0xff]  ;;  %v3614_v34 = vld [vmem:[%s6916_s20 + $0x1e0] sm:$0xff] }
0x2566   :  { %5081 = vpow2.f32 %v3371_v63  ;;  %4750 = vmatprep.subr.bf16.mxu1 %v4749_v26  ;;  %v3584_v63 = vld [vmem:[%s6916_s20 + $0xf0] sm:$0xff]  ;;  %v4811_v26 = vpack.c.bf16 %v3629_v42, %v3628_v35 }
0x2567   :  { %5083 = vpow2.f32 %v3369_v0  ;;  %v3585_v0 = vld [vmem:[%s6916_s20 + $0xf8] sm:$0xff] }
0x2568   :  { %4752 = vmatpush3.bf16.msra.mxu1 %v4751_v37 }
0x2570   :  { %v6548_v46 = vpop.eup %5081 }
0x2571   :  { %v6550_v2 = vpop.eup %5083  ;;  %3377 = vrot.lane.b32.xlu1 %v6548_v46, %s5323_s25 }
0x2572   :  { %3375 = vrot.lane.b32.xlu0 %v6550_v2, %s5323_s25 }
0x25e3   :  { %v3378_v19 = vpop.permute.xlu1 %3377 }
0x25e4   :  { %v3376_v9 = vpop.permute.xlu0 %3375  ;;  %v3385_v39 = vsel %vm3381_vm12, %v3378_v19, 0.0 }
0x25e5   :  { %3386 = vadd.xlane.f32.xlu1 %v3385_v39  ;;  %v3382_v20 = vsel %vm3381_vm12, %v3376_v9, 0.0  ;;  %v4753_v9 = vpack.c.bf16 %v3585_v0, %v3584_v63  ;;  %v3568_v39 = vld [vmem:[%s6916_s20 + $0x70] sm:$0xff] }
0x25e6   :  { %3383 = vadd.xlane.f32.xlu0 %v3382_v20  ;;  %v3632_v0 = vld [vmem:[%s6916_s20 + $0x270] sm:$0xff] }
0x25e7   :  { %4754 = vmatprep.subr.bf16.mxu1 %v4753_v9 }
0x2672   :  { %v3387_v61 = vpop.xlane.xlu1 %3386 }
0x2673   :  { %5085 = vrcp.f32 %v3387_v61  ;;  %v3384_v6 = vpop.xlane.xlu0 %3383  ;;  %v3643_v61 = vld [vmem:[%s6916_s20 + $0x2c8] sm:$0xff] }
0x2674   :  { %5087 = vrcp.f32 %v3384_v6  ;;  %v4805_v6 = vpack.c.bf16 %v3643_v61, %v3642_v58  ;;  %v3595_v58 = vld [vmem:[%s6916_s20 + $0x148] sm:$0xff]  ;;  %v3612_v61 = vld [vmem:[%s6916_s20 + $0x1d0] sm:$0xff] }
0x267d   :  { %v5086_v16 = vpop.eup %5085 }
0x267e   :  { %v5088_v10 = vpop.eup %5087  ;;  %v3391_v45 = vmul.f32 %v5086_v16, %v6548_v46  ;;  %v3569_v46 = vld [vmem:[%s6916_s20 + $0x78] sm:$0xff]  ;;  %v3631_v16 = vld [vmem:[%s6916_s20 + $0x268] sm:$0xff] }
0x267f   :  { %v3389_v49 = vmul.f32 %v5088_v10, %v6550_v2  ;;  %v6660_v2 = vsub.s32 %v3662_v53, %v6017_v32  ;;  %v4755_v57 = vpack.c.bf16 %v3569_v46, %v3568_v39  ;;  %v4815_v37 = vpack.c.bf16 %v3631_v16, %v3630_v24  ;;  %v3649_v53 = vld [vmem:[%s6916_s20 + $0x2f8] sm:$0xff]  ;;  %v4049_v39 = vld.sshfl [vmem:[%s6942_s27 + $0x8] sm:$0x33 pattern:$0x76325410] }
0x2680   :  { %v3393_v19 = vmax.f32 %v3391_v45, 1e-07  ;;  %v3659_v10 = vcombine.high %v6665_v13, %v6665_v13  ;;  %v3648_v45 = vld [vmem:[%s6916_s20 + $0x2f0] sm:$0xff]  ;;  %v3683_v46 = vcombine.high %v4049_v39, %v4049_v39 }
0x2681   :  { %v3392_v20 = vmax.f32 %v3389_v49, 1e-07  ;;  %v3666_v7 = vrot.slane %v6665_v13, %v6660_v2  ;;  %4756 = vmatpush3.bf16.msra.mxu1 %v4755_v57  ;;  %v4817_v49 = vpack.c.bf16 %v3649_v53, %v3648_v45 }
0x2682   :  { %v3395_v21 = vmin.f32 %v3393_v19, 1.0  ;;  %4790 = vmatprep.subr.bf16.mxu1 %v4789_v52  ;;  %v6764_v63 = vrot.slane %v3659_v10, %v6660_v2  ;;  %v3633_v19 = vld [vmem:[%s6916_s20 + $0x278] sm:$0xff] }
0x2683   :  { %v3394_v1 = vmin.f32 %v3392_v20, 1.0  ;;  %v3674_v32 = vcombine.high %v3666_v7, %v3666_v7  ;;  %v4819_v9 = vpack.c.bf16 %v3633_v19, %v3632_v0  ;;  %v3601_v10 = vld [vmem:[%s6916_s20 + $0x178] sm:$0xff] }
0x2684   :  { %3401 = vrot.lane.b32.xlu1 %v3395_v21, %s5323_s25  ;;  %v3675_v52 = vcombine.high %v6764_v63, %v6764_v63 }
0x2685   :  { %3399 = vrot.lane.b32.xlu0 %v3394_v1, %s5323_s25  ;;  %3754 = vmatprep.mubr.f32.mxu1 %v3674_v32  ;;  %v3603_v1 = vld [vmem:[%s6916_s20 + $0x188] sm:$0xff] }
0x2686   :  { %3755 = vmatmul.mubr.f32.vlgmr.msra.gmra.mrb[32].mxu1 %v3666_v7  ;;  %v3602_v7 = vld [vmem:[%s6916_s20 + $0x180] sm:$0xff]  ;;  %v3587_v32 = vld [vmem:[%s6916_s20 + $0x108] sm:$0xff] }
0x2687   :  { %4792 = vmatpush3.bf16.msra.mxu1 %v4791_v47  ;;  %3894 = vmatprep.mubr.f32.mxu1 %v3683_v46  ;;  %v4761_v47 = vpack.c.bf16 %v3605_v22, %v3604_v56 }
0x2688   :  { %4794 = vmatprep.subr.bf16.mxu1 %v4793_v18  ;;  %v3606_v18 = vld [vmem:[%s6916_s20 + $0x1a0] sm:$0xff] }
0x268b   :  { %4796 = vmatpush3.bf16.msra.mxu1 %v4795_v28  ;;  %v3590_v28 = vld [vmem:[%s6916_s20 + $0x120] sm:$0xff] }
0x268c   :  { %4798 = vmatprep.subr.bf16.mxu1 %v4797_v40  ;;  %v3609_v40 = vld [vmem:[%s6916_s20 + $0x1b8] sm:$0xff]  ;;  %v4767_v31 = vpack.c.bf16 %v3591_v41, %v3590_v28 }
0x268d   :  { %v4769_v36 = vpack.c.bf16 %v3609_v40, %v3608_v15 }
0x268f   :  { %4800 = vmatpush3.bf16.msra.mxu1 %v4799_v50  ;;  %v3592_v50 = vld [vmem:[%s6916_s20 + $0x130] sm:$0xff] }
0x2690   :  { %4802 = vmatprep.subr.bf16.mxu1 %v4801_v33  ;;  %v3611_v33 = vld [vmem:[%s6916_s20 + $0x1c8] sm:$0xff]  ;;  %v4771_v23 = vpack.c.bf16 %v3593_v17, %v3592_v50 }
0x2691   :  { %v4773_v14 = vpack.c.bf16 %v3611_v33, %v3610_v48 }
0x2693   :  { %4804 = vmatpush3.bf16.msra.mxu1 %v4803_v25  ;;  %v3594_v25 = vld [vmem:[%s6916_s20 + $0x140] sm:$0xff] }
0x2694   :  { %4806 = vmatprep.subr.bf16.mxu1 %v4805_v6  ;;  %v3613_v6 = vld [vmem:[%s6916_s20 + $0x1d8] sm:$0xff]  ;;  %v4775_v62 = vpack.c.bf16 %v3595_v58, %v3594_v25 }
0x2695   :  { %v4777_v5 = vpack.c.bf16 %v3613_v6, %v3612_v61 }
0x2697   :  { %4808 = vmatpush3.bf16.msra.mxu1 %v4807_v30  ;;  %v3596_v30 = vld [vmem:[%s6916_s20 + $0x150] sm:$0xff] }
0x2698   :  { %4810 = vmatprep.subr.bf16.mxu1 %v4809_v44  ;;  %v3615_v44 = vld [vmem:[%s6916_s20 + $0x1e8] sm:$0xff]  ;;  %v4779_v35 = vpack.c.bf16 %v3597_v54, %v3596_v30 }
0x2699   :  { %v4781_v42 = vpack.c.bf16 %v3615_v44, %v3614_v34 }
0x269b   :  { %4812 = vmatpush3.bf16.msra.mxu1 %v4811_v26  ;;  %v3598_v26 = vld [vmem:[%s6916_s20 + $0x160] sm:$0xff] }
0x269c   :  { %4814 = vmatprep.subr.bf16.mxu1 %v4813_v27  ;;  %v3617_v27 = vld [vmem:[%s6916_s20 + $0x1f8] sm:$0xff]  ;;  %v4783_v24 = vpack.c.bf16 %v3599_v51, %v3598_v26 }
0x269d   :  { %v4785_v16 = vpack.c.bf16 %v3617_v27, %v3616_v60 }
0x269f   :  { %4816 = vmatpush3.bf16.msra.mxu1 %v4815_v37  ;;  %v3600_v37 = vld [vmem:[%s6916_s20 + $0x170] sm:$0xff] }
0x26a0   :  { %4818 = vmatprep.subr.bf16.mxu1 %v4817_v49  ;;  %v4787_v45 = vpack.c.bf16 %v3601_v10, %v3600_v37 }
0x26a3   :  { %4820 = vmatpush3.bf16.msra.mxu1 %v4819_v9 }
0x26a6   :  { %3895 = vmatmul.mubr.f32.vlgmr.msra.gmra.mrb[34].mxu1 %v4049_v39 }
0x26f6   :  { %v3402_v2 = vpop.permute.xlu1 %3401 }
0x26f7   :  { %v3406_v20 = vmul.f32 %v6534_v12, %v3402_v2  ;;  %v3400_v57 = vpop.permute.xlu0 %3399  ;;  %v4757_v12 = vpack.c.bf16 %v3603_v1, %v3602_v7  ;;  %v4048_v7 = vld [vmem:[#allocation14] ss:$0 sm:$0xff] }
0x26f8   :  { %v3405_v13 = vmul.f32 %v6536_v38, %v3400_v57  ;;  %v3586_v38 = vld [vmem:[%s6916_s20 + $0x100] sm:$0xff]  ;;  %v4723_v59 = vpack.c.bf16 %v3402_v2, %v3400_v57 }
0x26fa   :  { %v4720_v21 = vpack.c.bf16 %v3406_v20, %v3405_v13 }
0x26fc   :  { %4721 = vmatpush3.bf16.msra.mxu0 %v4720_v21 }
0x26fd   :  { %4722 = vmatprep.subr.bf16.mxu0 %v5324_v43  ;;  %v4759_v43 = vpack.c.bf16 %v3587_v32, %v3586_v38 }
0x26ff   :  { %4360 = vmatmul.mubr.msk.f32.vlgmr.msra.gmra.mrb[48].mxu0 %vm1067_vm5, %v3396_v8 }
0x2700   :  { %4724 = vmatpush3.bf16.msra.mxu0 %v4723_v59  ;;  %4366 = vmatprep.mubr.msk.f32.mxu0 %vm5326_vm13, %v5319_v29  ;;  %v3607_v29 = vld [vmem:[%s6916_s20 + $0x1a8] sm:$0xff]  ;;  %s5327_s20 = smov [#allocation16]  }
0x2701   :  { %4758 = vmatprep.subr.bf16.mxu0 %v4757_v12  ;;  %v4765_v11 = vpack.c.bf16 %v3607_v29, %v3606_v18  ;;  %s3921_s22 = sshll.u32 %s5327_s20, 4  ;;  %s3922_s22 = int_to_ptr.vmem [resolvable:$true] %s3921_s22 }
0x2702   :  { %s5271_s7 = scalar_lea.vmem %s3922_s22, 32  ;;  %p5276_p9 = scmp.lt.s32.totalorder %s3922_s22, %s3922_s22 }
0x2703   :  { %4367 = vmatmul.mubr.msk.f32.vlgmr.msra.gmra.mrb[50].mxu0 %vm1067_vm5, %v3396_v8  ;;  %p5272_p8 = scmp.ne.s32.totalorder %s3922_s22, %s5271_s7  ;;  %p5277_p10 = scmp.lt.s32.totalorder %s5271_s7, %s5271_s7 }
0x2704   :  { %4760 = vmatpush3.bf16.msra.mxu0 %v4759_v43  ;;  %3824 = vmatprep.mubr.f32.mxu0 %v3675_v52 }
0x2705   :  { %4762 = vmatprep.subr.bf16.mxu0 %v4761_v47  ;;  %p5278_p11 = por %p5277_p10, %p5276_p9 }
0x2707   :  { %p5279_p12 = pnand %p5278_p11, %p5272_p8 }
0x2708   :  { %4764 = vmatpush3.bf16.msra.mxu0 %v4763_v4 }
0x2709   :  { %4766 = vmatprep.subr.bf16.mxu0 %v4765_v11 }
0x270c   :  { %4768 = vmatpush3.bf16.msra.mxu0 %v4767_v31 }
0x270d   :  { %4770 = vmatprep.subr.bf16.mxu0 %v4769_v36 }
0x2710   :  { %4772 = vmatpush3.bf16.msra.mxu0 %v4771_v23 }
0x2711   :  { %4774 = vmatprep.subr.bf16.mxu0 %v4773_v14 }
0x2714   :  { %4776 = vmatpush3.bf16.msra.mxu0 %v4775_v62 }
0x2715   :  { %4778 = vmatprep.subr.bf16.mxu0 %v4777_v5 }
0x2718   :  { %4780 = vmatpush3.bf16.msra.mxu0 %v4779_v35 }
0x2719   :  { %4782 = vmatprep.subr.bf16.mxu0 %v4781_v42 }
0x271c   :  { %4784 = vmatpush3.bf16.msra.mxu0 %v4783_v24 }
0x271d   :  { %4786 = vmatprep.subr.bf16.mxu0 %v4785_v16 }
0x2720   :  { %4788 = vmatpush3.bf16.msra.mxu0 %v4787_v45 }
0x2723   :  { %3825 = vmatmul.mubr.f32.vlgmr.msra.gmra.mrb[52].mxu0 %v6764_v63 }
0x2759   :  { %v4185_v53 = vpop.f32.mrb[32].mxu1 }
0x275a   :  { %v4186_v49 = vpop.f32.mrb[33].mxu1 }
0x275b   :  { %v4187_v0 = vadd.f32 %v4186_v49, %v4185_v53 }
0x275d   :  { %v3757_v12 = vadd.f32 %v4187_v0, %v4048_v7 }
0x2779   :  { %v4255_v19 = vpop.f32.mrb[34].mxu1 }
0x277a   :  { %v4256_v9 = vpop.f32.mrb[35].mxu1 }
0x277b   :  { %v4257_v39 = vadd.f32 %v4256_v9, %v4255_v19 }
0x27d2   :  { %v3476_v46 = vpop.f32.mrb[48].mxu0 }
0x27d3   :  { %v4361_v2 = vpop.f32.mrb[49].mxu0 }
0x27d6   :  { %v3546_v20 = vpop.f32.mrb[50].mxu0 }
0x27d7   :  { %5089 = vrcp.f32 %v3546_v20  ;;  %v4368_v57 = vpop.f32.mrb[51].mxu0 }
0x27e1   :  { %v5090_v13 = vpop.eup %5089 }
0x27e2   :  { %v3551_v21 = vmul.f32 %v5090_v13, %v3476_v46 }
0x27e4   :  { %v3909_v47 = vmul.f32 0.5, %v3551_v21 }
0x27f6   :  { %v4220_v1 = vpop.f32.mrb[52].mxu0 }
0x27f7   :  { %v4221_v8 = vpop.f32.mrb[53].mxu0 }
0x27f8   :  { %v4222_v38 = vadd.f32 %v4221_v8, %v4220_v1 }
0x27fa   :  { %v3827_v32 = vadd.f32 %v4222_v38, %v3757_v12 }
0x27fc   :  { %v3897_v63 = vadd.f32 %v4257_v39, %v3827_v32 }
0x27fe   :  { %v4050_v59 = vmul.f32 -1.442695, %v3897_v63 }
0x2800   :  { %5091 = vpow2.f32 %v4050_v59 }
0x280a   :  { %v5092_v56 = vpop.eup %5091 }
0x280b   :  { %v3903_v22 = vadd.f32 1.0, %v5092_v56 }
0x280d   :  { %5093 = vrcp.f32 %v3903_v22 }
0x2817   :  { %v5094_v43 = vpop.eup %5093 }
0x2818   :  { %v3908_v52 = vmul.f32 0.5, %v5094_v43 }
0x281a   :  { %v3910_v3 = vadd.f32 %v3909_v47, %v3908_v52 }
0x281c   :  { %3912 = vst.msk [vmem:[#allocation16] sm:$0x3] %vm3911_vm14, %v3910_v3 }
0x281d   :  { %5282 = shalt.err (!%p5279_p12)
}
0x281e   :  { %s5283_s15 = scalar_lea.hbm %s6919_s23, 32 }
0x281f   :  { %p5284_p13 = scmp.ne.s32.totalorder %s6919_s23, %s5283_s15  ;;  %p5287_p0 = scmp.lt.u32.totalorder %s5283_s15, %s6919_s23 }
0x2821   :  { %p5289_p1 = pnand %p5287_p0, %p5284_p13 }
0x2823   :  { %5292 = shalt.err (!%p5289_p1)
}
0x2824   :  { %3924 = dma.vmem_to_hbm [thread:$0]  %s3922_s22, 32, %s6919_s23, [#allocation4]  }
0x2825   :  { %5303 = dma.done.wait [#allocation4], 32  }
0x2826   :  { %5304 = vsyncadd [#allocation4], 4294967264 }
0x2827   :  { %3930 = vsyncpa [#allocation3], 1 }
0x2828   :  { %3931 = vsyncpa [#allocation6], 1 }
0x2829   :  { %3932 = vsyncpa [#allocation9], 1 }
0x282a   :  { %3933 = vsyncpa [#allocation12], 1 }
0x282b   :  { %3934 = vsyncpa [#allocation15], 1 }
0x282c   :  { %3935 = vsyncpa [#allocation4], 1 }

</bundles_post_ra>
